<compile_context>
chip_gen: v7x
topology: tpu7x:2x2x1
jax: 0.10.0
libtpu: 0.0.40
codegen_flags: <defaults>
</compile_context>

<pallas_src>
import math
from functools import partial

import jax
import jax.numpy as jnp
from jax import lax
from jax.experimental import pallas as pl
from jax.experimental.pallas import tpu as pltpu

LN_EPS = 1e-5                      # PyTorch nn.LayerNorm default
VMEM_LIMIT = 64 * 1024 * 1024      # explicit scoped-VMEM cap (v7x-safe)
NEG_INF = -1e30                    # finite "-inf" for the causal mask
TILE_V = 256                       # lm_head vocab tile (256-wide MXU fill)


# ----------------------------- shared helpers --------------------------------

def _layernorm(x, g, b):
    mu = jnp.mean(x, axis=-1, keepdims=True)
    var = jnp.mean(jnp.square(x - mu), axis=-1, keepdims=True)
    return (x - mu) * lax.rsqrt(var + LN_EPS) * g + b


def _softmax(x):
    m = jnp.max(x, axis=-1, keepdims=True)
    e = jnp.exp(x - m)
    # divide -> EUP reciprocal + VPU multiply (EUP slot is otherwise idle here)
    return e * pl.reciprocal(jnp.sum(e, axis=-1, keepdims=True), approx=True)


# ------------------------------ Pallas kernels --------------------------------

def _blocks_kernel(n_head,
                   x_ref,
                   ln1_g, ln1_b, w_qkv, wp, bp,
                   ln2_g, ln2_b, w1, b1, w2, b2,
                   o_ref, x_carry):
    """All transformer blocks; grid = (batch, layer). Activation carried in VMEM."""
    l = pl.program_id(1)

    @pl.when(l == 0)
    def _():
        x_carry[...] = x_ref[...]            # load activations once per batch elem

    x = x_carry[...]                         # (T, C) f32
    T, C = x.shape
    hs = C // n_head
    scale = 1.0 / math.sqrt(hs)

    # --- causal multi-head self-attention on ln1(x) ---
    xn = _layernorm(x, ln1_g[...], ln1_b[...])
    # fused QKV projection: one lane-dense (C, 3C) bf16 MXU op, f32 accumulation
    qkv = jnp.dot(xn.astype(jnp.bfloat16), w_qkv[...],
                  preferred_element_type=jnp.float32)            # (T, 3C) f32

    # additive causal mask, built once and shared by every head
    row = lax.broadcasted_iota(jnp.int32, (T, T), 0)
    col = lax.broadcasted_iota(jnp.int32, (T, T), 1)
    mask_add = jnp.where(col <= row, 0.0, NEG_INF).astype(jnp.float32)

    head_outs = []
    # n_head is small & static -> unrolled.
    # TODO(synk): per-head lane slices at hs offsets cost XLU shuffles; a
    #             head-major qkv layout would remove them.
    for h in range(n_head):
        lo = h * hs
        qh = (qkv[:, lo:lo + hs] * scale).astype(jnp.bfloat16)    # pre-scaled q
        kh = qkv[:, C + lo:C + lo + hs].astype(jnp.bfloat16)
        vh = qkv[:, 2 * C + lo:2 * C + lo + hs].astype(jnp.bfloat16)
        s = lax.dot_general(qh, kh, (((1,), (1,)), ((), ())),
                            preferred_element_type=jnp.float32) + mask_add
        p = _softmax(s)
        # TODO(synk): attention/residual dropout omitted (eval-mode identity).
        head_outs.append(jnp.dot(p.astype(jnp.bfloat16), vh,
                                 preferred_element_type=jnp.float32))  # (T, hs)
    # concat heads -> ONE lane-dense (T,C)@(C,C) projection (full-K MXU fill)
    heads = jnp.concatenate(head_outs, axis=-1).astype(jnp.bfloat16)   # (T, C)
    proj = jnp.dot(heads, wp[...], preferred_element_type=jnp.float32)
    x = x + proj + bp[...]

    # --- feed-forward on ln2(x) ---
    xn2 = _layernorm(x, ln2_g[...], ln2_b[...])
    h1 = jnp.dot(xn2.astype(jnp.bfloat16), w1[...],
                 preferred_element_type=jnp.float32) + b1[...]
    h1 = jnp.maximum(h1, 0.0)                                          # ReLU
    x = x + jnp.dot(h1.astype(jnp.bfloat16), w2[...],
                    preferred_element_type=jnp.float32) + b2[...]

    x_carry[...] = x                          # carry residual stream to next layer

    @pl.when(l == pl.num_programs(1) - 1)
    def _():
        o_ref[...] = x                        # write HBM output once, at last layer


def _final_kernel(x_ref, g_ref, b_ref, w_ref, bias_ref, o_ref, xn_scratch):
    """ln_f (computed once per batch element) + one vocab tile of lm_head."""
    @pl.when(pl.program_id(1) == 0)
    def _():
        xn = _layernorm(x_ref[...], g_ref[...], b_ref[...])            # (T, C) f32
        xn_scratch[...] = xn.astype(xn_scratch.dtype)                  # reuse across tiles
    o_ref[...] = (jnp.dot(xn_scratch[...], w_ref[...],
                          preferred_element_type=jnp.float32)
                  + bias_ref[...])                                     # (T, tV)


# ------------------------------ wrappers --------------------------------------

def _layer_spec(arr):
    """BlockSpec selecting one layer slice of a stacked (L, ...) weight array."""
    return pl.BlockSpec((None,) + arr.shape[1:], lambda b, l: (l, 0, 0))


def run_blocks(x, p, n_head):
    B, T, C = x.shape
    L = p['w_qkv'].shape[0]
    H = 4 * C
    weights = [p['ln1_g'], p['ln1_b'], p['w_qkv'], p['wp'], p['bp'],
               p['ln2_g'], p['ln2_b'], p['w1'], p['b1'], p['w2'], p['b2']]
    in_specs = ([pl.BlockSpec((None, T, C), lambda b, l: (b, 0, 0))]   # batch-squeezed
                + [_layer_spec(w) for w in weights])
    out_spec = pl.BlockSpec((None, T, C), lambda b, l: (b, 0, 0))

    flops = 2 * B * L * T * C * (12 * C + 2 * T)
    transcend = B * L * (n_head * T * T + 4 * T)
    nbytes = (12 * L * C * C * 2                  # bf16 matmul weights
              + 8 * L * C * 4 + 2 * L * H * 4     # small f32 ln/bias params
              + 2 * B * T * C * 4)                # activations in/out

    return pl.pallas_call(
        partial(_blocks_kernel, n_head),
        out_shape=jax.ShapeDtypeStruct((B, T, C), jnp.float32),
        grid_spec=pltpu.PrefetchScalarGridSpec(
            num_scalar_prefetch=0, grid=(B, L),
            in_specs=in_specs, out_specs=out_spec,
            scratch_shapes=[pltpu.VMEM((T, C), jnp.float32)]),         # residual carry
        compiler_params=pltpu.CompilerParams(
            dimension_semantics=("parallel", "arbitrary"),
            vmem_limit_bytes=VMEM_LIMIT),
        cost_estimate=pl.CostEstimate(flops=flops, transcendentals=transcend,
                                      bytes_accessed=nbytes),
    )(x, *weights)


def run_final(x, params, tile_v=TILE_V):
    """ln_f + lm_head, tiled over the (padded, lane-dense) vocab axis."""
    B, T, C = x.shape
    V_pad = params['lm_w'].shape[1]               # already padded to tile_v multiple
    n_v = V_pad // tile_v

    flops = 2 * B * T * C * V_pad
    nbytes = B * (C * V_pad * 2 + T * V_pad * 4 + T * C * 4)

    return pl.pallas_call(
        _final_kernel,
        out_shape=jax.ShapeDtypeStruct((B, T, V_pad), jnp.float32),
        grid_spec=pltpu.PrefetchScalarGridSpec(
            num_scalar_prefetch=0, grid=(B, n_v),
            in_specs=[
                pl.BlockSpec((None, T, C), lambda b, j: (b, 0, 0)),
                pl.BlockSpec((1, C), lambda b, j: (0, 0)),
                pl.BlockSpec((1, C), lambda b, j: (0, 0)),
                pl.BlockSpec((C, tile_v), lambda b, j: (0, j)),
                pl.BlockSpec((1, tile_v), lambda b, j: (0, j)),
            ],
            out_specs=pl.BlockSpec((None, T, tile_v), lambda b, j: (b, 0, j)),
            scratch_shapes=[pltpu.VMEM((T, C), jnp.bfloat16)]),        # ln_f(x) reuse
        compiler_params=pltpu.CompilerParams(
            dimension_semantics=("parallel", "arbitrary"),
            vmem_limit_bytes=VMEM_LIMIT),
        cost_estimate=pl.CostEstimate(flops=flops, transcendentals=4 * B * T,
                                      bytes_accessed=nbytes),
    )(x, params['lnf_g'], params['lnf_b'], params['lm_w'], params['lm_b'])


def gpt_forward(params, idx, n_head, vocab_size):
    """Returns logits (B, T, vocab).  targets=None path => loss is None."""
    B, T = idx.shape
    # glue: embedding gathers stay in plain JAX
    x = params['tok_emb'][idx] + params['pos_emb'][:T][None, :, :]
    x = run_blocks(x, params, n_head)
    logits = run_final(x, params)[..., :vocab_size]   # drop vocab padding
    # TODO(synk): cross-entropy loss path (targets != None) not implemented here.
    return logits, None


# ------------------------------ parameter init --------------------------------

def init_params(key, vocab_size, n_embd, n_layer, block_size, tile_v=TILE_V):
    C, H = n_embd, 4 * n_embd
    std = 0.02
    v_pad = ((vocab_size + tile_v - 1) // tile_v) * tile_v
    keys = jax.random.split(key, 7)

    def w(k, shape):   # matmul weights live in bf16 (halved DMA / VMEM)
        return (jax.random.normal(k, shape, jnp.float32) * std).astype(jnp.bfloat16)

    lm_w = jax.random.normal(keys[2], (C, vocab_size), jnp.float32) * std
    lm_w = jnp.pad(lm_w, ((0, 0), (0, v_pad - vocab_size))).astype(jnp.bfloat16)

    return {
        'tok_emb': jax.random.normal(keys[0], (vocab_size, C), jnp.float32) * std,
        'pos_emb': jax.random.normal(keys[1], (block_size, C), jnp.float32) * std,
        'lnf_g': jnp.ones((1, C), jnp.float32),
        'lnf_b': jnp.zeros((1, C), jnp.float32),
        'lm_w': lm_w,
        'lm_b': jnp.zeros((1, v_pad), jnp.float32),
        # per-layer params stacked along a leading layer axis (indexed by the grid)
        'ln1_g': jnp.ones((n_layer, 1, C), jnp.float32),
        'ln1_b': jnp.zeros((n_layer, 1, C), jnp.float32),
        'w_qkv': w(keys[3], (n_layer, C, 3 * C)),
        'wp': w(keys[4], (n_layer, C, C)),
        'bp': jnp.zeros((n_layer, 1, C), jnp.float32),
        'ln2_g': jnp.ones((n_layer, 1, C), jnp.float32),
        'ln2_b': jnp.zeros((n_layer, 1, C), jnp.float32),
        'w1': w(keys[5], (n_layer, C, H)),
        'b1': jnp.zeros((n_layer, 1, H), jnp.float32),
        'w2': w(keys[6], (n_layer, H, C)),
        'b2': jnp.zeros((n_layer, 1, C), jnp.float32),
    }


# ------------------------------ pure-JAX reference -----------------------------

def _ref_forward(params, idx, n_head, vocab_size):
    """Mirrors the kernel math (bf16 MXU operands, f32 accumulation, eval mode)."""
    B, T = idx.shape
    x = params['tok_emb'][idx] + params['pos_emb'][:T][None, :, :]
    C = x.shape[-1]
    n_layer = params['w_qkv'].shape[0]
    hs = C // n_head
    scale = 1.0 / math.sqrt(hs)
    row = lax.broadcasted_iota(jnp.int32, (T, T), 0)
    col = lax.broadcasted_iota(jnp.int32, (T, T), 1)
    mask_add = jnp.where(col <= row, 0.0, NEG_INF).astype(jnp.float32)

    def mm(a, b):  # bf16 x bf16 -> f32
        return jnp.einsum('btc,cd->btd', a.astype(jnp.bfloat16), b,
                          preferred_element_type=jnp.float32)

    for l in range(n_layer):
        xn = _layernorm(x, params['ln1_g'][l], params['ln1_b'][l])
        qkv = mm(xn, params['w_qkv'][l])
        outs = []
        for h in range(n_head):
            lo = h * hs
            qh = (qkv[..., lo:lo + hs] * scale).astype(jnp.bfloat16)
            kh = qkv[..., C + lo:C + lo + hs].astype(jnp.bfloat16)
            vh = qkv[..., 2 * C + lo:2 * C + lo + hs].astype(jnp.bfloat16)
            s = jnp.einsum('btd,bsd->bts', qh, kh,
                           preferred_element_type=jnp.float32) + mask_add
            p = jax.nn.softmax(s, axis=-1)
            outs.append(jnp.einsum('bts,bsd->btd', p.astype(jnp.bfloat16), vh,
                                   preferred_element_type=jnp.float32))
        heads = jnp.concatenate(outs, -1)
        x = x + mm(heads, params['wp'][l]) + params['bp'][l]
        xn2 = _layernorm(x, params['ln2_g'][l], params['ln2_b'][l])
        h1 = jnp.maximum(mm(xn2, params['w1'][l]) + params['b1'][l], 0.0)
        x = x + mm(h1, params['w2'][l]) + params['b2'][l]

    xn = _layernorm(x, params['lnf_g'], params['lnf_b'])
    logits = mm(xn, params['lm_w']) + params['lm_b']
    return logits[..., :vocab_size]


# ----------------------------------- main --------------------------------------

if __name__ == "__main__":
    # small but (8,128)-friendly config consistent with the module's structure
    vocab_size, n_embd, n_head, n_layer, block_size = 256, 128, 4, 2, 64
    B, T = 2, 64

    key = jax.random.PRNGKey(0)
    pkey, dkey = jax.random.split(key)
    params = init_params(pkey, vocab_size, n_embd, n_layer, block_size)
    idx = jax.random.randint(dkey, (B, T), 0, vocab_size, dtype=jnp.int32)

    logits, loss = gpt_forward(params, idx, n_head, vocab_size)
    logits = jax.block_until_ready(logits)

    assert logits.shape == (B, T, vocab_size)
    ref = _ref_forward(params, idx, n_head, vocab_size)
    assert jnp.allclose(logits, ref, atol=5e-3, rtol=5e-3), "mismatch vs JAX reference"
    assert loss is None  # targets=None path
    print("KERNEL_OK")
</pallas_src>

<mosaic_0001>
module attributes {stable_mosaic.version = 11 : i64} {
  func.func @_blocks_kernel(%arg0: i32, %arg1: i32, %arg2: memref<1x64x128xf32, #tpu.memory_space<vmem>>, %arg3: memref<1x1x128xf32, #tpu.memory_space<vmem>>, %arg4: memref<1x1x128xf32, #tpu.memory_space<vmem>>, %arg5: memref<1x128x384xbf16, #tpu.memory_space<vmem>>, %arg6: memref<1x128x128xbf16, #tpu.memory_space<vmem>>, %arg7: memref<1x1x128xf32, #tpu.memory_space<vmem>>, %arg8: memref<1x1x128xf32, #tpu.memory_space<vmem>>, %arg9: memref<1x1x128xf32, #tpu.memory_space<vmem>>, %arg10: memref<1x128x512xbf16, #tpu.memory_space<vmem>>, %arg11: memref<1x1x512xf32, #tpu.memory_space<vmem>>, %arg12: memref<1x512x128xbf16, #tpu.memory_space<vmem>>, %arg13: memref<1x1x128xf32, #tpu.memory_space<vmem>>, %arg14: memref<1x64x128xf32, #tpu.memory_space<vmem>>, %arg15: memref<64x128xf32, #tpu.memory_space<vmem>>) attributes {dimension_semantics = [#tpu.dimension_semantics<parallel>, #tpu.dimension_semantics<arbitrary>], iteration_bounds = array<i64: 2, 2>, scalar_prefetch = 0 : i64, scratch_operands = 1 : i64, tpu.core_type = #tpu.core_type<tc>, window_params = [{transform_indices = @transform_0, window_bounds = array<i64: 1, 64, 128>}, {transform_indices = @transform_1, window_bounds = array<i64: 1, 1, 128>}, {transform_indices = @transform_2, window_bounds = array<i64: 1, 1, 128>}, {transform_indices = @transform_3, window_bounds = array<i64: 1, 128, 384>}, {transform_indices = @transform_4, window_bounds = array<i64: 1, 128, 128>}, {transform_indices = @transform_5, window_bounds = array<i64: 1, 1, 128>}, {transform_indices = @transform_6, window_bounds = array<i64: 1, 1, 128>}, {transform_indices = @transform_7, window_bounds = array<i64: 1, 1, 128>}, {transform_indices = @transform_8, window_bounds = array<i64: 1, 128, 512>}, {transform_indices = @transform_9, window_bounds = array<i64: 1, 1, 512>}, {transform_indices = @transform_10, window_bounds = array<i64: 1, 512, 128>}, {transform_indices = @transform_11, window_bounds = array<i64: 1, 1, 128>}, {transform_indices = @transform_12, window_bounds = array<i64: 1, 64, 128>}]} {
    %c0_i32 = arith.constant 0 : i32
    %0 = arith.cmpi eq, %arg1, %c0_i32 : i32
    %1 = arith.extui %0 : i1 to i32
    %c0_i32_0 = arith.constant 0 : i32
    %2 = arith.cmpi ne, %1, %c0_i32_0 : i32
    scf.if %2 {
      %c0_74 = arith.constant 0 : index
      %c0_75 = arith.constant 0 : index
      %c0_76 = arith.constant 0 : index
      %187 = vector.load %arg2[%c0_74, %c0_75, %c0_76] : memref<1x64x128xf32, #tpu.memory_space<vmem>>, vector<1x64x128xf32>
      %188 = vector.shape_cast %187 : vector<1x64x128xf32> to vector<64x128xf32>
      %c0_77 = arith.constant 0 : index
      %c0_78 = arith.constant 0 : index
      %189 = vector.load %arg15[%c0_77, %c0_78] : memref<64x128xf32, #tpu.memory_space<vmem>>, vector<64x128xf32>
      tpu.vector_store %arg15[%c0_77, %c0_78], %188 {strides = array<i32>} : memref<64x128xf32, #tpu.memory_space<vmem>>, vector<64x128xf32>,
    } else {
    }
    %c0 = arith.constant 0 : index
    %c0_1 = arith.constant 0 : index
    %3 = vector.load %arg15[%c0, %c0_1] : memref<64x128xf32, #tpu.memory_space<vmem>>, vector<64x128xf32>
    %c0_2 = arith.constant 0 : index
    %c0_3 = arith.constant 0 : index
    %c0_4 = arith.constant 0 : index
    %4 = vector.load %arg3[%c0_2, %c0_3, %c0_4] : memref<1x1x128xf32, #tpu.memory_space<vmem>>, vector<1x1x128xf32>
    %5 = vector.shape_cast %4 : vector<1x1x128xf32> to vector<1x128xf32>
    %c0_5 = arith.constant 0 : index
    %c0_6 = arith.constant 0 : index
    %c0_7 = arith.constant 0 : index
    %6 = vector.load %arg4[%c0_5, %c0_6, %c0_7] : memref<1x1x128xf32, #tpu.memory_space<vmem>>, vector<1x1x128xf32>
    %7 = vector.shape_cast %6 : vector<1x1x128xf32> to vector<1x128xf32>
    %cst = arith.constant dense<0.000000e+00> : vector<64xf32>
    %8 = vector.multi_reduction <add>, %3, %cst [1] : vector<64x128xf32> to vector<64xf32>
    %9 = vector.shape_cast %8 : vector<64xf32> to vector<64x1xf32>
    %cst_8 = arith.constant 1.280000e+02 : f32
    %10 = vector.broadcast %cst_8 : f32 to vector<64x1xf32>
    %11 = arith.divf %9, %10 : vector<64x1xf32>
    %12 = vector.broadcast %11 : vector<64x1xf32> to vector<64x128xf32>
    %13 = arith.subf %3, %12 : vector<64x128xf32>
    %14 = arith.mulf %13, %13 : vector<64x128xf32>
    %cst_9 = arith.constant dense<0.000000e+00> : vector<64xf32>
    %15 = vector.multi_reduction <add>, %14, %cst_9 [1] : vector<64x128xf32> to vector<64xf32>
    %16 = vector.shape_cast %15 : vector<64xf32> to vector<64x1xf32>
    %cst_10 = arith.constant 1.280000e+02 : f32
    %17 = vector.broadcast %cst_10 : f32 to vector<64x1xf32>
    %18 = arith.divf %16, %17 : vector<64x1xf32>
    %19 = vector.broadcast %11 : vector<64x1xf32> to vector<64x128xf32>
    %20 = arith.subf %3, %19 : vector<64x128xf32>
    %cst_11 = arith.constant 9.99999974E-6 : f32
    %21 = vector.broadcast %cst_11 : f32 to vector<64x1xf32>
    %22 = arith.addf %18, %21 : vector<64x1xf32>
    %23 = math.rsqrt %22 : vector<64x1xf32>
    %24 = vector.broadcast %23 : vector<64x1xf32> to vector<64x128xf32>
    %25 = arith.mulf %20, %24 : vector<64x128xf32>
    %26 = vector.broadcast %5 : vector<1x128xf32> to vector<64x128xf32>
    %27 = arith.mulf %25, %26 : vector<64x128xf32>
    %28 = vector.broadcast %7 : vector<1x128xf32> to vector<64x128xf32>
    %29 = arith.addf %27, %28 : vector<64x128xf32>
    %30 = arith.truncf %29 : vector<64x128xf32> to vector<64x128xbf16>
    %c0_12 = arith.constant 0 : index
    %c0_13 = arith.constant 0 : index
    %c0_14 = arith.constant 0 : index
    %31 = vector.load %arg5[%c0_12, %c0_13, %c0_14] : memref<1x128x384xbf16, #tpu.memory_space<vmem>>, vector<1x128x384xbf16>
    %32 = vector.shape_cast %31 : vector<1x128x384xbf16> to vector<128x384xbf16>
    %cst_15 = arith.constant dense<0.000000e+00> : vector<64x384xf32>
    %33 = tpu.matmul %30, %32, %cst_15 {dimension_numbers = #tpu.dot_dimension_numbers<[1], [0], [0], [1], [0, 0, 1, 1], [], []>} : vector<64x128xbf16>, vector<128x384xbf16>, vector<64x384xf32> -> vector<64x384xf32>
    %34 = tpu.iota {dimensions = array<i32: 0>} : vector<64x64xi32>
    %35 = tpu.iota {dimensions = array<i32: 1>} : vector<64x64xi32>
    %36 = arith.cmpi sle, %35, %34 : vector<64x64xi32>
    %cst_16 = arith.constant 0.000000e+00 : f32
    %cst_17 = arith.constant -1.000000e+30 : f32
    %37 = vector.broadcast %cst_16 : f32 to vector<64x64xf32>
    %38 = vector.broadcast %cst_17 : f32 to vector<64x64xf32>
    %39 = arith.select %36, %37, %38 : vector<64x64xi1>, vector<64x64xf32>
    %40 = vector.extract_strided_slice %33 {offsets = [0, 0], sizes = [64, 32], strides = [1, 1]} : vector<64x384xf32> to vector<64x32xf32>
    %cst_18 = arith.constant 0.176776692 : f32
    %41 = vector.broadcast %cst_18 : f32 to vector<64x32xf32>
    %42 = arith.mulf %40, %41 : vector<64x32xf32>
    %43 = arith.truncf %42 : vector<64x32xf32> to vector<64x32xbf16>
    %44 = vector.extract_strided_slice %33 {offsets = [0, 128], sizes = [64, 32], strides = [1, 1]} : vector<64x384xf32> to vector<64x32xf32>
    %45 = arith.truncf %44 : vector<64x32xf32> to vector<64x32xbf16>
    %46 = vector.extract_strided_slice %33 {offsets = [0, 256], sizes = [64, 32], strides = [1, 1]} : vector<64x384xf32> to vector<64x32xf32>
    %47 = arith.truncf %46 : vector<64x32xf32> to vector<64x32xbf16>
    %cst_19 = arith.constant dense<0.000000e+00> : vector<64x64xf32>
    %48 = tpu.matmul %43, %45, %cst_19 {dimension_numbers = #tpu.dot_dimension_numbers<[1], [1], [0], [0], [0, 0, 1, 0], [], []>} : vector<64x32xbf16>, vector<64x32xbf16>, vector<64x64xf32> -> vector<64x64xf32>
    %49 = arith.addf %48, %39 : vector<64x64xf32>
    %cst_20 = arith.constant dense<0xFF800000> : vector<64xf32>
    %50 = vector.multi_reduction <maximumf>, %49, %cst_20 [1] : vector<64x64xf32> to vector<64xf32>
    %51 = vector.shape_cast %50 : vector<64xf32> to vector<64x1xf32>
    %52 = vector.broadcast %51 : vector<64x1xf32> to vector<64x64xf32>
    %53 = arith.subf %49, %52 : vector<64x64xf32>
    %54 = math.exp %53 : vector<64x64xf32>
    %cst_21 = arith.constant dense<0.000000e+00> : vector<64xf32>
    %55 = vector.multi_reduction <add>, %54, %cst_21 [1] : vector<64x64xf32> to vector<64xf32>
    %56 = vector.shape_cast %55 : vector<64xf32> to vector<64x1xf32>
    %57 = tpu.reciprocal %56 {approx = true} : vector<64x1xf32> -> vector<64x1xf32>
    %58 = vector.broadcast %57 : vector<64x1xf32> to vector<64x64xf32>
    %59 = arith.mulf %54, %58 : vector<64x64xf32>
    %60 = arith.truncf %59 : vector<64x64xf32> to vector<64x64xbf16>
    %cst_22 = arith.constant dense<0.000000e+00> : vector<64x32xf32>
    %61 = tpu.matmul %60, %47, %cst_22 {dimension_numbers = #tpu.dot_dimension_numbers<[1], [0], [0], [1], [0, 0, 1, 1], [], []>} : vector<64x64xbf16>, vector<64x32xbf16>, vector<64x32xf32> -> vector<64x32xf32>
    %62 = vector.extract_strided_slice %33 {offsets = [0, 32], sizes = [64, 32], strides = [1, 1]} : vector<64x384xf32> to vector<64x32xf32>
    %cst_23 = arith.constant 0.176776692 : f32
    %63 = vector.broadcast %cst_23 : f32 to vector<64x32xf32>
    %64 = arith.mulf %62, %63 : vector<64x32xf32>
    %65 = arith.truncf %64 : vector<64x32xf32> to vector<64x32xbf16>
    %66 = vector.extract_strided_slice %33 {offsets = [0, 160], sizes = [64, 32], strides = [1, 1]} : vector<64x384xf32> to vector<64x32xf32>
    %67 = arith.truncf %66 : vector<64x32xf32> to vector<64x32xbf16>
    %68 = vector.extract_strided_slice %33 {offsets = [0, 288], sizes = [64, 32], strides = [1, 1]} : vector<64x384xf32> to vector<64x32xf32>
    %69 = arith.truncf %68 : vector<64x32xf32> to vector<64x32xbf16>
    %cst_24 = arith.constant dense<0.000000e+00> : vector<64x64xf32>
    %70 = tpu.matmul %65, %67, %cst_24 {dimension_numbers = #tpu.dot_dimension_numbers<[1], [1], [0], [0], [0, 0, 1, 0], [], []>} : vector<64x32xbf16>, vector<64x32xbf16>, vector<64x64xf32> -> vector<64x64xf32>
    %71 = arith.addf %70, %39 : vector<64x64xf32>
    %cst_25 = arith.constant dense<0xFF800000> : vector<64xf32>
    %72 = vector.multi_reduction <maximumf>, %71, %cst_25 [1] : vector<64x64xf32> to vector<64xf32>
    %73 = vector.shape_cast %72 : vector<64xf32> to vector<64x1xf32>
    %74 = vector.broadcast %73 : vector<64x1xf32> to vector<64x64xf32>
    %75 = arith.subf %71, %74 : vector<64x64xf32>
    %76 = math.exp %75 : vector<64x64xf32>
    %cst_26 = arith.constant dense<0.000000e+00> : vector<64xf32>
    %77 = vector.multi_reduction <add>, %76, %cst_26 [1] : vector<64x64xf32> to vector<64xf32>
    %78 = vector.shape_cast %77 : vector<64xf32> to vector<64x1xf32>
    %79 = tpu.reciprocal %78 {approx = true} : vector<64x1xf32> -> vector<64x1xf32>
    %80 = vector.broadcast %79 : vector<64x1xf32> to vector<64x64xf32>
    %81 = arith.mulf %76, %80 : vector<64x64xf32>
    %82 = arith.truncf %81 : vector<64x64xf32> to vector<64x64xbf16>
    %cst_27 = arith.constant dense<0.000000e+00> : vector<64x32xf32>
    %83 = tpu.matmul %82, %69, %cst_27 {dimension_numbers = #tpu.dot_dimension_numbers<[1], [0], [0], [1], [0, 0, 1, 1], [], []>} : vector<64x64xbf16>, vector<64x32xbf16>, vector<64x32xf32> -> vector<64x32xf32>
    %84 = vector.extract_strided_slice %33 {offsets = [0, 64], sizes = [64, 32], strides = [1, 1]} : vector<64x384xf32> to vector<64x32xf32>
    %cst_28 = arith.constant 0.176776692 : f32
    %85 = vector.broadcast %cst_28 : f32 to vector<64x32xf32>
    %86 = arith.mulf %84, %85 : vector<64x32xf32>
    %87 = arith.truncf %86 : vector<64x32xf32> to vector<64x32xbf16>
    %88 = vector.extract_strided_slice %33 {offsets = [0, 192], sizes = [64, 32], strides = [1, 1]} : vector<64x384xf32> to vector<64x32xf32>
    %89 = arith.truncf %88 : vector<64x32xf32> to vector<64x32xbf16>
    %90 = vector.extract_strided_slice %33 {offsets = [0, 320], sizes = [64, 32], strides = [1, 1]} : vector<64x384xf32> to vector<64x32xf32>
    %91 = arith.truncf %90 : vector<64x32xf32> to vector<64x32xbf16>
    %cst_29 = arith.constant dense<0.000000e+00> : vector<64x64xf32>
    %92 = tpu.matmul %87, %89, %cst_29 {dimension_numbers = #tpu.dot_dimension_numbers<[1], [1], [0], [0], [0, 0, 1, 0], [], []>} : vector<64x32xbf16>, vector<64x32xbf16>, vector<64x64xf32> -> vector<64x64xf32>
    %93 = arith.addf %92, %39 : vector<64x64xf32>
    %cst_30 = arith.constant dense<0xFF800000> : vector<64xf32>
    %94 = vector.multi_reduction <maximumf>, %93, %cst_30 [1] : vector<64x64xf32> to vector<64xf32>
    %95 = vector.shape_cast %94 : vector<64xf32> to vector<64x1xf32>
    %96 = vector.broadcast %95 : vector<64x1xf32> to vector<64x64xf32>
    %97 = arith.subf %93, %96 : vector<64x64xf32>
    %98 = math.exp %97 : vector<64x64xf32>
    %cst_31 = arith.constant dense<0.000000e+00> : vector<64xf32>
    %99 = vector.multi_reduction <add>, %98, %cst_31 [1] : vector<64x64xf32> to vector<64xf32>
    %100 = vector.shape_cast %99 : vector<64xf32> to vector<64x1xf32>
    %101 = tpu.reciprocal %100 {approx = true} : vector<64x1xf32> -> vector<64x1xf32>
    %102 = vector.broadcast %101 : vector<64x1xf32> to vector<64x64xf32>
    %103 = arith.mulf %98, %102 : vector<64x64xf32>
    %104 = arith.truncf %103 : vector<64x64xf32> to vector<64x64xbf16>
    %cst_32 = arith.constant dense<0.000000e+00> : vector<64x32xf32>
    %105 = tpu.matmul %104, %91, %cst_32 {dimension_numbers = #tpu.dot_dimension_numbers<[1], [0], [0], [1], [0, 0, 1, 1], [], []>} : vector<64x64xbf16>, vector<64x32xbf16>, vector<64x32xf32> -> vector<64x32xf32>
    %106 = vector.extract_strided_slice %33 {offsets = [0, 96], sizes = [64, 32], strides = [1, 1]} : vector<64x384xf32> to vector<64x32xf32>
    %cst_33 = arith.constant 0.176776692 : f32
    %107 = vector.broadcast %cst_33 : f32 to vector<64x32xf32>
    %108 = arith.mulf %106, %107 : vector<64x32xf32>
    %109 = arith.truncf %108 : vector<64x32xf32> to vector<64x32xbf16>
    %110 = vector.extract_strided_slice %33 {offsets = [0, 224], sizes = [64, 32], strides = [1, 1]} : vector<64x384xf32> to vector<64x32xf32>
    %111 = arith.truncf %110 : vector<64x32xf32> to vector<64x32xbf16>
    %112 = vector.extract_strided_slice %33 {offsets = [0, 352], sizes = [64, 32], strides = [1, 1]} : vector<64x384xf32> to vector<64x32xf32>
    %113 = arith.truncf %112 : vector<64x32xf32> to vector<64x32xbf16>
    %cst_34 = arith.constant dense<0.000000e+00> : vector<64x64xf32>
    %114 = tpu.matmul %109, %111, %cst_34 {dimension_numbers = #tpu.dot_dimension_numbers<[1], [1], [0], [0], [0, 0, 1, 0], [], []>} : vector<64x32xbf16>, vector<64x32xbf16>, vector<64x64xf32> -> vector<64x64xf32>
    %115 = arith.addf %114, %39 : vector<64x64xf32>
    %cst_35 = arith.constant dense<0xFF800000> : vector<64xf32>
    %116 = vector.multi_reduction <maximumf>, %115, %cst_35 [1] : vector<64x64xf32> to vector<64xf32>
    %117 = vector.shape_cast %116 : vector<64xf32> to vector<64x1xf32>
    %118 = vector.broadcast %117 : vector<64x1xf32> to vector<64x64xf32>
    %119 = arith.subf %115, %118 : vector<64x64xf32>
    %120 = math.exp %119 : vector<64x64xf32>
    %cst_36 = arith.constant dense<0.000000e+00> : vector<64xf32>
    %121 = vector.multi_reduction <add>, %120, %cst_36 [1] : vector<64x64xf32> to vector<64xf32>
    %122 = vector.shape_cast %121 : vector<64xf32> to vector<64x1xf32>
    %123 = tpu.reciprocal %122 {approx = true} : vector<64x1xf32> -> vector<64x1xf32>
    %124 = vector.broadcast %123 : vector<64x1xf32> to vector<64x64xf32>
    %125 = arith.mulf %120, %124 : vector<64x64xf32>
    %126 = arith.truncf %125 : vector<64x64xf32> to vector<64x64xbf16>
    %cst_37 = arith.constant dense<0.000000e+00> : vector<64x32xf32>
    %127 = tpu.matmul %126, %113, %cst_37 {dimension_numbers = #tpu.dot_dimension_numbers<[1], [0], [0], [1], [0, 0, 1, 1], [], []>} : vector<64x64xbf16>, vector<64x32xbf16>, vector<64x32xf32> -> vector<64x32xf32>
    %128 = tpu.concatenate %61, %83, %105, %127 in 1 : vector<64x32xf32>, vector<64x32xf32>, vector<64x32xf32>, vector<64x32xf32> -> vector<64x128xf32>
    %129 = arith.truncf %128 : vector<64x128xf32> to vector<64x128xbf16>
    %c0_38 = arith.constant 0 : index
    %c0_39 = arith.constant 0 : index
    %c0_40 = arith.constant 0 : index
    %130 = vector.load %arg6[%c0_38, %c0_39, %c0_40] : memref<1x128x128xbf16, #tpu.memory_space<vmem>>, vector<1x128x128xbf16>
    %131 = vector.shape_cast %130 : vector<1x128x128xbf16> to vector<128x128xbf16>
    %cst_41 = arith.constant dense<0.000000e+00> : vector<64x128xf32>
    %132 = tpu.matmul %129, %131, %cst_41 {dimension_numbers = #tpu.dot_dimension_numbers<[1], [0], [0], [1], [0, 0, 1, 1], [], []>} : vector<64x128xbf16>, vector<128x128xbf16>, vector<64x128xf32> -> vector<64x128xf32>
    %133 = arith.addf %3, %132 : vector<64x128xf32>
    %c0_42 = arith.constant 0 : index
    %c0_43 = arith.constant 0 : index
    %c0_44 = arith.constant 0 : index
    %134 = vector.load %arg7[%c0_42, %c0_43, %c0_44] : memref<1x1x128xf32, #tpu.memory_space<vmem>>, vector<1x1x128xf32>
    %135 = vector.shape_cast %134 : vector<1x1x128xf32> to vector<1x128xf32>
    %136 = vector.broadcast %135 : vector<1x128xf32> to vector<64x128xf32>
    %137 = arith.addf %133, %136 : vector<64x128xf32>
    %c0_45 = arith.constant 0 : index
    %c0_46 = arith.constant 0 : index
    %c0_47 = arith.constant 0 : index
    %138 = vector.load %arg8[%c0_45, %c0_46, %c0_47] : memref<1x1x128xf32, #tpu.memory_space<vmem>>, vector<1x1x128xf32>
    %139 = vector.shape_cast %138 : vector<1x1x128xf32> to vector<1x128xf32>
    %c0_48 = arith.constant 0 : index
    %c0_49 = arith.constant 0 : index
    %c0_50 = arith.constant 0 : index
    %140 = vector.load %arg9[%c0_48, %c0_49, %c0_50] : memref<1x1x128xf32, #tpu.memory_space<vmem>>, vector<1x1x128xf32>
    %141 = vector.shape_cast %140 : vector<1x1x128xf32> to vector<1x128xf32>
    %cst_51 = arith.constant dense<0.000000e+00> : vector<64xf32>
    %142 = vector.multi_reduction <add>, %137, %cst_51 [1] : vector<64x128xf32> to vector<64xf32>
    %143 = vector.shape_cast %142 : vector<64xf32> to vector<64x1xf32>
    %cst_52 = arith.constant 1.280000e+02 : f32
    %144 = vector.broadcast %cst_52 : f32 to vector<64x1xf32>
    %145 = arith.divf %143, %144 : vector<64x1xf32>
    %146 = vector.broadcast %145 : vector<64x1xf32> to vector<64x128xf32>
    %147 = arith.subf %137, %146 : vector<64x128xf32>
    %148 = arith.mulf %147, %147 : vector<64x128xf32>
    %cst_53 = arith.constant dense<0.000000e+00> : vector<64xf32>
    %149 = vector.multi_reduction <add>, %148, %cst_53 [1] : vector<64x128xf32> to vector<64xf32>
    %150 = vector.shape_cast %149 : vector<64xf32> to vector<64x1xf32>
    %cst_54 = arith.constant 1.280000e+02 : f32
    %151 = vector.broadcast %cst_54 : f32 to vector<64x1xf32>
    %152 = arith.divf %150, %151 : vector<64x1xf32>
    %153 = vector.broadcast %145 : vector<64x1xf32> to vector<64x128xf32>
    %154 = arith.subf %137, %153 : vector<64x128xf32>
    %cst_55 = arith.constant 9.99999974E-6 : f32
    %155 = vector.broadcast %cst_55 : f32 to vector<64x1xf32>
    %156 = arith.addf %152, %155 : vector<64x1xf32>
    %157 = math.rsqrt %156 : vector<64x1xf32>
    %158 = vector.broadcast %157 : vector<64x1xf32> to vector<64x128xf32>
    %159 = arith.mulf %154, %158 : vector<64x128xf32>
    %160 = vector.broadcast %139 : vector<1x128xf32> to vector<64x128xf32>
    %161 = arith.mulf %159, %160 : vector<64x128xf32>
    %162 = vector.broadcast %141 : vector<1x128xf32> to vector<64x128xf32>
    %163 = arith.addf %161, %162 : vector<64x128xf32>
    %164 = arith.truncf %163 : vector<64x128xf32> to vector<64x128xbf16>
    %c0_56 = arith.constant 0 : index
    %c0_57 = arith.constant 0 : index
    %c0_58 = arith.constant 0 : index
    %165 = vector.load %arg10[%c0_56, %c0_57, %c0_58] : memref<1x128x512xbf16, #tpu.memory_space<vmem>>, vector<1x128x512xbf16>
    %166 = vector.shape_cast %165 : vector<1x128x512xbf16> to vector<128x512xbf16>
    %cst_59 = arith.constant dense<0.000000e+00> : vector<64x512xf32>
    %167 = tpu.matmul %164, %166, %cst_59 {dimension_numbers = #tpu.dot_dimension_numbers<[1], [0], [0], [1], [0, 0, 1, 1], [], []>} : vector<64x128xbf16>, vector<128x512xbf16>, vector<64x512xf32> -> vector<64x512xf32>
    %c0_60 = arith.constant 0 : index
    %c0_61 = arith.constant 0 : index
    %c0_62 = arith.constant 0 : index
    %168 = vector.load %arg11[%c0_60, %c0_61, %c0_62] : memref<1x1x512xf32, #tpu.memory_space<vmem>>, vector<1x1x512xf32>
    %169 = vector.shape_cast %168 : vector<1x1x512xf32> to vector<1x512xf32>
    %170 = vector.broadcast %169 : vector<1x512xf32> to vector<64x512xf32>
    %171 = arith.addf %167, %170 : vector<64x512xf32>
    %cst_63 = arith.constant 0.000000e+00 : f32
    %172 = vector.broadcast %cst_63 : f32 to vector<64x512xf32>
    %173 = arith.maximumf %171, %172 : vector<64x512xf32>
    %174 = arith.truncf %173 : vector<64x512xf32> to vector<64x512xbf16>
    %c0_64 = arith.constant 0 : index
    %c0_65 = arith.constant 0 : index
    %c0_66 = arith.constant 0 : index
    %175 = vector.load %arg12[%c0_64, %c0_65, %c0_66] : memref<1x512x128xbf16, #tpu.memory_space<vmem>>, vector<1x512x128xbf16>
    %176 = vector.shape_cast %175 : vector<1x512x128xbf16> to vector<512x128xbf16>
    %cst_67 = arith.constant dense<0.000000e+00> : vector<64x128xf32>
    %177 = tpu.matmul %174, %176, %cst_67 {dimension_numbers = #tpu.dot_dimension_numbers<[1], [0], [0], [1], [0, 0, 1, 1], [], []>} : vector<64x512xbf16>, vector<512x128xbf16>, vector<64x128xf32> -> vector<64x128xf32>
    %178 = arith.addf %137, %177 : vector<64x128xf32>
    %c0_68 = arith.constant 0 : index
    %c0_69 = arith.constant 0 : index
    %c0_70 = arith.constant 0 : index
    %179 = vector.load %arg13[%c0_68, %c0_69, %c0_70] : memref<1x1x128xf32, #tpu.memory_space<vmem>>, vector<1x1x128xf32>
    %180 = vector.shape_cast %179 : vector<1x1x128xf32> to vector<1x128xf32>
    %181 = vector.broadcast %180 : vector<1x128xf32> to vector<64x128xf32>
    %182 = arith.addf %178, %181 : vector<64x128xf32>
    %c0_71 = arith.constant 0 : index
    %c0_72 = arith.constant 0 : index
    %183 = vector.load %arg15[%c0_71, %c0_72] : memref<64x128xf32, #tpu.memory_space<vmem>>, vector<64x128xf32>
    tpu.vector_store %arg15[%c0_71, %c0_72], %182 {strides = array<i32>} : memref<64x128xf32, #tpu.memory_space<vmem>>, vector<64x128xf32>,
    %c1_i32 = arith.constant 1 : i32
    %184 = arith.cmpi eq, %arg1, %c1_i32 : i32
    %185 = arith.extui %184 : i1 to i32
    %c0_i32_73 = arith.constant 0 : i32
    %186 = arith.cmpi ne, %185, %c0_i32_73 : i32
    scf.if %186 {
      %c0_74 = arith.constant 0 : index
      %c0_75 = arith.constant 0 : index
      %c0_76 = arith.constant 0 : index
      %187 = vector.load %arg14[%c0_74, %c0_75, %c0_76] : memref<1x64x128xf32, #tpu.memory_space<vmem>>, vector<1x64x128xf32>
      %188 = vector.shape_cast %187 : vector<1x64x128xf32> to vector<64x128xf32>
      %189 = vector.shape_cast %182 : vector<64x128xf32> to vector<1x64x128xf32>
      tpu.vector_store %arg14[%c0_74, %c0_75, %c0_76], %189 {strides = array<i32>} : memref<1x64x128xf32, #tpu.memory_space<vmem>>, vector<1x64x128xf32>,
    } else {
    }
    return
  }
  func.func @transform_0(%arg0: i32, %arg1: i32) -> (i32, i32, i32) {
    %c0_i32 = arith.constant 0 : i32
    %c0_i32_0 = arith.constant 0 : i32
    %c0_i32_1 = arith.constant 0 : i32
    return %arg0, %c0_i32, %c0_i32_0 : i32, i32, i32
  }
  func.func @transform_1(%arg0: i32, %arg1: i32) -> (i32, i32, i32) {
    %c0_i32 = arith.constant 0 : i32
    %c0_i32_0 = arith.constant 0 : i32
    %c0_i32_1 = arith.constant 0 : i32
    return %arg1, %c0_i32, %c0_i32_0 : i32, i32, i32
  }
  func.func @transform_2(%arg0: i32, %arg1: i32) -> (i32, i32, i32) {
    %c0_i32 = arith.constant 0 : i32
    %c0_i32_0 = arith.constant 0 : i32
    %c0_i32_1 = arith.constant 0 : i32
    return %arg1, %c0_i32, %c0_i32_0 : i32, i32, i32
  }
  func.func @transform_3(%arg0: i32, %arg1: i32) -> (i32, i32, i32) {
    %c0_i32 = arith.constant 0 : i32
    %c0_i32_0 = arith.constant 0 : i32
    %c0_i32_1 = arith.constant 0 : i32
    return %arg1, %c0_i32, %c0_i32_0 : i32, i32, i32
  }
  func.func @transform_4(%arg0: i32, %arg1: i32) -> (i32, i32, i32) {
    %c0_i32 = arith.constant 0 : i32
    %c0_i32_0 = arith.constant 0 : i32
    %c0_i32_1 = arith.constant 0 : i32
    return %arg1, %c0_i32, %c0_i32_0 : i32, i32, i32
  }
  func.func @transform_5(%arg0: i32, %arg1: i32) -> (i32, i32, i32) {
    %c0_i32 = arith.constant 0 : i32
    %c0_i32_0 = arith.constant 0 : i32
    %c0_i32_1 = arith.constant 0 : i32
    return %arg1, %c0_i32, %c0_i32_0 : i32, i32, i32
  }
  func.func @transform_6(%arg0: i32, %arg1: i32) -> (i32, i32, i32) {
    %c0_i32 = arith.constant 0 : i32
    %c0_i32_0 = arith.constant 0 : i32
    %c0_i32_1 = arith.constant 0 : i32
    return %arg1, %c0_i32, %c0_i32_0 : i32, i32, i32
  }
  func.func @transform_7(%arg0: i32, %arg1: i32) -> (i32, i32, i32) {
    %c0_i32 = arith.constant 0 : i32
    %c0_i32_0 = arith.constant 0 : i32
    %c0_i32_1 = arith.constant 0 : i32
    return %arg1, %c0_i32, %c0_i32_0 : i32, i32, i32
  }
  func.func @transform_8(%arg0: i32, %arg1: i32) -> (i32, i32, i32) {
    %c0_i32 = arith.constant 0 : i32
    %c0_i32_0 = arith.constant 0 : i32
    %c0_i32_1 = arith.constant 0 : i32
    return %arg1, %c0_i32, %c0_i32_0 : i32, i32, i32
  }
  func.func @transform_9(%arg0: i32, %arg1: i32) -> (i32, i32, i32) {
    %c0_i32 = arith.constant 0 : i32
    %c0_i32_0 = arith.constant 0 : i32
    %c0_i32_1 = arith.constant 0 : i32
    return %arg1, %c0_i32, %c0_i32_0 : i32, i32, i32
  }
  func.func @transform_10(%arg0: i32, %arg1: i32) -> (i32, i32, i32) {
    %c0_i32 = arith.constant 0 : i32
    %c0_i32_0 = arith.constant 0 : i32
    %c0_i32_1 = arith.constant 0 : i32
    return %arg1, %c0_i32, %c0_i32_0 : i32, i32, i32
  }
  func.func @transform_11(%arg0: i32, %arg1: i32) -> (i32, i32, i32) {
    %c0_i32 = arith.constant 0 : i32
    %c0_i32_0 = arith.constant 0 : i32
    %c0_i32_1 = arith.constant 0 : i32
    return %arg1, %c0_i32, %c0_i32_0 : i32, i32, i32
  }
  func.func @transform_12(%arg0: i32, %arg1: i32) -> (i32, i32, i32) {
    %c0_i32 = arith.constant 0 : i32
    %c0_i32_0 = arith.constant 0 : i32
    %c0_i32_1 = arith.constant 0 : i32
    return %arg0, %c0_i32, %c0_i32_0 : i32, i32, i32
  }
}

</mosaic_0001>

<bundles_post_ra>
// kernel: tpu_custom_call.1
= control target key start
LH: loop header
LB: loop body
LE: loop exit
PB: predicated region body
PF: predicated region fallthrough
CT: control target
= control target key end

     0   :  { %s7320_s0 = inlined_call_operand.hbm [shape: f32[2,64,128], index: 0, kind: input, shape index: {}]   ;;  %s7321_s1 = inlined_call_operand.hbm [shape: f32[2,1,128], index: 1, kind: input, shape index: {}]   ;;  %s7322_s2 = inlined_call_operand.hbm [shape: f32[2,1,128], index: 2, kind: input, shape index: {}]   ;;  %s7323_s3 = inlined_call_operand.hbm [shape: bf16[2,128,384], index: 3, kind: input, shape index: {}]   ;;  %s7324_s4 = inlined_call_operand.hbm [shape: bf16[2,128,128], index: 4, kind: input, shape index: {}]   ;;  %s7325_s5 = inlined_call_operand.hbm [shape: f32[2,1,128], index: 5, kind: input, shape index: {}]   ;;  %s7326_s6 = inlined_call_operand.hbm [shape: f32[2,1,128], index: 6, kind: input, shape index: {}]   ;;  %s7327_s7 = inlined_call_operand.hbm [shape: f32[2,1,128], index: 7, kind: input, shape index: {}]   ;;  %s7328_s8 = inlined_call_operand.hbm [shape: bf16[2,128,512], index: 8, kind: input, shape index: {}]   ;;  %s7329_s9 = inlined_call_operand.hbm [shape: f32[2,1,512], index: 9, kind: input, shape index: {}]   ;;  %s7330_s10 = inlined_call_operand.hbm [shape: bf16[2,512,128], index: 10, kind: input, shape index: {}]   ;;  %s7331_s11 = inlined_call_operand.hbm [shape: f32[2,1,128], index: 11, kind: input, shape index: {}]   ;;  %s7332_s12 = inlined_call_operand.hbm [shape: f32[2,64,128], index: 12, kind: output, shape index: {}]  }
   0x1   :  { %7364 = sst [smem:[#allocation40_spill]] %s7320_s0 }
   0x2   :  { %7365 = sst [smem:[#allocation41_spill]] %s7321_s1 }
   0x3   :  { %7366 = sst [smem:[#allocation42_spill]] %s7322_s2 }
   0x4   :  { %7367 = sst [smem:[#allocation43_spill]] %s7323_s3 }
   0x5   :  { %7368 = sst [smem:[#allocation44_spill]] %s7324_s4 }
   0x6   :  { %7369 = sst [smem:[#allocation45_spill]] %s7325_s5 }
   0x7   :  { %7370 = sst [smem:[#allocation46_spill]] %s7326_s6 }
   0x8   :  { %7371 = sst [smem:[#allocation47_spill]] %s7327_s7 }
   0x9   :  { %7372 = sst [smem:[#allocation48_spill]] %s7328_s8 }
   0xa   :  { %7373 = sst [smem:[#allocation49_spill]] %s7329_s9 }
   0xb   :  { %7374 = sst [smem:[#allocation50_spill]] %s7330_s10 }
   0xc   :  { %7375 = sst [smem:[#allocation51_spill]] %s7331_s11 }
   0xd   :  { %7376 = sst [smem:[#allocation52_spill]] %s7332_s12 }
   0xe   :  { %17 = vsyncpa [#allocation4], 0 }
   0xf   :  { %19 = vsyncpa [#allocation4 + $0x1], 0 }
  0x10   :  { %20 = vsyncpa [#allocation7], 0 }
  0x11   :  { %22 = vsyncpa [#allocation7 + $0x1], 0 }
  0x12   :  { %23 = vsyncpa [#allocation10], 0 }
  0x13   :  { %25 = vsyncpa [#allocation10 + $0x1], 0 }
  0x14   :  { %26 = vsyncpa [#allocation13], 0 }
  0x15   :  { %28 = vsyncpa [#allocation13 + $0x1], 0 }
  0x16   :  { %29 = vsyncpa [#allocation16], 0 }
  0x17   :  { %31 = vsyncpa [#allocation16 + $0x1], 0 }
  0x18   :  { %32 = vsyncpa [#allocation19], 0 }
  0x19   :  { %34 = vsyncpa [#allocation19 + $0x1], 0 }
  0x1a   :  { %35 = vsyncpa [#allocation22], 0 }
  0x1b   :  { %37 = vsyncpa [#allocation22 + $0x1], 0 }
  0x1c   :  { %38 = vsyncpa [#allocation5], 0 }
  0x1d   :  { %40 = vsyncpa [#allocation5 + $0x1], 0  ;;  %s5676_s21 = smov 0   ;;  %s5678_s22 = smov 0  }
  0x1e   :  { %s5680_s23 = smov 0   ;;  %s5682_s24 = smov 0  }
  0x1f   :  { %s5684_s25 = smov 0   ;;  %s5686_s26 = smov 0  }
  0x20   :  { %s5688_s27 = smov 0   ;;  %s5690_s28 = smov 0  }
  0x21   :  { %s5692_s29 = smov 0   ;;  %s5694_s30 = smov 0  }
  0x22   :  { %s5696_s13 = smov 0  }
  0x23 LB: > { %7377 = sst [smem:[#allocation32_spill]] %s5561_s26  ;;  %p7339_p0 = scmp.eq.s32.totalorder %s5581_s13, 0  ;;  %s5581_s13 = sphi %s5696_s13, %s46_s13   ;;  %s5577_s30 = sphi %s5694_s30, %s7440_s30   ;;  %s5573_s29 = sphi %s5692_s29, %s7447_s29   ;;  %s5569_s28 = sphi %s5690_s28, %s7438_s28   ;;  %s5565_s27 = sphi %s5688_s27, %s7446_s27   ;;  %s5561_s26 = sphi %s5686_s26, %s7437_s26   ;;  %s5557_s25 = sphi %s5684_s25, %s7445_s25   ;;  %s5553_s24 = sphi %s5682_s24, %s7444_s24   ;;  %s5549_s23 = sphi %s5680_s23, %s7443_s23   ;;  %s5545_s22 = sphi %s5678_s22, %s7442_s22   ;;  %s5541_s21 = sphi %s5676_s21, %s7441_s21  }
  0x24   : > { %7378 = sst [smem:[#allocation33_spill]] %s5565_s27  ;;  %p98_p1 = scmp.ne.s32.totalorder %s5549_s23, %s5545_s22 }
  0x25   : > { %7379 = sst [smem:[#allocation34_spill]] %s5569_s28  ;;  %p7338_p2 = scmp.lt.s32.totalorder %s5581_s13, 4 }
  0x26   : > { %7380 = sst [smem:[#allocation35_spill]] %s5577_s30  ;;  %p100_p3 = por %p98_p1, %p7339_p0 }
  0x27   : > { %s5738_s14 = sand.u32 1, %s5581_s13   ;;  %s5741_s15 = sand.u32 1, %s5549_s23  }
  0x28   : > { %s5744_s16 = sshll.u32 %s5573_s29, 4  ;;  %s7381_s1 = sld [smem:[#allocation41_spill]] }
  0x29   : > { %s438_s20 = scalar_lea.vmem [#allocation6], %s5741_s15  ;;  %p5757_p4 = pnand %p7338_p2, %p100_p3 }
  0x2a   : > { %s445_s12 = sshll.u32 %s438_s20, 4  ;;  %s5753_s12 = int_to_ptr.vmem [resolvable:$true] %s445_s12 }
  0x2b   : > { %s7382_s28 = scalar_select %p5757_p4, 1, 0 }
  0x2c   : > { %p5768_p8 = pneg %p5757_p4 }
  0x2e   : > { %s5750_s19 = scalar_lea.hbm %s7381_s1, %s5744_s16  ;;  %s5080_s10 = scalar_lea.hbm %s7381_s1, 32 }
  0x2f   : > { %s5075_s17 = scalar_lea.hbm %s5750_s19, 16  ;;  %p5081_p11 = scmp.lt.u32.totalorder %s5750_s19, %s7381_s1 }
  0x30   : > { %p5076_p7 = scmp.ne.s32.totalorder %s5750_s19, %s5075_s17  ;;  %p5082_p12 = scmp.lt.u32.totalorder %s5080_s10, %s5075_s17 }
  0x31   : > { %p5084_p1 = scmp.lt.u32.totalorder %s5075_s17, %s5750_s19 }
  0x32   : > { %p5078_p9 = pnand %p5768_p8, %p5076_p7  ;;  %p5083_p13 = por %p5082_p12, %p5081_p11 }
  0x34   : > { %p5079_p10 = pneg %p5078_p9  ;;  %p5085_p3 = por %p5084_p1, %p5083_p13 }
  0x36   : > { %p5086_p2 = pnand %p5085_p3, %p5079_p10 }
  0x38   : > { %5089 = shalt.err (!%p5086_p2)
}
  0x39   : > { %s5090_s27 = scalar_lea.vmem %s5753_s12, 16  ;;  %s5583_s11 = smov [#allocation6]  }
  0x3a   : > { %p5091_p7 = scmp.ne.s32.totalorder %s5753_s12, %s5090_s27  ;;  %s5095_s20 = sshll.u32 %s5583_s11, 4  ;;  %s5096_s20 = int_to_ptr.vmem [resolvable:$false] %s5095_s20 }
  0x3b   : > { %s5097_s6 = scalar_lea.vmem %s5096_s20, 32  ;;  %p5098_p5 = scmp.lt.s32.totalorder %s5753_s12, %s5096_s20 }
  0x3c   : > { %p5093_p9 = pnand %p5091_p7, %p5768_p8  ;;  %p5099_p6 = scmp.lt.s32.totalorder %s5097_s6, %s5090_s27 }
  0x3e   : > { %p5094_p0 = pneg %p5093_p9  ;;  %p5100_p11 = por %p5099_p6, %p5098_p5 }
  0x40   : > { %p5101_p12 = pnand %p5100_p11, %p5094_p0 }
  0x42   : > { %5104 = shalt.err (!%p5101_p12)
}
  0x43   : > { %s7384_s8 = scalar_lea.sflag [#allocation7], %s5738_s14  ;;  %p7385_p2 = scmp.lt.s32.totalorder %s5581_s13, 5 }
  0x44   : > { %4587 = dma.hbm_to_vmem [thread:$0]  (!%p5757_p4), %s5750_s19, 16, %s5753_s12, %s7384_s8  }
  0x45   : > { %p7386_p10 = scmp.ge.s32.totalorder %s5581_s13, 1  ;;  %s4552_s27 = smul.u32 192, %s5741_s15 }
  0x46   : > { %s4553_s17 = smul.u32 3072, %s5573_s29  ;;  %s7389_s3 = sld [smem:[#allocation43_spill]] }
  0x47   : > { %p5797_p13 = pnand %p7386_p10, %p7385_p2  ;;  %s473_s1 = scalar_lea.vmem [#allocation9], %s4552_s27 }
  0x48   : > { %s480_s4 = sshll.u32 %s473_s1, 4  ;;  %s7348_s12 = scalar_lea.sflag [#allocation10], %s5738_s14  ;;  %s5808_s4 = int_to_ptr.vmem [resolvable:$true] %s480_s4 }
  0x49   : > { %s7387_s10 = scalar_select %p5797_p13, 1, 0 }
  0x4b   : > { %7388 = sst [smem:[#allocation36_spill]] %s7387_s10 }
  0x4c   : > { %s5806_s6 = scalar_lea.hbm %s7389_s3, %s4553_s17  ;;  %s5110_s11 = scalar_lea.hbm %s7389_s3, 6144 }
  0x4d   : > { %s5105_s19 = scalar_lea.hbm %s5806_s6, 3072  ;;  %p5111_p1 = scmp.lt.u32.totalorder %s5806_s6, %s7389_s3 }
  0x4e   : > { %p5106_p0 = scmp.ne.s32.totalorder %s5806_s6, %s5105_s19  ;;  %p5112_p3 = scmp.lt.u32.totalorder %s5110_s11, %s5105_s19 }
  0x4f   : > { %p5114_p9 = scmp.lt.u32.totalorder %s5105_s19, %s5806_s6 }
  0x50   : > { %p5108_p5 = pnand %p5106_p0, %p5768_p8  ;;  %p5113_p7 = por %p5112_p3, %p5111_p1 }
  0x52   : > { %p5109_p6 = pneg %p5108_p5  ;;  %p5115_p11 = por %p5114_p9, %p5113_p7 }
  0x54   : > { %p5116_p12 = pnand %p5115_p11, %p5109_p6 }
  0x56   : > { %5119 = shalt.err (!%p5116_p12)
}
  0x57   : > { %s5120_s1 = scalar_lea.vmem %s5808_s4, 3072  ;;  %s5584_s10 = smov [#allocation9]  }
  0x58   : > { %p5121_p2 = scmp.ne.s32.totalorder %s5808_s4, %s5120_s1  ;;  %s5125_s27 = sshll.u32 %s5584_s10, 4  ;;  %s5126_s27 = int_to_ptr.vmem [resolvable:$false] %s5125_s27 }
  0x59   : > { %s5127_s8 = scalar_lea.vmem %s5126_s27, 6144  ;;  %p5128_p5 = scmp.lt.s32.totalorder %s5808_s4, %s5126_s27 }
  0x5a   : > { %p5123_p10 = pnand %p5121_p2, %p5768_p8  ;;  %p5129_p13 = scmp.lt.s32.totalorder %s5127_s8, %s5120_s1 }
  0x5c   : > { %p5124_p0 = pneg %p5123_p10  ;;  %p5130_p1 = por %p5129_p13, %p5128_p5 }
  0x5e   : > { %p5131_p3 = pnand %p5130_p1, %p5124_p0 }
  0x60   : > { %5134 = shalt.err (!%p5131_p3)
}
  0x61   : > { %s5585_s19 = smov 192   ;;  %s5586_s11 = smov 12  }
  0x62   : > { %4593 = dma.hbm_to_vmem [thread:$0]  (!%p5757_p4), %s5806_s6, 3072, %s5808_s4, %s7348_s12, %s5585_s19, %s5585_s19, %s5586_s11  }
  0x63   : > { %s7390_s5 = sld [smem:[#allocation45_spill]]  ;;  %s514_s10 = scalar_lea.vmem [#allocation12], %s5741_s15 }
  0x64   : > { %s521_s27 = sshll.u32 %s514_s10, 4  ;;  %s7345_s8 = scalar_lea.sflag [#allocation13], %s5738_s14  ;;  %s522_s27 = int_to_ptr.vmem [resolvable:$true] %s521_s27 }
  0x69   : > { %s5838_s1 = scalar_lea.hbm %s7390_s5, %s5744_s16  ;;  %s5140_s6 = scalar_lea.hbm %s7390_s5, 32 }
  0x6a   : > { %s5135_s3 = scalar_lea.hbm %s5838_s1, 16  ;;  %p5141_p9 = scmp.lt.u32.totalorder %s5838_s1, %s7390_s5 }
  0x6b   : > { %p5136_p13 = scmp.ne.s32.totalorder %s5838_s1, %s5135_s3  ;;  %p5142_p11 = scmp.lt.u32.totalorder %s5140_s6, %s5135_s3 }
  0x6c   : > { %p5144_p2 = scmp.lt.u32.totalorder %s5135_s3, %s5838_s1 }
  0x6d   : > { %p5138_p6 = pnand %p5136_p13, %p5768_p8  ;;  %p5143_p12 = por %p5142_p11, %p5141_p9 }
  0x6f   : > { %p5139_p7 = pneg %p5138_p6  ;;  %p5145_p10 = por %p5144_p2, %p5143_p12 }
  0x71   : > { %p5146_p0 = pnand %p5145_p10, %p5139_p7 }
  0x73   : > { %5149 = shalt.err (!%p5146_p0)
}
  0x74   : > { %s5150_s17 = scalar_lea.vmem %s522_s27, 16  ;;  %s5587_s20 = smov [#allocation12]  }
  0x75   : > { %p5151_p5 = scmp.ne.s32.totalorder %s522_s27, %s5150_s17  ;;  %s5155_s10 = sshll.u32 %s5587_s20, 4  ;;  %s5156_s10 = int_to_ptr.vmem [resolvable:$false] %s5155_s10 }
  0x76   : > { %s5157_s2 = scalar_lea.vmem %s5156_s10, 32  ;;  %p5158_p13 = scmp.lt.s32.totalorder %s522_s27, %s5156_s10 }
  0x77   : > { %p5153_p1 = pnand %p5151_p5, %p5768_p8  ;;  %p5159_p6 = scmp.lt.s32.totalorder %s5157_s2, %s5150_s17 }
  0x79   : > { %p5154_p3 = pneg %p5153_p1  ;;  %p5160_p4 = por %p5159_p6, %p5158_p13 }
  0x7b   : > { %p5161_p9 = pnand %p5160_p4, %p5154_p3 }
  0x7d   : > { %5164 = shalt.err (!%p5161_p9)
}
  0x7e   : > { %p7391_p11 = scmp.ne.s32.totalorder %s7382_s28, 0  ;;  %s7392_s7 = sld [smem:[#allocation47_spill]] }
  0x7f   : > { %s548_s19 = scalar_lea.vmem [#allocation15], %s5741_s15  ;;  %s7346_s17 = scalar_lea.sflag [#allocation16], %s5738_s14 }
  0x80   : > { %4599 = dma.hbm_to_vmem [thread:$0]  (!%p7391_p11), %s5838_s1, 16, %s522_s27, %s7345_s8  }
  0x81   : > { %s555_s11 = sshll.u32 %s548_s19, 4  ;;  %s556_s11 = int_to_ptr.vmem [resolvable:$true] %s555_s11 }
  0x84   : > { %s5865_s6 = scalar_lea.hbm %s7392_s7, %s5744_s16  ;;  %s5170_s27 = scalar_lea.hbm %s7392_s7, 32 }
  0x85   : > { %s5165_s20 = scalar_lea.hbm %s5865_s6, 16  ;;  %p5171_p2 = scmp.lt.u32.totalorder %s5865_s6, %s7392_s7 }
  0x86   : > { %p5166_p4 = scmp.ne.s32.totalorder %s5865_s6, %s5165_s20  ;;  %p5172_p10 = scmp.lt.u32.totalorder %s5170_s27, %s5165_s20 }
  0x87   : > { %p5174_p5 = scmp.lt.u32.totalorder %s5165_s20, %s5865_s6 }
  0x88   : > { %p5168_p7 = pnand %p5166_p4, %p5768_p8  ;;  %p5173_p0 = por %p5172_p10, %p5171_p2 }
  0x8a   : > { %p5169_p12 = pneg %p5168_p7  ;;  %p5175_p1 = por %p5174_p5, %p5173_p0 }
  0x8c   : > { %p5176_p3 = pnand %p5175_p1, %p5169_p12 }
  0x8e   : > { %5179 = shalt.err (!%p5176_p3)
}
  0x8f   : > { %s5180_s4 = scalar_lea.vmem %s556_s11, 16  ;;  %s5588_s19 = smov [#allocation15]  }
  0x90   : > { %p5181_p13 = scmp.ne.s32.totalorder %s556_s11, %s5180_s4  ;;  %s5185_s8 = sshll.u32 %s5588_s19, 4  ;;  %s5186_s8 = int_to_ptr.vmem [resolvable:$false] %s5185_s8 }
  0x91   : > { %s5187_s10 = scalar_lea.vmem %s5186_s8, 32  ;;  %p5188_p4 = scmp.lt.s32.totalorder %s556_s11, %s5186_s8 }
  0x92   : > { %p5183_p6 = pnand %p5181_p13, %p5768_p8  ;;  %p5189_p7 = scmp.lt.s32.totalorder %s5187_s10, %s5180_s4 }
  0x94   : > { %p5184_p9 = pneg %p5183_p6  ;;  %p5190_p11 = por %p5189_p7, %p5188_p4 }
  0x96   : > { %p5191_p2 = pnand %p5190_p11, %p5184_p9 }
  0x98   : > { %5194 = shalt.err (!%p5191_p2)
}
  0x99   : > { %p7393_p10 = scmp.ne.s32.totalorder %s7382_s28, 0  ;;  %s4031_s20 = sshll.u32 %s5741_s15, 2 }
  0x9a   : > { %s4189_s1 = sshll.u32 %s5573_s29, 6  ;;  %s7394_s9 = sld [smem:[#allocation49_spill]] }
  0x9b   : > { %4605 = dma.hbm_to_vmem [thread:$0]  (!%p7393_p10), %s5865_s6, 16, %s556_s11, %s7346_s17  }
  0x9c   : > { %s587_s3 = scalar_lea.vmem [#allocation18], %s4031_s20  ;;  %s7347_s19 = scalar_lea.sflag [#allocation19], %s5738_s14 }
  0x9d   : > { %s595_s4 = sshll.u32 %s587_s3, 4  ;;  %s596_s4 = int_to_ptr.vmem [resolvable:$true] %s595_s4 }
  0xa0   : > { %s5893_s8 = scalar_lea.hbm %s7394_s9, %s4189_s1  ;;  %s5200_s17 = scalar_lea.hbm %s7394_s9, 128 }
  0xa1   : > { %s5195_s10 = scalar_lea.hbm %s5893_s8, 64  ;;  %p5201_p5 = scmp.lt.u32.totalorder %s5893_s8, %s7394_s9 }
  0xa2   : > { %p5196_p11 = scmp.ne.s32.totalorder %s5893_s8, %s5195_s10  ;;  %p5202_p1 = scmp.lt.u32.totalorder %s5200_s17, %s5195_s10 }
  0xa3   : > { %p5204_p13 = scmp.lt.u32.totalorder %s5195_s10, %s5893_s8 }
  0xa4   : > { %p5198_p12 = pnand %p5196_p11, %p5768_p8  ;;  %p5203_p3 = por %p5202_p1, %p5201_p5 }
  0xa6   : > { %p5199_p0 = pneg %p5198_p12  ;;  %p5205_p6 = por %p5204_p13, %p5203_p3 }
  0xa8   : > { %p5206_p9 = pnand %p5205_p6, %p5199_p0 }
  0xaa   : > { %5209 = shalt.err (!%p5206_p9)
}
  0xab   : > { %s5210_s20 = scalar_lea.vmem %s596_s4, 64  ;;  %s5589_s2 = smov [#allocation18]  }
  0xac   : > { %p5211_p4 = scmp.ne.s32.totalorder %s596_s4, %s5210_s20  ;;  %s5215_s3 = sshll.u32 %s5589_s2, 4  ;;  %s5216_s3 = int_to_ptr.vmem [resolvable:$false] %s5215_s3 }
  0xad   : > { %s5217_s6 = scalar_lea.vmem %s5216_s3, 128  ;;  %p5218_p11 = scmp.lt.s32.totalorder %s596_s4, %s5216_s3 }
  0xae   : > { %p5213_p7 = pnand %p5211_p4, %p5768_p8  ;;  %p5219_p12 = scmp.lt.s32.totalorder %s5217_s6, %s5210_s20 }
  0xb0   : > { %p5214_p2 = pneg %p5213_p7  ;;  %p5220_p10 = por %p5219_p12, %p5218_p11 }
  0xb2   : > { %p5221_p1 = pnand %p5220_p10, %p5214_p2 }
  0xb4   : > { %5224 = shalt.err (!%p5221_p1)
}
  0xb5   : > { %p7395_p5 = scmp.ne.s32.totalorder %s7382_s28, 0  ;;  %s5916_s17 = sadd.s32 4294967295, %s5581_s13  }
  0xb6   : > { %s4013_s10 = sadd.s32 4294967294, %s5581_s13   ;;  %s55_s11 = sadd.s32 1, %s5573_s29 }
  0xb7   : > { %4611 = dma.hbm_to_vmem [thread:$0]  (!%p7395_p5), %s5893_s8, 64, %s596_s4, %s7347_s19  }
  0xb8   : > { %s58_s27 = sadd.s32 1, %s5577_s30  ;;  %p56_p10 = scmp.ge.s32.totalorder %s55_s11, 2 }
  0xb9   : > { %s65_s1 = sadd.s32 1, %s5561_s26  ;;  %p72_p0 = scmp.ne.s32.totalorder %s5561_s26, %s5557_s25 }
  0xba   : > { %p78_p3 = scmp.ne.s32.totalorder %s5557_s25, %s5553_s24  ;;  %s7449_s11 = smov (%p56_p10, %s55_s11), 0 }
  0xbb   : > { %7396 = sst [smem:[#allocation37_spill]] %s7449_s11  ;;  %s7451_s27 = smov (!%p56_p10, %s58_s27), %s5577_s30 }
  0xbc   : > { %p7397_p13 = scmp.eq.s32.totalorder %s5581_s13, 0  ;;  %p79_p9 = scmp.eq.s32.totalorder %s5916_s17, 0 }
  0xbd   : > { %p60_p4 = scmp.ge.s32.totalorder %s7451_s27, 2  ;;  %s88_s4 = ssub.s32 %s5573_s29, %s7449_s11 }
  0xbe   : > { %p5934_p6 = por %p7397_p13, %p72_p0  ;;  %p5944_p7 = por %p79_p9, %p78_p3 }
  0xbf   : > { %p89_p2 = scmp.eq.s32.totalorder %s88_s4, 0  ;;  %s7453_s27 = smov (%p60_p4, %s7451_s27), 0 }
  0xc0   : > { %s7399_s20 = scalar_select %p5944_p7, 1, 0 }
  0xc1   : > { %7400 = sst [smem:[#allocation38_spill]] %s7453_s27  ;;  %s91_s2 = sadd.s32 1, %s5549_s23 }
  0xc2   : > { %p104_p11 = scmp.ne.s32.totalorder %s5545_s22, %s5541_s21  ;;  %s62_s3 = ssub.s32 %s5577_s30, %s7453_s27 }
  0xc3   : > { %p388_p12 = scmp.eq.s32.totalorder %s5916_s17, 3  ;;  %p63_p1 = scmp.eq.s32.totalorder %s62_s3, 0 }
  0xc4   : > { %p5956_p10 = por %p104_p11, %p79_p9  ;;  %p394_p4 = scmp.eq.s32.totalorder %s4013_s10, 3 }
  0xc5   : > { %s5961_s19 = scalar_select %p89_p2, %s5549_s23, %s91_s2  }
  0xc6   : > { %s7401_s6 = scalar_select %p5956_p10, 1, 0 }
  0xc7   : > { %s5964_s12 = scalar_select %p63_p1, %s5561_s26, %s65_s1  }
  0xc8   : > { %p5969_p13 = por %p388_p12, %p72_p0  ;;  %s414_s5 = sand.u32 1, %s5561_s26  }
  0xc9   : > { %7402 = sst [smem:[#allocation39_spill]] %s5964_s12  ;;  %s4186_s7 = sshll.u32 %s5577_s30, 10 }
  0xca   : > { %s7403_s4 = scalar_select %p5969_p13, 1, 0 }
  0xcb   : > { %p5978_p7 = por %p394_p4, %p78_p3  ;;  %s4016_s3 = sshll.u32 %s414_s5, 6 }
  0xcc   : > { %s7405_s0 = sld [smem:[#allocation40_spill]]  ;;  %p7406_p9 = scmp.lt.s32.totalorder %s5581_s13, 4 }
  0xcd   : > { %s7404_s21 = scalar_select %p5978_p7, 1, 0 }
  0xce   : > { %p5991_p0 = pnand %p7406_p9, %p5934_p6  ;;  %s418_s1 = scalar_lea.vmem [#allocation3], %s4016_s3 }
  0xcf   : > { %s425_s11 = sshll.u32 %s418_s1, 4  ;;  %s5997_s30 = scalar_lea.sflag [#allocation4], %s414_s5  ;;  %s5995_s11 = int_to_ptr.vmem [resolvable:$true] %s425_s11 }
  0xd0   : > { %p5227_p2 = pneg %p5991_p0 }
  0xd2   : > { %s5985_s2 = scalar_lea.hbm %s7405_s0, %s4186_s7  ;;  %s5230_s8 = scalar_lea.hbm %s7405_s0, 2048 }
  0xd3   : > { %s5225_s7 = scalar_lea.hbm %s5985_s2, 1024  ;;  %p5231_p6 = scmp.lt.u32.totalorder %s5985_s2, %s7405_s0 }
  0xd4   : > { %p5226_p3 = scmp.ne.s32.totalorder %s5985_s2, %s5225_s7  ;;  %p5232_p1 = scmp.lt.u32.totalorder %s5230_s8, %s5225_s7 }
  0xd5   : > { %p5234_p9 = scmp.lt.u32.totalorder %s5225_s7, %s5985_s2 }
  0xd6   : > { %p5228_p11 = pnand %p5227_p2, %p5226_p3  ;;  %p5233_p4 = por %p5232_p1, %p5231_p6 }
  0xd8   : > { %p5229_p12 = pneg %p5228_p11  ;;  %p5235_p7 = por %p5234_p9, %p5233_p4 }
  0xda   : > { %p5236_p13 = pnand %p5235_p7, %p5229_p12 }
  0xdc   : > { %5239 = shalt.err (!%p5236_p13)
}
  0xdd   : > { %s5240_s5 = scalar_lea.vmem %s5995_s11, 1024  ;;  %s5590_s3 = smov [#allocation3]  }
  0xde   : > { %p5241_p3 = scmp.ne.s32.totalorder %s5995_s11, %s5240_s5  ;;  %s5245_s1 = sshll.u32 %s5590_s3, 4  ;;  %s5246_s1 = int_to_ptr.vmem [resolvable:$false] %s5245_s1 }
  0xdf   : > { %s5247_s26 = scalar_lea.vmem %s5246_s1, 2048  ;;  %p5248_p5 = scmp.lt.s32.totalorder %s5995_s11, %s5246_s1 }
  0xe0   : > { %p5243_p11 = pnand %p5241_p3, %p5227_p2  ;;  %p5249_p6 = scmp.lt.s32.totalorder %s5247_s26, %s5240_s5 }
  0xe2   : > { %p5244_p10 = pneg %p5243_p11  ;;  %p5250_p1 = por %p5249_p6, %p5248_p5 }
  0xe4   : > { %p5251_p4 = pnand %p5250_p1, %p5244_p10 }
  0xe6   : > { %5254 = shalt.err (!%p5251_p4)
}
  0xe7   : > { %s5591_s12 = smov 128   ;;  %s5592_s7 = smov 8  }
  0xe8   : > { %4584 = dma.hbm_to_vmem [thread:$0]  (!%p5991_p0), %s5985_s2, 1024, %s5995_s11, %s5997_s30, %s5591_s12, %s5591_s12, %s5592_s7  }
  0xe9   : > { %s7408_s8 = sld [smem:[#allocation42_spill]]  ;;  %s455_s5 = scalar_lea.vmem [#allocation8], %s5741_s15 }
  0xea   : > { %s462_s1 = sshll.u32 %s455_s5, 4  ;;  %s4022_s26 = sshll.u32 %s5741_s15, 6  ;;  %s463_s1 = int_to_ptr.vmem [resolvable:$true] %s462_s1 }
  0xef   : > { %s6029_s3 = scalar_lea.hbm %s7408_s8, %s5744_s16  ;;  %s5260_s11 = scalar_lea.hbm %s7408_s8, 32 }
  0xf0   : > { %s5255_s0 = scalar_lea.hbm %s6029_s3, 16  ;;  %p5261_p13 = scmp.lt.u32.totalorder %s6029_s3, %s7408_s8 }
  0xf1   : > { %p5256_p5 = scmp.ne.s32.totalorder %s6029_s3, %s5255_s0  ;;  %p5262_p0 = scmp.lt.u32.totalorder %s5260_s11, %s5255_s0 }
  0xf2   : > { %p5264_p12 = scmp.lt.u32.totalorder %s5255_s0, %s6029_s3 }
  0xf3   : > { %p5258_p7 = pnand %p5256_p5, %p5768_p8  ;;  %p5263_p2 = por %p5262_p0, %p5261_p13 }
  0xf5   : > { %p5259_p10 = pneg %p5258_p7  ;;  %p5265_p9 = por %p5264_p12, %p5263_p2 }
  0xf7   : > { %p5266_p3 = pnand %p5265_p9, %p5259_p10 }
  0xf9   : > { %5269 = shalt.err (!%p5266_p3)
}
  0xfa   : > { %s5270_s7 = scalar_lea.vmem %s463_s1, 16  ;;  %s5593_s9 = smov [#allocation8]  }
  0xfb   : > { %p5271_p11 = scmp.ne.s32.totalorder %s463_s1, %s5270_s7  ;;  %s5275_s27 = sshll.u32 %s5593_s9, 4  ;;  %s5276_s27 = int_to_ptr.vmem [resolvable:$false] %s5275_s27 }
  0xfc   : > { %s5277_s5 = scalar_lea.vmem %s5276_s27, 32  ;;  %p5278_p4 = scmp.lt.s32.totalorder %s463_s1, %s5276_s27 }
  0xfd   : > { %p5273_p6 = pnand %p5271_p11, %p5768_p8  ;;  %p5279_p5 = scmp.lt.s32.totalorder %s5277_s5, %s5270_s7 }
  0xff   : > { %p5274_p1 = pneg %p5273_p6  ;;  %p5280_p7 = por %p5279_p5, %p5278_p4 }
 0x101   : > { %p5281_p0 = pnand %p5280_p7, %p5274_p1 }
 0x103   : > { %5284 = shalt.err (!%p5281_p0)
}
 0x104   : > { %p7409_p13 = scmp.ne.s32.totalorder %s7382_s28, 0  ;;  %s7410_s0 = scalar_lea.sflag [#allocation7], %s5738_s14 }
 0x105   : > { %s4187_s10 = sshll.u32 %s5573_s29, 10  ;;  %s7411_s2 = sld [smem:[#allocation44_spill]] }
 0x106   : > { %4590 = dma.hbm_to_vmem [thread:$0]  (!%p7409_p13), %s6029_s3, 16, %s463_s1, %s7410_s0  }
 0x107   : > { %s494_s7 = scalar_lea.vmem [#allocation11], %s4022_s26 }
 0x108   : > { %s501_s9 = sshll.u32 %s494_s7, 4  ;;  %s6060_s9 = int_to_ptr.vmem [resolvable:$true] %s501_s9 }
 0x10b   : > { %s6056_s12 = scalar_lea.hbm %s7411_s2, %s4187_s10  ;;  %s5290_s5 = scalar_lea.hbm %s7411_s2, 2048 }
 0x10c   : > { %s5285_s27 = scalar_lea.hbm %s6056_s12, 1024  ;;  %p5291_p9 = scmp.lt.u32.totalorder %s6056_s12, %s7411_s2 }
 0x10d   : > { %p5286_p10 = scmp.ne.s32.totalorder %s6056_s12, %s5285_s27  ;;  %p5292_p3 = scmp.lt.u32.totalorder %s5290_s5, %s5285_s27 }
 0x10e   : > { %p5294_p6 = scmp.lt.u32.totalorder %s5285_s27, %s6056_s12 }
 0x10f   : > { %p5288_p2 = pnand %p5286_p10, %p5768_p8  ;;  %p5293_p11 = por %p5292_p3, %p5291_p9 }
 0x111   : > { %p5289_p12 = pneg %p5288_p2  ;;  %p5295_p1 = por %p5294_p6, %p5293_p11 }
 0x113   : > { %p5296_p4 = pnand %p5295_p1, %p5289_p12 }
 0x115   : > { %5299 = shalt.err (!%p5296_p4)
}
 0x116   : > { %s5300_s26 = scalar_lea.vmem %s6060_s9, 1024  ;;  %s5594_s30 = smov [#allocation11]  }
 0x117   : > { %p5301_p5 = scmp.ne.s32.totalorder %s6060_s9, %s5300_s26  ;;  %s5305_s11 = sshll.u32 %s5594_s30, 4  ;;  %s5306_s11 = int_to_ptr.vmem [resolvable:$false] %s5305_s11 }
 0x118   : > { %s5307_s7 = scalar_lea.vmem %s5306_s11, 2048  ;;  %p5308_p10 = scmp.lt.s32.totalorder %s6060_s9, %s5306_s11 }
 0x119   : > { %p5303_p7 = pnand %p5301_p5, %p5768_p8  ;;  %p5309_p2 = scmp.lt.s32.totalorder %s5307_s7, %s5300_s26 }
 0x11b   : > { %p5304_p0 = pneg %p5303_p7  ;;  %p5310_p9 = por %p5309_p2, %p5308_p10 }
 0x11d   : > { %p5311_p3 = pnand %p5310_p9, %p5304_p0 }
 0x11f   : > { %5314 = shalt.err (!%p5311_p3)
}
 0x120   : > { %s7358_s27 = smov 64   ;;  %s7360_s3 = smov 4  }
 0x121   : > { %s7412_s1 = scalar_lea.sflag [#allocation10], %s5738_s14  ;;  %s7413_s10 = sld [smem:[#allocation46_spill]] }
 0x122   : > { %4596 = dma.hbm_to_vmem [thread:$0]  (!%p7409_p13), %s6056_s12, 1024, %s6060_s9, %s7412_s1, %s7358_s27, %s7358_s27, %s7360_s3  }
 0x123   : > { %s531_s30 = scalar_lea.vmem [#allocation14], %s5741_s15  ;;  %s4028_s7 = sshll.u32 %s5741_s15, 8 }
 0x124   : > { %s538_s11 = sshll.u32 %s531_s30, 4  ;;  %s539_s11 = int_to_ptr.vmem [resolvable:$true] %s538_s11 }
 0x127   : > { %s6092_s26 = scalar_lea.hbm %s7413_s10, %s5744_s16  ;;  %s5320_s9 = scalar_lea.hbm %s7413_s10, 32 }
 0x128   : > { %s5315_s2 = scalar_lea.hbm %s6092_s26, 16  ;;  %p5321_p1 = scmp.lt.u32.totalorder %s6092_s26, %s7413_s10 }
 0x129   : > { %p5316_p12 = scmp.ne.s32.totalorder %s6092_s26, %s5315_s2  ;;  %p5322_p4 = scmp.lt.u32.totalorder %s5320_s9, %s5315_s2 }
 0x12a   : > { %p5324_p7 = scmp.lt.u32.totalorder %s5315_s2, %s6092_s26 }
 0x12b   : > { %p5318_p11 = pnand %p5316_p12, %p5768_p8  ;;  %p5323_p5 = por %p5322_p4, %p5321_p1 }
 0x12d   : > { %p5319_p6 = pneg %p5318_p11  ;;  %p5325_p0 = por %p5324_p7, %p5323_p5 }
 0x12f   : > { %p5326_p10 = pnand %p5325_p0, %p5319_p6 }
 0x131   : > { %5329 = shalt.err (!%p5326_p10)
}
 0x132   : > { %s5330_s0 = scalar_lea.vmem %s539_s11, 16  ;;  %s5597_s30 = smov [#allocation14]  }
 0x133   : > { %p5331_p2 = scmp.ne.s32.totalorder %s539_s11, %s5330_s0  ;;  %s5335_s27 = sshll.u32 %s5597_s30, 4  ;;  %s5336_s27 = int_to_ptr.vmem [resolvable:$false] %s5335_s27 }
 0x134   : > { %s5337_s8 = scalar_lea.vmem %s5336_s27, 32  ;;  %p5338_p12 = scmp.lt.s32.totalorder %s539_s11, %s5336_s27 }
 0x135   : > { %p5333_p9 = pnand %p5331_p2, %p5768_p8  ;;  %p5339_p11 = scmp.lt.s32.totalorder %s5337_s8, %s5330_s0 }
 0x137   : > { %p5334_p3 = pneg %p5333_p9  ;;  %p5340_p13 = por %p5339_p11, %p5338_p12 }
 0x139   : > { %p5341_p1 = pnand %p5340_p13, %p5334_p3 }
 0x13b   : > { %5344 = shalt.err (!%p5341_p1)
}
 0x13c   : > { %p7414_p4 = scmp.ne.s32.totalorder %s7382_s28, 0  ;;  %s7415_s2 = scalar_lea.sflag [#allocation13], %s5738_s14 }
 0x13d   : > { %s4188_s12 = sshll.u32 %s5573_s29, 12  ;;  %s7416_s5 = sld [smem:[#allocation48_spill]] }
 0x13e   : > { %4602 = dma.hbm_to_vmem [thread:$0]  (!%p7414_p4), %s6092_s26, 16, %s539_s11, %s7415_s2  }
 0x13f   : > { %s566_s0 = scalar_lea.vmem [#allocation17], %s4028_s7 }
 0x140   : > { %s573_s30 = sshll.u32 %s566_s0, 4  ;;  %s6125_s30 = int_to_ptr.vmem [resolvable:$true] %s573_s30 }
 0x143   : > { %s6121_s27 = scalar_lea.hbm %s7416_s5, %s4188_s12  ;;  %s5350_s2 = scalar_lea.hbm %s7416_s5, 8192 }
 0x144   : > { %s5345_s8 = scalar_lea.hbm %s6121_s27, 4096  ;;  %p5351_p7 = scmp.lt.u32.totalorder %s6121_s27, %s7416_s5 }
 0x145   : > { %p5346_p13 = scmp.ne.s32.totalorder %s6121_s27, %s5345_s8  ;;  %p5352_p0 = scmp.lt.u32.totalorder %s5350_s2, %s5345_s8 }
 0x146   : > { %p5354_p2 = scmp.lt.u32.totalorder %s5345_s8, %s6121_s27 }
 0x147   : > { %p5348_p6 = pnand %p5346_p13, %p5768_p8  ;;  %p5353_p10 = por %p5352_p0, %p5351_p7 }
 0x149   : > { %p5349_p5 = pneg %p5348_p6  ;;  %p5355_p9 = por %p5354_p2, %p5353_p10 }
 0x14b   : > { %p5356_p3 = pnand %p5355_p9, %p5349_p5 }
 0x14d   : > { %5359 = shalt.err (!%p5356_p3)
}
 0x14e   : > { %s5360_s0 = scalar_lea.vmem %s6125_s30, 4096  ;;  %s5598_s26 = smov [#allocation17]  }
 0x14f   : > { %p5361_p12 = scmp.ne.s32.totalorder %s6125_s30, %s5360_s0  ;;  %s5365_s11 = sshll.u32 %s5598_s26, 4  ;;  %s5366_s11 = int_to_ptr.vmem [resolvable:$false] %s5365_s11 }
 0x150   : > { %s5367_s9 = scalar_lea.vmem %s5366_s11, 8192  ;;  %p5368_p13 = scmp.lt.s32.totalorder %s6125_s30, %s5366_s11 }
 0x151   : > { %p5363_p11 = pnand %p5361_p12, %p5768_p8  ;;  %p5369_p6 = scmp.lt.s32.totalorder %s5367_s9, %s5360_s0 }
 0x153   : > { %p5364_p1 = pneg %p5363_p11  ;;  %p5370_p7 = por %p5369_p6, %p5368_p13 }
 0x155   : > { %p5371_p0 = pnand %p5370_p7, %p5364_p1 }
 0x157   : > { %5374 = shalt.err (!%p5371_p0)
}
 0x158   : > { %s5599_s8 = smov 256   ;;  %s5600_s2 = smov 16  }
 0x159   : > { %s7417_s1 = scalar_lea.sflag [#allocation16], %s5738_s14  ;;  %s7418_s11 = sld [smem:[#allocation50_spill]] }
 0x15a   : > { %4608 = dma.hbm_to_vmem [thread:$0]  (!%p7414_p4), %s6121_s27, 4096, %s6125_s30, %s7417_s1, %s5599_s8, %s5599_s8, %s5600_s2  }
 0x15b   : > { %s606_s9 = scalar_lea.vmem [#allocation20], %s4028_s7 }
 0x15c   : > { %s613_s5 = sshll.u32 %s606_s9, 4  ;;  %s6159_s5 = int_to_ptr.vmem [resolvable:$true] %s613_s5 }
 0x15f   : > { %s6155_s0 = scalar_lea.hbm %s7418_s11, %s4188_s12  ;;  %s5380_s3 = scalar_lea.hbm %s7418_s11, 8192 }
 0x160   : > { %s5375_s10 = scalar_lea.hbm %s6155_s0, 4096  ;;  %p5381_p9 = scmp.lt.u32.totalorder %s6155_s0, %s7418_s11 }
 0x161   : > { %p5376_p5 = scmp.ne.s32.totalorder %s6155_s0, %s5375_s10  ;;  %p5382_p3 = scmp.lt.u32.totalorder %s5380_s3, %s5375_s10 }
 0x162   : > { %p5384_p11 = scmp.lt.u32.totalorder %s5375_s10, %s6155_s0 }
 0x163   : > { %p5378_p10 = pnand %p5376_p5, %p5768_p8  ;;  %p5383_p12 = por %p5382_p3, %p5381_p9 }
 0x165   : > { %p5379_p2 = pneg %p5378_p10  ;;  %p5385_p1 = por %p5384_p11, %p5383_p12 }
 0x167   : > { %p5386_p13 = pnand %p5385_p1, %p5379_p2 }
 0x169   : > { %5389 = shalt.err (!%p5386_p13)
}
 0x16a   : > { %s5390_s7 = scalar_lea.vmem %s6159_s5, 4096  ;;  %s5601_s2 = smov [#allocation20]  }
 0x16b   : > { %p5391_p6 = scmp.ne.s32.totalorder %s6159_s5, %s5390_s7  ;;  %s5395_s1 = sshll.u32 %s5601_s2, 4  ;;  %s5396_s1 = int_to_ptr.vmem [resolvable:$false] %s5395_s1 }
 0x16c   : > { %s5397_s26 = scalar_lea.vmem %s5396_s1, 8192  ;;  %p5398_p5 = scmp.lt.s32.totalorder %s6159_s5, %s5396_s1 }
 0x16d   : > { %p5393_p7 = pnand %p5391_p6, %p5768_p8  ;;  %p5399_p10 = scmp.lt.s32.totalorder %s5397_s26, %s5390_s7 }
 0x16f   : > { %p5394_p0 = pneg %p5393_p7  ;;  %p5400_p9 = por %p5399_p10, %p5398_p5 }
 0x171   : > { %p5401_p3 = pnand %p5400_p9, %p5394_p0 }
 0x173   : > { %5404 = shalt.err (!%p5401_p3)
}
 0x174   : > { %s7419_s10 = smov 4   ;;  %s7420_s9 = smov 64  }
 0x175   : > { %s7421_s27 = scalar_lea.sflag [#allocation19], %s5738_s14  ;;  %s7422_s12 = sld [smem:[#allocation51_spill]] }
 0x176   : > { %4614 = dma.hbm_to_vmem [thread:$0]  (!%p7414_p4), %s6155_s0, 4096, %s6159_s5, %s7421_s27, %s7420_s9, %s7420_s9, %s7419_s10  }
 0x177   : > { %s626_s7 = scalar_lea.vmem [#allocation21], %s5741_s15  ;;  %s624_s14 = scalar_lea.sflag [#allocation22], %s5741_s15 }
 0x178   : > { %s633_s2 = sshll.u32 %s626_s7, 4  ;;  %s634_s2 = int_to_ptr.vmem [resolvable:$true] %s633_s2 }
 0x17b   : > { %s6191_s8 = scalar_lea.hbm %s7422_s12, %s5744_s16  ;;  %s5410_s0 = scalar_lea.hbm %s7422_s12, 32 }
 0x17c   : > { %s5405_s1 = scalar_lea.hbm %s6191_s8, 16  ;;  %p5411_p1 = scmp.lt.u32.totalorder %s6191_s8, %s7422_s12 }
 0x17d   : > { %p5406_p2 = scmp.ne.s32.totalorder %s6191_s8, %s5405_s1  ;;  %p5412_p13 = scmp.lt.u32.totalorder %s5410_s0, %s5405_s1 }
 0x17e   : > { %p5414_p7 = scmp.lt.u32.totalorder %s5405_s1, %s6191_s8 }
 0x17f   : > { %p5408_p12 = pnand %p5406_p2, %p5768_p8  ;;  %p5413_p6 = por %p5412_p13, %p5411_p1 }
 0x181   : > { %p5409_p11 = pneg %p5408_p12  ;;  %p5415_p0 = por %p5414_p7, %p5413_p6 }
 0x183   : > { %p5416_p5 = pnand %p5415_p0, %p5409_p11 }
 0x185   : > { %5419 = shalt.err (!%p5416_p5)
}
 0x186   : > { %s5420_s15 = scalar_lea.vmem %s634_s2, 16  ;;  %s5602_s9 = smov [#allocation21]  }
 0x187   : > { %p5421_p10 = scmp.ne.s32.totalorder %s634_s2, %s5420_s15  ;;  %s5425_s27 = sshll.u32 %s5602_s9, 4  ;;  %s5426_s27 = int_to_ptr.vmem [resolvable:$false] %s5425_s27 }
 0x188   : > { %s5427_s30 = scalar_lea.vmem %s5426_s27, 32  ;;  %p5428_p2 = scmp.lt.s32.totalorder %s634_s2, %s5426_s27 }
 0x189   : > { %p5423_p9 = pnand %p5421_p10, %p5768_p8  ;;  %p5429_p12 = scmp.lt.s32.totalorder %s5427_s30, %s5420_s15 }
 0x18b   : > { %p5424_p3 = pneg %p5423_p9  ;;  %p5430_p4 = por %p5429_p12, %p5428_p2 }
 0x18d   : > { %p5431_p1 = pnand %p5430_p4, %p5424_p3 }
 0x18f   : > { %5434 = shalt.err (!%p5431_p1)
}
 0x190   : > { %p7423_p13 = scmp.ne.s32.totalorder %s7382_s28, 0  ;;  %s7424_s3 = sld [smem:[#allocation36_spill]] }
 0x192   : > { %4617 = dma.hbm_to_vmem [thread:$0]  (!%p7423_p13), %s6191_s8, 16, %s634_s2, %s624_s14  }
 0x196   : > { %p7425_p11 = scmp.ne.s32.totalorder %s7424_s3, 0 }
 0x197   : > { %s6215_s18 = sand.u32 (!%p7425_p11), 1, %s5557_s25   ;;  %p7426_p8 = scmp.ne.s32.totalorder (!%p7425_p11), %s7399_s20, 0 }
 0x198   : > { %642 = sbr.rel (%p7425_p11) target bundleno = 4368 (0x1110), region = 68  ;;  %s4039_s7 = sshll.u32 (!%p7425_p11), %s6215_s18, 6 }
 0x199   : > { %s645_s1 = scalar_lea.sflag (!%p7425_p11), [#allocation4], %s6215_s18  ;;  %s6221_s26 = scalar_lea.vmem (!%p7425_p11), [#allocation3], %s4039_s7 }
 0x19f   : > { %5508 = dma.done.wait (%p7426_p8), %s645_s1, 1024  }
 0x1a0   : > { %5510 = vsyncadd (%p7426_p8), %s645_s1, 4294966272  ;;  %s6228_s28 = sand.u32 1, %s5916_s17   ;;  %s6231_s8 = sand.u32 1, %s5545_s22  }
 0x1a1   : > { %s654_s2 = scalar_lea.sflag [#allocation7], %s6228_s28  ;;  %s656_s14 = scalar_lea.vmem [#allocation6], %s6231_s8 }
 0x1a2   : > { %p7427_p4 = scmp.ne.s32.totalorder %s7401_s6, 0 }
 0x1a4   : > { %5512 = dma.done.wait (%p7427_p4), %s654_s2, 32  }
 0x1a5   : > { %5514 = vsyncadd (%p7427_p4), %s654_s2, 4294967264  ;;  %s4554_s20 = smul.u32 192, %s6231_s8  ;;  %s664_s5 = scalar_lea.vmem [#allocation8], %s6231_s8 }
 0x1a6   : > { %s670_s0 = scalar_lea.sflag [#allocation10], %s6228_s28 }
 0x1a7   : > { %s6242_s17 = scalar_lea.vmem [#allocation9], %s4554_s20 }
 0x1a8   : > { %5516 = dma.done.wait (%p7427_p4), %s670_s0, 4096  }
 0x1a9   : > { %5518 = vsyncadd (%p7427_p4), %s670_s0, 4294963200  ;;  %s4040_s10 = sshll.u32 %s6231_s8, 6  ;;  %s688_s15 = scalar_lea.sflag [#allocation13], %s6228_s28 }
 0x1aa   : > { %s6249_s16 = scalar_lea.vmem [#allocation11], %s4040_s10  ;;  %s690_s9 = scalar_lea.vmem [#allocation12], %s6231_s8 }
 0x1ab   : > { %5520 = dma.done.wait (%p7427_p4), %s688_s15, 32  }
 0x1ac   : > { %5522 = vsyncadd (%p7427_p4), %s688_s15, 4294967264  ;;  %s698_s27 = scalar_lea.vmem [#allocation14], %s6231_s8  ;;  %s704_s30 = scalar_lea.sflag [#allocation16], %s6228_s28 }
 0x1ad   : > { %5524 = dma.done.wait (%p7427_p4), %s704_s30, 4112  }
 0x1ae   : > { %5526 = vsyncadd (%p7427_p4), %s704_s30, 4294963184  ;;  %s4041_s1 = sshll.u32 %s6231_s8, 8  ;;  %s4042_s2 = sshll.u32 %s6231_s8, 2 }
 0x1af   : > { %s6266_s20 = scalar_lea.vmem [#allocation17], %s4041_s1  ;;  %s721_s0 = scalar_lea.sflag [#allocation19], %s6228_s28 }
 0x1b0   : > { %s6269_s10 = scalar_lea.vmem [#allocation18], %s4042_s2 }
 0x1b1   : > { %5528 = dma.done.wait (%p7427_p4), %s721_s0, 4160  }
 0x1b2   : > { %5530 = vsyncadd (%p7427_p4), %s721_s0, 4294963136  ;;  %s6275_s15 = scalar_lea.vmem [#allocation20], %s4041_s1  ;;  %s739_s30 = scalar_lea.sflag [#allocation22], %s6231_s8 }
 0x1b3   : > { %s741_s3 = scalar_lea.vmem [#allocation21], %s6231_s8 }
 0x1b4   : > { %5532 = dma.done.wait (%p7427_p4), %s739_s30, 16  }
 0x1b5   : > { %5534 = vsyncadd (%p7427_p4), %s739_s30, 4294967280  ;;  %s6285_s28 = scalar_lea.vmem [#allocation23], %s4039_s7  ;;  %s7428_s2 = sld [smem:[#allocation33_spill]] }
 0x1bb   : > { %p4045_p6 = scmp.ne.s32.totalorder %s7428_s2, 0 }
 0x1bc   : > { %v836_v0 = vld [vmem:[%s6221_s26] sm:$0xff] (!%p4045_p6)  ;;  %v837_v1 = vld [vmem:[%s6221_s26 + $0x8] sm:$0xff] (!%p4045_p6)  ;;  %v838_v2 = vld [vmem:[%s6221_s26 + $0x10] sm:$0xff] (!%p4045_p6) }
 0x1bd   : > { %835 = sbr.rel (%p4045_p6) target bundleno = 452 (0x1c4), region = 120  ;;  %844 = vst [vmem:[#allocation2] sm:$0xff] (!%p4045_p6), %v836_v0  ;;  %845 = vst [vmem:[#allocation2 + $0x8] sm:$0xff] (!%p4045_p6), %v837_v1  ;;  %v839_v3 = vld [vmem:[%s6221_s26 + $0x18] sm:$0xff] (!%p4045_p6)  ;;  %v840_v4 = vld [vmem:[%s6221_s26 + $0x20] sm:$0xff] (!%p4045_p6) }
 0x1be   : > { %846 = vst [vmem:[#allocation2 + $0x10] sm:$0xff] (!%p4045_p6), %v838_v2  ;;  %v841_v5 = vld [vmem:[%s6221_s26 + $0x28] sm:$0xff] (!%p4045_p6)  ;;  %847 = vst [vmem:[#allocation2 + $0x18] sm:$0xff] (!%p4045_p6), %v839_v3  ;;  %v842_v6 = vld [vmem:[%s6221_s26 + $0x30] sm:$0xff] (!%p4045_p6) }
 0x1bf   : > { %848 = vst [vmem:[#allocation2 + $0x20] sm:$0xff] (!%p4045_p6), %v840_v4  ;;  %849 = vst [vmem:[#allocation2 + $0x28] sm:$0xff] (!%p4045_p6), %v841_v5  ;;  %v843_v7 = vld [vmem:[%s6221_s26 + $0x38] sm:$0xff] (!%p4045_p6) }
 0x1c0   : > { %850 = vst [vmem:[#allocation2 + $0x30] sm:$0xff] (!%p4045_p6), %v842_v6  ;;  %851 = vst [vmem:[#allocation2 + $0x38] sm:$0xff] (!%p4045_p6), %v843_v7 }
 0x1c4 PF: > { %v852_v8 = vld [vmem:[#allocation2] sm:$0xff]  ;;  %v853_v10 = vld [vmem:[#allocation2 + $0x8] sm:$0xff]  ;;  %v4798_v56 = vld [vmem:[%s6242_s17 + $0x4c] ss:$12 sps:$4 sm:$0xff]   ;;  %v5603_v7 = vmov 0   ;;  %vm1328_vm0 = vcmask 261120  }
 0x1c5   : > { %v854_v9 = vld [vmem:[#allocation2 + $0x10] sm:$0xff]  ;;  %862 = vadd.xlane.f32.xlu0 %v852_v8  ;;  %v855_v11 = vld [vmem:[#allocation2 + $0x18] sm:$0xff]  ;;  %v4790_v18 = vld [vmem:[%s6242_s17 + $0x1c] ss:$12 sps:$4 sm:$0xff]   ;;  %1175 = vmatprep.mubr.bf16.mxu0 %v5603_v7  ;;  %vm1418_vm5 = vcmask 523264   ;;  %s5605_s6 = smov 96  }
 0x1c6   : > { %866 = vadd.xlane.f32.xlu1 %v854_v9  ;;  %v856_v12 = vld [vmem:[#allocation2 + $0x20] sm:$0xff]  ;;  %v857_v13 = vld [vmem:[#allocation2 + $0x28] sm:$0xff]  ;;  %v4814_v4 = vld [vmem:[%s6242_s17 + $0xac] ss:$12 sps:$4 sm:$0xff]   ;;  %s5606_s7 = smov 64   ;;  %s5607_s26 = smov 32  }
 0x1c7   : > { %v858_v14 = vld [vmem:[#allocation2 + $0x30] sm:$0xff]  ;;  %v859_v15 = vld [vmem:[#allocation2 + $0x38] sm:$0xff]  ;;  %v4806_v62 = vld [vmem:[%s6242_s17 + $0x7c] ss:$12 sps:$4 sm:$0xff]   ;;  %vm2570_vm10 = vcmask 785408  }
 0x1c8   : > { %v4787_v16 = vld [vmem:[%s6242_s17 + $0x4] ss:$12 sps:$4 sm:$0xff]   ;;  %v4789_v17 = vld [vmem:[%s6242_s17] ss:$12 sps:$4 sm:$0xff]   ;;  %v4792_v19 = vld [vmem:[%s6242_s17 + $0x8] ss:$12 sps:$4 sm:$0xff]  }
 0x1c9   : > { %864 = vadd.xlane.f32.xlu0 %v853_v10  ;;  %1143 = vmatprep.subr.bf16.mxu0 %v4787_v16  ;;  %v4793_v52 = vld [vmem:[%s6242_s17 + $0x18] ss:$12 sps:$4 sm:$0xff]   ;;  %v4794_v53 = vld [vmem:[%s6242_s17 + $0x34] ss:$12 sps:$4 sm:$0xff]   ;;  %v4797_v55 = vld [vmem:[%s6242_s17 + $0x30] ss:$12 sps:$4 sm:$0xff]  }
 0x1ca   : > { %868 = vadd.xlane.f32.xlu1 %v855_v11  ;;  %1144 = vmatpush1.bf16.msra.mxu0 %v4789_v17  ;;  %v4796_v54 = vld [vmem:[%s6242_s17 + $0x20] ss:$12 sps:$4 sm:$0xff]   ;;  %v4800_v57 = vld [vmem:[%s6242_s17 + $0x38] ss:$12 sps:$4 sm:$0xff]   ;;  %v4801_v58 = vld [vmem:[%s6242_s17 + $0x48] ss:$12 sps:$4 sm:$0xff]  }
 0x1cb   : > { %4360 = vmatprep.subr.bf16.mxu1 %v4792_v19  ;;  %1145 = vmatprep.subr.bf16.mxu0 %v4790_v18  ;;  %v4802_v59 = vld [vmem:[%s6242_s17 + $0x64] ss:$12 sps:$4 sm:$0xff]   ;;  %v4805_v61 = vld [vmem:[%s6242_s17 + $0x60] ss:$12 sps:$4 sm:$0xff]   ;;  %v4808_v63 = vld [vmem:[%s6242_s17 + $0x68] ss:$12 sps:$4 sm:$0xff]  }
 0x1cc   : > { %4361 = vmatpush3.bf16.msra.mxu1 %v4792_v19  ;;  %v4804_v60 = vld [vmem:[%s6242_s17 + $0x50] ss:$12 sps:$4 sm:$0xff]   ;;  %v4809_v0 = vld [vmem:[%s6242_s17 + $0x78] ss:$12 sps:$4 sm:$0xff]   ;;  %v4810_v1 = vld [vmem:[%s6242_s17 + $0x94] ss:$12 sps:$4 sm:$0xff]  }
 0x1cd   : > { %870 = vadd.xlane.f32.xlu0 %v856_v12  ;;  %4362 = vmatprep.subr.bf16.mxu1 %v4796_v54  ;;  %v4812_v2 = vld [vmem:[%s6242_s17 + $0x80] ss:$12 sps:$4 sm:$0xff]   ;;  %v4813_v3 = vld [vmem:[%s6242_s17 + $0x90] ss:$12 sps:$4 sm:$0xff]   ;;  %v4816_v5 = vld [vmem:[%s6242_s17 + $0x98] ss:$12 sps:$4 sm:$0xff]  }
 0x1ce   : > { %872 = vadd.xlane.f32.xlu1 %v857_v13  ;;  %1146 = vmatpush1.bf16.msra.mxu0 %v4793_v52  ;;  %v4817_v6 = vld [vmem:[%s6242_s17 + $0xa8] ss:$12 sps:$4 sm:$0xff]  }
 0x1cf   : > { %1147 = vmatprep.subr.bf16.mxu0 %v4794_v53 }
 0x1d0   : > { %4363 = vmatpush3.bf16.msra.mxu1 %v4796_v54 }
 0x1d1   : > { %874 = vadd.xlane.f32.xlu0 %v858_v14  ;;  %4364 = vmatprep.subr.bf16.mxu1 %v4800_v57 }
 0x1d2   : > { %876 = vadd.xlane.f32.xlu1 %v859_v15  ;;  %1148 = vmatpush1.bf16.msra.mxu0 %v4797_v55 }
 0x1d3   : > { %1149 = vmatprep.subr.bf16.mxu0 %v4798_v56 }
 0x1d4   : > { %4365 = vmatpush3.bf16.msra.mxu1 %v4800_v57 }
 0x1d5   : > { %4366 = vmatprep.subr.bf16.mxu1 %v4804_v60 }
 0x1d6   : > { %1150 = vmatpush1.bf16.msra.mxu0 %v4801_v58 }
 0x1d7   : > { %1151 = vmatprep.subr.bf16.mxu0 %v4802_v59 }
 0x1d8   : > { %4367 = vmatpush3.bf16.msra.mxu1 %v4804_v60 }
 0x1d9   : > { %4368 = vmatprep.subr.bf16.mxu1 %v4808_v63 }
 0x1da   : > { %1152 = vmatpush1.bf16.msra.mxu0 %v4805_v61 }
 0x1db   : > { %1153 = vmatprep.subr.bf16.mxu0 %v4806_v62 }
 0x1dc   : > { %4369 = vmatpush3.bf16.msra.mxu1 %v4808_v63 }
 0x1dd   : > { %4370 = vmatprep.subr.bf16.mxu1 %v4812_v2 }
 0x1de   : > { %1154 = vmatpush1.bf16.msra.mxu0 %v4809_v0 }
 0x1df   : > { %1155 = vmatprep.subr.bf16.mxu0 %v4810_v1 }
 0x1e0   : > { %4371 = vmatpush3.bf16.msra.mxu1 %v4812_v2 }
 0x1e1   : > { %4372 = vmatprep.subr.bf16.mxu1 %v4816_v5 }
 0x1e2   : > { %1156 = vmatpush1.bf16.msra.mxu0 %v4813_v3 }
 0x1e3   : > { %1157 = vmatprep.subr.bf16.mxu0 %v4814_v4 }
 0x1e4   : > { %4373 = vmatpush3.bf16.msra.mxu1 %v4816_v5 }
 0x1e6   : > { %1158 = vmatpush1.bf16.msra.mxu0 %v4817_v6 }
 0x252   : > { %v863_v20 = vpop.xlane.xlu0 %862 }
 0x253   : > { %v867_v21 = vpop.xlane.xlu1 %866  ;;  %v879_v22 = vmul.f32 0.0078125, %v863_v20 }
 0x254   : > { %v881_v23 = vmul.f32 0.0078125, %v867_v21 }
 0x255   : > { %v6300_v24 = vsub.f32 %v852_v8, %v879_v22  ;;  %v4818_v8 = vld [vmem:[%s6242_s17 + $0xb0] ss:$12 sps:$4 sm:$0xff]  }
 0x256   : > { %v6302_v25 = vsub.f32 %v854_v9, %v881_v23  ;;  %v865_v26 = vpop.xlane.xlu0 %864  ;;  %4374 = vmatprep.subr.bf16.mxu1 %v4818_v8 }
 0x257   : > { %v869_v27 = vpop.xlane.xlu1 %868  ;;  %v880_v28 = vmul.f32 0.0078125, %v865_v26  ;;  %v895_v29 = vmul.f32 %v6300_v24, %v6300_v24  ;;  %4375 = vmatpush3.bf16.msra.mxu1 %v4818_v8 }
 0x258   : > { %v882_v30 = vmul.f32 0.0078125, %v869_v27  ;;  %v897_v31 = vmul.f32 %v6302_v25, %v6302_v25 }
 0x259   : > { %903 = vadd.xlane.f32.xlu0 %v895_v29  ;;  %v6308_v32 = vsub.f32 %v853_v10, %v880_v28 }
 0x25a   : > { %v6310_v33 = vsub.f32 %v855_v11, %v882_v30  ;;  %v871_v34 = vpop.xlane.xlu0 %870 }
 0x25b   : > { %v873_v35 = vpop.xlane.xlu1 %872  ;;  %v883_v36 = vmul.f32 0.0078125, %v871_v34  ;;  %v896_v37 = vmul.f32 %v6308_v32, %v6308_v32 }
 0x25c   : > { %v884_v38 = vmul.f32 0.0078125, %v873_v35  ;;  %v898_v39 = vmul.f32 %v6310_v33, %v6310_v33 }
 0x25d   : > { %907 = vadd.xlane.f32.xlu0 %v897_v31  ;;  %905 = vadd.xlane.f32.xlu1 %v896_v37  ;;  %v6316_v40 = vsub.f32 %v856_v12, %v883_v36 }
 0x25e   : > { %v6318_v41 = vsub.f32 %v857_v13, %v884_v38  ;;  %v875_v42 = vpop.xlane.xlu0 %874  ;;  %v4046_v38 = vld [vmem:[%s656_s14] ss:$0 sm:$0xff]  ;;  %s7429_s14 = scalar_lea.vmem [#allocation15], %s6231_s8  ;;  %s7430_s8 = sld [smem:[#allocation33_spill]] }
 0x25f   : > { %v877_v43 = vpop.xlane.xlu1 %876  ;;  %v885_v44 = vmul.f32 0.0078125, %v875_v42  ;;  %v899_v45 = vmul.f32 %v6316_v40, %v6316_v40 }
 0x260   : > { %v886_v46 = vmul.f32 0.0078125, %v877_v43  ;;  %v900_v47 = vmul.f32 %v6318_v41, %v6318_v41 }
 0x261   : > { %909 = vadd.xlane.f32.xlu1 %v898_v39  ;;  %911 = vadd.xlane.f32.xlu0 %v899_v45  ;;  %v6324_v48 = vsub.f32 %v858_v14, %v885_v44 }
 0x262   : > { %v6326_v49 = vsub.f32 %v859_v15, %v886_v46  ;;  %v4047_v46 = vld [vmem:[%s664_s5] ss:$0 sm:$0xff] }
 0x263   : > { %v901_v50 = vmul.f32 %v6324_v48, %v6324_v48 }
 0x264   : > { %v902_v51 = vmul.f32 %v6326_v49, %v6326_v49  ;;  %p4180_p7 = scmp.ne.s32.totalorder %s7430_s8, 1 }
 0x265   : > { %913 = vadd.xlane.f32.xlu1 %v900_v47  ;;  %915 = vadd.xlane.f32.xlu0 %v901_v50 }
 0x269   : > { %917 = vadd.xlane.f32.xlu1 %v902_v51 }
 0x2e6   : > { %v904_v9 = vpop.xlane.xlu0 %903 }
 0x2e7   : > { %v919_v10 = vmul.f32 0.0078125, %v904_v9 }
 0x2e9   : > { %v927_v11 = vadd.f32 1e-05, %v919_v10 }
 0x2ea   : > { %v906_v12 = vpop.xlane.xlu1 %905  ;;  %v908_v13 = vpop.xlane.xlu0 %907 }
 0x2eb   : > { %4907 = vrsqrt.f32 %v927_v11  ;;  %v920_v14 = vmul.f32 0.0078125, %v906_v12  ;;  %v921_v15 = vmul.f32 0.0078125, %v908_v13 }
 0x2ed   : > { %v928_v16 = vadd.f32 1e-05, %v920_v14  ;;  %v929_v17 = vadd.f32 1e-05, %v921_v15 }
 0x2ee   : > { %v910_v18 = vpop.xlane.xlu1 %909  ;;  %v912_v19 = vpop.xlane.xlu0 %911 }
 0x2ef   : > { %4909 = vrsqrt.f32 %v928_v16  ;;  %v922_v20 = vmul.f32 0.0078125, %v910_v18  ;;  %v923_v21 = vmul.f32 0.0078125, %v912_v19 }
 0x2f0   : > { %4911 = vrsqrt.f32 %v929_v17 }
 0x2f1   : > { %v930_v22 = vadd.f32 1e-05, %v922_v20  ;;  %v931_v23 = vadd.f32 1e-05, %v923_v21 }
 0x2f2   : > { %v914_v26 = vpop.xlane.xlu1 %913  ;;  %v916_v27 = vpop.xlane.xlu0 %915 }
 0x2f3   : > { %4913 = vrsqrt.f32 %v930_v22  ;;  %v924_v28 = vmul.f32 0.0078125, %v914_v26  ;;  %v925_v29 = vmul.f32 0.0078125, %v916_v27 }
 0x2f4   : > { %4915 = vrsqrt.f32 %v931_v23 }
 0x2f5   : > { %v4908_v30 = vpop.eup %4907  ;;  %v932_v31 = vadd.f32 1e-05, %v924_v28  ;;  %v933_v34 = vadd.f32 1e-05, %v925_v29 }
 0x2f6   : > { %v918_v35 = vpop.xlane.xlu1 %917  ;;  %v943_v36 = vmul.f32 %v4908_v30, %v6300_v24 }
 0x2f7   : > { %4917 = vrsqrt.f32 %v932_v31  ;;  %v926_v37 = vmul.f32 0.0078125, %v918_v35 }
 0x2f8   : > { %4919 = vrsqrt.f32 %v933_v34  ;;  %v957_v45 = vmul.f32 %v4046_v38, %v943_v36 }
 0x2f9   : > { %v4910_v39 = vpop.eup %4909  ;;  %v934_v42 = vadd.f32 1e-05, %v926_v37 }
 0x2fa   : > { %v4912_v43 = vpop.eup %4911  ;;  %v944_v44 = vmul.f32 %v4910_v39, %v6308_v32  ;;  %v971_v53 = vadd.f32 %v4047_v46, %v957_v45 }
 0x2fb   : > { %4921 = vrsqrt.f32 %v934_v42  ;;  %v945_v47 = vmul.f32 %v4912_v43, %v6302_v25 }
 0x2fc   : > { %v958_v50 = vmul.f32 %v4046_v38, %v944_v44 }
 0x2fd   : > { %v4914_v51 = vpop.eup %4913  ;;  %v959_v52 = vmul.f32 %v4046_v38, %v945_v47 }
 0x2fe   : > { %v4916_v24 = vpop.eup %4915  ;;  %v972_v54 = vadd.f32 %v4047_v46, %v958_v50  ;;  %v946_v55 = vmul.f32 %v4914_v51, %v6310_v33 }
 0x2ff   : > { %v947_v56 = vmul.f32 %v4916_v24, %v6316_v40  ;;  %v973_v32 = vadd.f32 %v4047_v46, %v959_v52 }
 0x300   : > { %v979_v57 = vpack.c.bf16 %v972_v54, %v971_v53  ;;  %v960_v58 = vmul.f32 %v4046_v38, %v946_v55 }
 0x301   : > { %v4918_v59 = vpop.eup %4917  ;;  %v961_v62 = vmul.f32 %v4046_v38, %v947_v56 }
 0x302   : > { %v4920_v60 = vpop.eup %4919  ;;  %1176 = vmatmul.mubr.bf16.vlgmr.msra.gmra.mrb[0].mxu0 %v979_v57  ;;  %4376 = vmatprep.mubr.bf16.mxu1 %v979_v57  ;;  %v974_v61 = vadd.f32 %v4047_v46, %v960_v58  ;;  %v948_v25 = vmul.f32 %v4918_v59, %v6318_v41 }
 0x303   : > { %1185 = vmatprep.mubr.bf16.mxu0 %v5603_v7  ;;  %v949_v63 = vmul.f32 %v4920_v60, %v6324_v48  ;;  %v975_v40 = vadd.f32 %v4047_v46, %v961_v62 }
 0x304   : > { %v980_v0 = vpack.c.bf16 %v974_v61, %v973_v32  ;;  %v962_v1 = vmul.f32 %v4046_v38, %v948_v25  ;;  %v1281_v25 = vlaneseq }
 0x305   : > { %v4922_v33 = vpop.eup %4921  ;;  %v963_v4 = vmul.f32 %v4046_v38, %v949_v63 }
 0x306   : > { %4377 = vmatmul.mubr.bf16.vlgmr.msra.gmra.mrb[0].mxu1 %v980_v0  ;;  %v976_v2 = vadd.f32 %v4047_v46, %v962_v1  ;;  %v950_v3 = vmul.f32 %v4922_v33, %v6326_v49  ;;  %v6424_v62 = vshrl.u32 %v1281_v25, 7  ;;  %v1291_v63 = vand.u32 127, %v1281_v25 }
 0x307   : > { %v977_v8 = vadd.f32 %v4047_v46, %v963_v4 }
 0x308   : > { %v981_v5 = vpack.c.bf16 %v976_v2, %v975_v40  ;;  %v964_v6 = vmul.f32 %v4046_v38, %v950_v3  ;;  %v1284_v1 = vadd.s32 16, %v6424_v62  ;;  %v1283_v33 = vadd.s32 8, %v6424_v62 }
 0x309   : > { %vm1292_vm1 = vcmp.le.s32.totalorder %v1291_v63, %v6424_v62  ;;  %v5604_v40 = vmov -1e+30  }
 0x30a   : > { %1186 = vmatmul.mubr.bf16.gmra.mrb[4].mxu0 %v980_v0  ;;  %4380 = vmatprep.mubr.bf16.mxu1 %v981_v5  ;;  %v978_v41 = vadd.f32 %v4047_v46, %v964_v6  ;;  %v1285_v0 = vadd.s32 24, %v6424_v62  ;;  %vm1294_vm3 = vcmp.le.s32.totalorder %v1291_v63, %v1284_v1  ;;  %v6430_v2 = vsel %vm1292_vm1, 0.0, %v5604_v40 }
 0x30b   : > { %1195 = vmatprep.mubr.bf16.mxu0 %v5603_v7  ;;  %vm1293_vm4 = vcmp.le.s32.totalorder %v1291_v63, %v1283_v33  ;;  %v6435_v6 = vsel %vm1294_vm3, 0.0, %v5604_v40 }
 0x30c   : > { %v982_v9 = vpack.c.bf16 %v978_v41, %v977_v8  ;;  %vm1295_vm2 = vcmp.le.s32.totalorder %v1291_v63, %v1285_v0  ;;  %v1289_v41 = vadd.s32 56, %v6424_v62 }
 0x30d   : > { %v6432_v4 = vsel %vm1295_vm2, 0.0, %v5604_v40 }
 0x30e   : > { %4381 = vmatmul.mubr.bf16.gmra.mrb[4].mxu1 %v982_v9  ;;  %vm1299_vm7 = vcmp.le.s32.totalorder %v1291_v63, %v1289_v41 }
 0x312   : > { %1196 = vmatmul.mubr.bf16.gmra.mrb[8].mxu0 %v981_v5  ;;  %v1286_v5 = vadd.s32 32, %v6424_v62 }
 0x313   : > { %1205 = vmatprep.mubr.bf16.mxu0 %v5603_v7 }
 0x314   : > { %vm1296_vm6 = vcmp.le.s32.totalorder %v1291_v63, %v1286_v5 }
 0x31a   : > { %1206 = vmatmul.mubr.bf16.gmra.mrb[12].mxu0 %v982_v9 }
 0x3d5   : > { %v1177_v48 = vpop.f32.mrb[0].mxu0 }
 0x3d6   : > { %v1179_v10 = vpop.f32.mrb[1].mxu0  ;;  %v1308_v12 = vmul.f32 0.17677669, %v1177_v48 }
 0x3d7   : > { %v1181_v11 = vpop.f32.mrb[2].mxu0 }
 0x3d8   : > { %v1309_v49 = vmul.f32 0.17677669, %v1181_v11  ;;  %v1183_v13 = vpop.f32.mrb[3].mxu0  ;;  %v1288_v11 = vadd.s32 48, %v6424_v62 }
 0x3d9   : > { %v6368_v14 = vpack.c.bf16 %v1183_v13, %v1179_v10  ;;  %v4378_v15 = vpop.f32.mrb[0].mxu1  ;;  %v6439_v10 = vsel %vm1293_vm4, 0.0, %v5604_v40  ;;  %v1287_v13 = vadd.s32 40, %v6424_v62 }
 0x3da   : > { %v6370_v16 = vpack.c.bf16 %v1309_v49, %v1308_v12  ;;  %v1250_v17 = vpop.f32.mrb[1].mxu1  ;;  %vm1298_vm8 = vcmp.le.s32.totalorder %v1291_v63, %v1288_v11 }
 0x3db   : > { %v4379_v18 = vpop.f32.mrb[2].mxu1  ;;  %4536 = vmatprep.subr.msk.bf16.mxu0 %vm1328_vm0, %v6368_v14  ;;  %v1342_v19 = vsel %vm1328_vm0, %v6368_v14, 0  ;;  %vm1297_vm9 = vcmp.le.s32.totalorder %v1291_v63, %v1287_v13 }
 0x3dc   : > { %v6376_v20 = vpack.c.bf16 %v4379_v18, %v4378_v15  ;;  %v1253_v21 = vpop.f32.mrb[3].mxu1  ;;  %4385 = vmatpush3.bf16.xpose.msra.mxu0 %v1342_v19  ;;  %4392 = vmatprep.mubr.msk.bf16.mxu0 %vm1328_vm0, %v6370_v16 }
 0x3dd   : > { %v6380_v22 = vpack.c.bf16 %v1253_v21, %v1250_v17  ;;  %v1187_v23 = vpop.f32.mrb[4].mxu0  ;;  %v6448_v21 = vsel %vm1296_vm6, 0.0, %v5604_v40 }
 0x3de   : > { %v1189_v26 = vpop.f32.mrb[5].mxu0  ;;  %v1310_v28 = vmul.f32 0.17677669, %v1187_v23 }
 0x3df   : > { %v1191_v27 = vpop.f32.mrb[6].mxu0  ;;  %4400 = vmatprep.subr.bf16.mxu1 %v6380_v22 }
 0x3e0   : > { %v1311_v29 = vmul.f32 0.17677669, %v1191_v27  ;;  %v1193_v30 = vpop.f32.mrb[7].mxu0  ;;  %4401 = vmatpush3.bf16.msra.mxu1 %v6380_v22  ;;  %v6451_v27 = vsel %vm1299_vm7, 0.0, %v5604_v40 }
 0x3e1   : > { %v6384_v31 = vpack.c.bf16 %v1193_v30, %v1189_v26  ;;  %v4382_v34 = vpop.f32.mrb[4].mxu1  ;;  %4402 = vmatprep.subr.bf16.mxu1 %v6376_v20 }
 0x3e2   : > { %v6387_v35 = vpack.c.bf16 %v1311_v29, %v1310_v28  ;;  %v1266_v36 = vpop.f32.mrb[5].mxu1  ;;  %v6453_v28 = vsel %vm1298_vm8, 0.0, %v5604_v40 }
 0x3e3   : > { %v4383_v37 = vpop.f32.mrb[6].mxu1  ;;  %4537 = vmatprep.subr.msk.bf16.mxu0 %vm1328_vm0, %v6384_v31  ;;  %v1345_v38 = vsel %vm1328_vm0, %v6384_v31, 0 }
 0x3e4   : > { %v6393_v39 = vpack.c.bf16 %v4383_v37, %v4382_v34  ;;  %v1269_v42 = vpop.f32.mrb[7].mxu1  ;;  %4387 = vmatpush3.bf16.xpose.msra.mxu0 %v1345_v38  ;;  %4403 = vmatpush3.bf16.msra.mxu1 %v6376_v20  ;;  %v6457_v37 = vsel %vm1297_vm9, 0.0, %v5604_v40 }
 0x3e5   : > { %v6396_v43 = vpack.c.bf16 %v1269_v42, %v1266_v36  ;;  %v1197_v44 = vpop.f32.mrb[8].mxu0 }
 0x3e6   : > { %v1199_v45 = vpop.f32.mrb[9].mxu0  ;;  %v1312_v47 = vmul.f32 0.17677669, %v1197_v44 }
 0x3e7   : > { %v1201_v46 = vpop.f32.mrb[10].mxu0  ;;  %4404 = vmatprep.subr.bf16.mxu1 %v6396_v43 }
 0x3e8   : > { %v1313_v50 = vmul.f32 0.17677669, %v1201_v46  ;;  %v1203_v51 = vpop.f32.mrb[11].mxu0  ;;  %4405 = vmatpush3.bf16.msra.mxu1 %v6396_v43 }
 0x3e9   : > { %v6400_v52 = vpack.c.bf16 %v1203_v51, %v1199_v45  ;;  %4406 = vmatprep.subr.bf16.mxu1 %v6393_v39 }
 0x3ea   : > { %v6403_v24 = vpack.c.bf16 %v1313_v50, %v1312_v47 }
 0x3eb   : > { %4538 = vmatprep.subr.msk.bf16.mxu0 %vm1328_vm0, %v6400_v52  ;;  %v1348_v53 = vsel %vm1328_vm0, %v6400_v52, 0 }
 0x3ec   : > { %4389 = vmatpush3.bf16.xpose.msra.mxu0 %v1348_v53  ;;  %4407 = vmatpush3.bf16.msra.mxu1 %v6393_v39 }
 0x3ed   : > { %v1207_v54 = vpop.f32.mrb[12].mxu0 }
 0x3ee   : > { %v1209_v55 = vpop.f32.mrb[13].mxu0  ;;  %v1314_v57 = vmul.f32 0.17677669, %v1207_v54 }
 0x3ef   : > { %v1211_v56 = vpop.f32.mrb[14].mxu0 }
 0x3f0   : > { %v1315_v58 = vmul.f32 0.17677669, %v1211_v56  ;;  %v1213_v59 = vpop.f32.mrb[15].mxu0 }
 0x3f1   : > { %v6410_v32 = vpack.c.bf16 %v1213_v59, %v1209_v55 }
 0x3f2   : > { %v6412_v60 = vpack.c.bf16 %v1315_v58, %v1314_v57 }
 0x3f3   : > { %4539 = vmatprep.subr.msk.bf16.mxu0 %vm1328_vm0, %v6410_v32  ;;  %v1351_v61 = vsel %vm1328_vm0, %v6410_v32, 0 }
 0x3f4   : > { %4391 = vmatpush3.bf16.xpose.msra.mxu0 %v1351_v61 }
 0x3fb   : > { %4393 = vmatmul.mubr.msk.bf16.vlgmr.msra.gmra.mrb[16].mxu0 %vm1328_vm0, %v6387_v35 }
 0x3fc   : > { %4396 = vmatprep.mubr.msk.bf16.mxu0 %vm1328_vm0, %v6403_v24 }
 0x403   : > { %4397 = vmatmul.mubr.msk.bf16.gmra.mrb[20].mxu0 %vm1328_vm0, %v6412_v60 }
 0x4ce   : > { %v4394_v3 = vpop.f32.mrb[16].mxu0 }
 0x4cf   : > { %v1387_v8 = vpop.f32.mrb[17].mxu0  ;;  %v1396_v15 = vadd.f32 %v4394_v3, %v6435_v6 }
 0x4d0   : > { %v1388_v9 = vadd.f32 %v1387_v8, %v6430_v2  ;;  %v4395_v48 = vpop.f32.mrb[18].mxu0 }
 0x4d1   : > { %v1399_v12 = vadd.f32 %v4395_v48, %v6432_v4  ;;  %v1390_v49 = vpop.f32.mrb[19].mxu0  ;;  %v1425_v26 = vsel %vm1418_vm5, %v1396_v15, -inf }
 0x4d2   : > { %v1419_v17 = vsel %vm1418_vm5, %v1388_v9, -inf  ;;  %v1391_v18 = vadd.f32 %v1390_v49, %v6439_v10 }
 0x4d3   : > { %1420 = vmax.xlane.f32.xlu0 %v1419_v17  ;;  %v1428_v19 = vsel %vm1418_vm5, %v1399_v12, -inf }
 0x4d4   : > { %1429 = vmax.xlane.f32.xlu1 %v1428_v19  ;;  %v1422_v30 = vsel %vm1418_vm5, %v1391_v18, -inf }
 0x4d6   : > { %v4398_v23 = vpop.f32.mrb[20].mxu0 }
 0x4d7   : > { %v1403_v29 = vpop.f32.mrb[21].mxu0  ;;  %1426 = vmax.xlane.f32.xlu0 %v1425_v26  ;;  %v1412_v44 = vadd.f32 %v4398_v23, %v6453_v28 }
 0x4d8   : > { %v1404_v34 = vadd.f32 %v1403_v29, %v6448_v21  ;;  %v4399_v36 = vpop.f32.mrb[22].mxu0  ;;  %1423 = vmax.xlane.f32.xlu1 %v1422_v30 }
 0x4d9   : > { %v1415_v38 = vadd.f32 %v4399_v36, %v6451_v27  ;;  %v1406_v42 = vpop.f32.mrb[23].mxu0  ;;  %v1437_v50 = vsel %vm1418_vm5, %v1412_v44, -inf }
 0x4da   : > { %v1431_v45 = vsel %vm1418_vm5, %v1404_v34, -inf  ;;  %v1407_v46 = vadd.f32 %v1406_v42, %v6457_v37 }
 0x4db   : > { %1432 = vmax.xlane.f32.xlu0 %v1431_v45  ;;  %v1440_v47 = vsel %vm1418_vm5, %v1415_v38, -inf }
 0x4dc   : > { %1441 = vmax.xlane.f32.xlu1 %v1440_v47  ;;  %v1434_v51 = vsel %vm1418_vm5, %v1407_v46, -inf }
 0x4df   : > { %1438 = vmax.xlane.f32.xlu0 %v1437_v50 }
 0x4e0   : > { %1435 = vmax.xlane.f32.xlu1 %v1434_v51 }
 0x4f1   : > { %1606 = vrot.lane.b32.xlu1 %v6384_v31, %s5605_s6 }
 0x4f5   : > { %1608 = vrot.lane.b32.xlu1 %v6400_v52, %s5605_s6 }
 0x560   : > { %v1421_v53 = vpop.xlane.xlu0 %1420 }
 0x561   : > { %v1430_v54 = vpop.xlane.xlu1 %1429  ;;  %v1443_v56 = vsub.f32 %v1388_v9, %v1421_v53 }
 0x562   : > { %v1446_v55 = vsub.f32 %v1399_v12, %v1430_v54 }
 0x563   : > { %v1451_v63 = vmul.f32 1.442695, %v1443_v56 }
 0x564   : > { %v1457_v57 = vmul.f32 1.442695, %v1446_v55  ;;  %v1427_v58 = vpop.xlane.xlu0 %1426 }
 0x565   : > { %v1445_v59 = vsub.f32 %v1396_v15, %v1427_v58  ;;  %v1424_v61 = vpop.xlane.xlu1 %1423 }
 0x566   : > { %4923 = vpow2.f32 %v1457_v57  ;;  %v1444_v25 = vsub.f32 %v1391_v18, %v1424_v61 }
 0x567   : > { %v1455_v0 = vmul.f32 1.442695, %v1445_v59 }
 0x568   : > { %v1453_v1 = vmul.f32 1.442695, %v1444_v25  ;;  %v1433_v11 = vpop.xlane.xlu0 %1432 }
 0x569   : > { %4925 = vpow2.f32 %v1455_v0  ;;  %v1442_v12 = vpop.xlane.xlu1 %1441  ;;  %v1447_v23 = vsub.f32 %v1404_v34, %v1433_v11 }
 0x56a   : > { %4927 = vpow2.f32 %v1453_v1  ;;  %v1450_v49 = vsub.f32 %v1415_v38, %v1442_v12 }
 0x56b   : > { %4929 = vpow2.f32 %v1451_v63  ;;  %v1459_v30 = vmul.f32 1.442695, %v1447_v23 }
 0x56c   : > { %v1439_v13 = vpop.xlane.xlu0 %1438  ;;  %v1465_v18 = vmul.f32 1.442695, %v1450_v49 }
 0x56d   : > { %v1436_v15 = vpop.xlane.xlu1 %1435  ;;  %v1449_v17 = vsub.f32 %v1412_v44, %v1439_v13 }
 0x56e   : > { %v1448_v19 = vsub.f32 %v1407_v46, %v1436_v15  ;;  %4931 = vpow2.f32 %v1465_v18 }
 0x56f   : > { %v1463_v26 = vmul.f32 1.442695, %v1449_v17 }
 0x570   : > { %v6470_v33 = vpop.eup %4923  ;;  %v1461_v29 = vmul.f32 1.442695, %v1448_v19 }
 0x571   : > { %v1476_v40 = vsel %vm1418_vm5, %v6470_v33, 0.0  ;;  %4933 = vpow2.f32 %v1463_v26  ;;  %v1607_v50 = vpop.permute.xlu1 %1606 }
 0x572   : > { %1477 = vadd.xlane.f32.xlu1 %v1476_v40  ;;  %4935 = vpow2.f32 %v1461_v29  ;;  %v1628_v49 = vsel %vm1328_vm0, %v1607_v50, 0 }
 0x573   : > { %v6474_v3 = vpop.eup %4925  ;;  %4937 = vpow2.f32 %v1459_v30 }
 0x574   : > { %v6476_v5 = vpop.eup %4927  ;;  %v1473_v8 = vsel %vm1418_vm5, %v6474_v3, 0.0 }
 0x575   : > { %v6480_v41 = vpop.eup %4929  ;;  %1474 = vadd.xlane.f32.xlu0 %v1473_v8  ;;  %v1470_v9 = vsel %vm1418_vm5, %v6476_v5, 0.0  ;;  %v1609_v51 = vpop.permute.xlu1 %1608 }
 0x576   : > { %1471 = vadd.xlane.f32.xlu1 %v1470_v9  ;;  %v1467_v48 = vsel %vm1418_vm5, %v6480_v41, 0.0 }
 0x578   : > { %v6490_v36 = vpop.eup %4931 }
 0x579   : > { %1468 = vadd.xlane.f32.xlu0 %v1467_v48  ;;  %v1488_v38 = vsel %vm1418_vm5, %v6490_v36, 0.0 }
 0x57b   : > { %v6492_v42 = vpop.eup %4933 }
 0x57c   : > { %v6496_v45 = vpop.eup %4935  ;;  %v1485_v34 = vsel %vm1418_vm5, %v6492_v42, 0.0 }
 0x57d   : > { %v6500_v44 = vpop.eup %4937  ;;  %v1482_v46 = vsel %vm1418_vm5, %v6496_v45, 0.0 }
 0x57e   : > { %v1479_v47 = vsel %vm1418_vm5, %v6500_v44, 0.0 }
 0x587   : > { %1894 = vrot.lane.b32.xlu1 %v6368_v14, %s5606_s7 }
 0x58f   : > { %1604 = vrot.lane.b32.xlu0 %v6368_v14, %s5605_s6 }
 0x5ab   : > { %1489 = vadd.xlane.f32.xlu1 %v1488_v38 }
 0x5ae   : > { %1486 = vadd.xlane.f32.xlu0 %v1485_v34 }
 0x5af   : > { %1483 = vadd.xlane.f32.xlu1 %v1482_v46 }
 0x5b2   : > { %1480 = vadd.xlane.f32.xlu0 %v1479_v47 }
 0x5c0   : > { %1896 = vrot.lane.b32.xlu1 %v6384_v31, %s5606_s7 }
 0x5c4   : > { %1594 = vrot.lane.b32.xlu1 %v6387_v35, %s5605_s6 }
 0x5c8   : > { %1596 = vrot.lane.b32.xlu1 %v6403_v24, %s5605_s6  ;;  %1610 = vrot.lane.b32.xlu0 %v6410_v32, %s5605_s6 }
 0x5cc   : > { %1900 = vrot.lane.b32.xlu1 %v6410_v32, %s5606_s7  ;;  %1592 = vrot.lane.b32.xlu0 %v6370_v16, %s5605_s6 }
 0x5d0   : > { %1888 = vrot.lane.b32.xlu1 %v6387_v35, %s5606_s7  ;;  %1898 = vrot.lane.b32.xlu0 %v6400_v52, %s5606_s7 }
 0x5d4   : > { %1892 = vrot.lane.b32.xlu1 %v6412_v60, %s5606_s7  ;;  %1598 = vrot.lane.b32.xlu0 %v6412_v60, %s5605_s6 }
 0x5d8   : > { %1886 = vrot.lane.b32.xlu0 %v6370_v16, %s5606_s7 }
 0x5dc   : > { %1890 = vrot.lane.b32.xlu0 %v6403_v24, %s5606_s7 }
 0x5ff   : > { %v1478_v53 = vpop.xlane.xlu1 %1477 }
 0x602   : > { %v1475_v54 = vpop.xlane.xlu0 %1474 }
 0x603   : > { %v1472_v55 = vpop.xlane.xlu1 %1471  ;;  %4939 = vrcp.f32 %v1475_v54 }
 0x604   : > { %4941 = vrcp.f32 %v1472_v55 }
 0x605   : > { %4943 = vrcp.f32 %v1478_v53 }
 0x606   : > { %v1469_v56 = vpop.xlane.xlu0 %1468 }
 0x607   : > { %4945 = vrcp.f32 %v1469_v56  ;;  %v1895_v57 = vpop.permute.xlu1 %1894 }
 0x608   : > { %4544 = vmatprep.subr.msk.bf16.mxu0 %vm1328_vm0, %v1895_v57  ;;  %v1915_v58 = vsel %vm1328_vm0, %v1895_v57, 0 }
 0x609   : > { %4449 = vmatpush3.bf16.xpose.msra.mxu0 %v1915_v58 }
 0x60a   : > { %v1605_v59 = vpop.permute.xlu0 %1604 }
 0x60b   : > { %4540 = vmatprep.subr.msk.bf16.mxu1 %vm1328_vm0, %v1605_v59  ;;  %v1625_v12 = vsel %vm1328_vm0, %v1605_v59, 0 }
 0x60d   : > { %v4940_v61 = vpop.eup %4939 }
 0x60e   : > { %v4942_v25 = vpop.eup %4941  ;;  %v1501_v1 = vmul.f32 %v4940_v61, %v6474_v3  ;;  %v1631_v3 = vsel %vm1328_vm0, %v1609_v51, 0 }
 0x60f   : > { %v4944_v63 = vpop.eup %4943  ;;  %v1500_v8 = vmul.f32 %v4942_v25, %v6476_v5 }
 0x610   : > { %v1502_v9 = vmul.f32 %v4944_v63, %v6470_v33 }
 0x611   : > { %v4946_v0 = vpop.eup %4945 }
 0x612   : > { %v1499_v40 = vmul.f32 %v4946_v0, %v6480_v41  ;;  %v1508_v11 = vpack.c.bf16 %v1502_v9, %v1501_v1 }
 0x614   : > { %v1507_v48 = vpack.c.bf16 %v1500_v8, %v1499_v40 }
 0x616   : > { %4408 = vmatprep.mubr.msk.bf16.mxu1 %vm1418_vm5, %v1507_v48 }
 0x617   : > { %4409 = vmatmul.mubr.msk.bf16.vlgmr.msra.gmra.mrb[8].mxu1 %vm1418_vm5, %v1508_v11 }
 0x618   : > { %4417 = vmatpush3.bf16.xpose.msra.mxu1 %v1625_v12 }
 0x619   : > { %4541 = vmatprep.subr.msk.bf16.mxu1 %vm1328_vm0, %v1607_v50 }
 0x620   : > { %4419 = vmatpush3.bf16.xpose.msra.mxu1 %v1628_v49 }
 0x621   : > { %4542 = vmatprep.subr.msk.bf16.mxu1 %vm1328_vm0, %v1609_v51 }
 0x628   : > { %4421 = vmatpush3.bf16.xpose.msra.mxu1 %v1631_v3 }
 0x638   : > { %v1490_v33 = vpop.xlane.xlu1 %1489 }
 0x63b   : > { %v1487_v5 = vpop.xlane.xlu0 %1486 }
 0x63c   : > { %v1484_v41 = vpop.xlane.xlu1 %1483  ;;  %4947 = vrcp.f32 %v1487_v5 }
 0x63d   : > { %4949 = vrcp.f32 %v1484_v41 }
 0x63e   : > { %4951 = vrcp.f32 %v1490_v33 }
 0x63f   : > { %v1481_v13 = vpop.xlane.xlu0 %1480 }
 0x640   : > { %4953 = vrcp.f32 %v1481_v13  ;;  %v1897_v15 = vpop.permute.xlu1 %1896 }
 0x641   : > { %4545 = vmatprep.subr.msk.bf16.mxu0 %vm1328_vm0, %v1897_v15  ;;  %v1918_v17 = vsel %vm1328_vm0, %v1897_v15, 0 }
 0x642   : > { %4451 = vmatpush3.bf16.xpose.msra.mxu0 %v1918_v17 }
 0x643   : > { %v1611_v18 = vpop.permute.xlu0 %1610 }
 0x644   : > { %v1595_v19 = vpop.permute.xlu1 %1594  ;;  %4543 = vmatprep.subr.msk.bf16.mxu1 %vm1328_vm0, %v1611_v18  ;;  %v1634_v23 = vsel %vm1328_vm0, %v1611_v18, 0 }
 0x645   : > { %4423 = vmatpush3.bf16.xpose.msra.mxu1 %v1634_v23 }
 0x646   : > { %v4948_v26 = vpop.eup %4947 }
 0x647   : > { %v1593_v29 = vpop.permute.xlu0 %1592  ;;  %v4950_v30 = vpop.eup %4949  ;;  %v1505_v47 = vmul.f32 %v4948_v26, %v6492_v42 }
 0x648   : > { %v1597_v38 = vpop.permute.xlu1 %1596  ;;  %v4952_v34 = vpop.eup %4951  ;;  %v1504_v53 = vmul.f32 %v4950_v30, %v6496_v45 }
 0x649   : > { %v1506_v56 = vmul.f32 %v4952_v34, %v6490_v36 }
 0x64a   : > { %v4954_v46 = vpop.eup %4953 }
 0x64b   : > { %v1899_v50 = vpop.permute.xlu0 %1898  ;;  %v1503_v51 = vmul.f32 %v4954_v46, %v6500_v44  ;;  %v1510_v58 = vpack.c.bf16 %v1506_v56, %v1505_v47 }
 0x64c   : > { %v1901_v54 = vpop.permute.xlu1 %1900  ;;  %4546 = vmatprep.subr.msk.bf16.mxu0 %vm1328_vm0, %v1899_v50  ;;  %v1921_v55 = vsel %vm1328_vm0, %v1899_v50, 0 }
 0x64d   : > { %4453 = vmatpush3.bf16.xpose.msra.mxu0 %v1921_v55  ;;  %v1509_v57 = vpack.c.bf16 %v1504_v53, %v1503_v51  ;;  %v1924_v44 = vsel %vm1328_vm0, %v1901_v54, 0 }
 0x64e   : > { %4547 = vmatprep.subr.msk.bf16.mxu0 %vm1328_vm0, %v1901_v54 }
 0x64f   : > { %4412 = vmatprep.mubr.msk.bf16.mxu1 %vm1418_vm5, %v1509_v57  ;;  %v1599_v42 = vpop.permute.xlu0 %1598 }
 0x650   : > { %4413 = vmatmul.mubr.msk.bf16.gmra.mrb[12].mxu1 %vm1418_vm5, %v1510_v58  ;;  %v1889_v36 = vpop.permute.xlu1 %1888 }
 0x651   : > { %4424 = vmatprep.mubr.msk.bf16.mxu1 %vm1328_vm0, %v1593_v29 }
 0x653   : > { %v1887_v45 = vpop.permute.xlu0 %1886 }
 0x654   : > { %4456 = vmatprep.mubr.msk.bf16.mxu0 %vm1328_vm0, %v1887_v45  ;;  %v1893_v61 = vpop.permute.xlu1 %1892 }
 0x655   : > { %4455 = vmatpush3.bf16.xpose.msra.mxu0 %v1924_v44 }
 0x657   : > { %v1891_v59 = vpop.permute.xlu0 %1890 }
 0x658   : > { %4425 = vmatmul.mubr.msk.bf16.vlgmr.msra.gmra.mrb[16].mxu1 %vm1328_vm0, %v1595_v19 }
 0x659   : > { %4428 = vmatprep.mubr.msk.bf16.mxu1 %vm1328_vm0, %v1597_v38 }
 0x65c   : > { %4457 = vmatmul.mubr.msk.bf16.vlgmr.msra.gmra.mrb[24].mxu0 %vm1328_vm0, %v1889_v36 }
 0x65d   : > { %4460 = vmatprep.mubr.msk.bf16.mxu0 %vm1328_vm0, %v1891_v59 }
 0x660   : > { %4429 = vmatmul.mubr.msk.bf16.gmra.mrb[20].mxu1 %vm1328_vm0, %v1599_v42 }
 0x664   : > { %4461 = vmatmul.mubr.msk.bf16.gmra.mrb[28].mxu0 %vm1328_vm0, %v1893_v61 }
 0x6ea   : > { %v6566_v25 = vpop.f32.mrb[8].mxu1 }
 0x6eb   : > { %v6568_v63 = vpop.f32.mrb[9].mxu1 }
 0x6ec   : > { %v6570_v0 = vpop.f32.mrb[10].mxu1 }
 0x6ed   : > { %v6572_v1 = vpop.f32.mrb[11].mxu1 }
 0x723   : > { %v6574_v40 = vpop.f32.mrb[12].mxu1 }
 0x724   : > { %v6576_v8 = vpop.f32.mrb[13].mxu1 }
 0x725   : > { %v6578_v9 = vpop.f32.mrb[14].mxu1 }
 0x726   : > { %v6580_v48 = vpop.f32.mrb[15].mxu1 }
 0x72b   : > { %v4426_v11 = vpop.f32.mrb[16].mxu1 }
 0x72c   : > { %v1670_v12 = vpop.f32.mrb[17].mxu1  ;;  %v1679_v59 = vadd.f32 %v4426_v11, %v6435_v6 }
 0x72d   : > { %v4427_v49 = vpop.f32.mrb[18].mxu1 }
 0x72e   : > { %v1673_v3 = vpop.f32.mrb[19].mxu1 }
 0x72f   : > { %v4458_v33 = vpop.f32.mrb[24].mxu0  ;;  %v6623_v61 = vadd.f32 %v1673_v3, %v6439_v10 }
 0x730   : > { %v1960_v5 = vpop.f32.mrb[25].mxu0  ;;  %v6584_v17 = vadd.f32 %v4458_v33, %v6435_v6  ;;  %v6626_v33 = vadd.f32 %v1670_v12, %v6430_v2 }
 0x731   : > { %v1961_v41 = vadd.f32 %v1960_v5, %v6430_v2  ;;  %v4459_v13 = vpop.f32.mrb[26].mxu0  ;;  %v1707_v5 = vsel %vm1418_vm5, %v1679_v59, -inf }
 0x732   : > { %v1963_v15 = vpop.f32.mrb[27].mxu0  ;;  %v1972_v29 = vadd.f32 %v4459_v13, %v6432_v4  ;;  %v1997_v47 = vsel %vm1418_vm5, %v6584_v17, -inf  ;;  %v1704_v13 = vsel %vm1418_vm5, %v6623_v61, -inf }
 0x733   : > { %v1964_v18 = vadd.f32 %v1963_v15, %v6439_v10  ;;  %v4430_v19 = vpop.f32.mrb[20].mxu1  ;;  %v1991_v23 = vsel %vm1418_vm5, %v1961_v41, -inf  ;;  %v6632_v15 = vadd.f32 %v4427_v49, %v6432_v4 }
 0x734   : > { %v1686_v26 = vpop.f32.mrb[21].mxu1  ;;  %1992 = vmax.xlane.f32.xlu0 %v1991_v23  ;;  %v2000_v54 = vsel %vm1418_vm5, %v1972_v29, -inf  ;;  %v1701_v23 = vsel %vm1418_vm5, %v6626_v33, -inf  ;;  %v6637_v11 = vadd.f32 %v4430_v19, %v6453_v28 }
 0x735   : > { %v6589_v30 = vpop.f32.mrb[22].mxu1  ;;  %v1994_v38 = vsel %vm1418_vm5, %v1964_v18, -inf  ;;  %v1710_v12 = vsel %vm1418_vm5, %v6632_v15, -inf  ;;  %v6642_v3 = vadd.f32 %v1686_v26, %v6448_v21 }
 0x736   : > { %v6592_v34 = vpop.f32.mrb[23].mxu1  ;;  %1995 = vmax.xlane.f32.xlu1 %v1994_v38  ;;  %v1719_v38 = vsel %vm1418_vm5, %v6637_v11, -inf }
 0x737   : > { %v4462_v46 = vpop.f32.mrb[28].mxu0  ;;  %v1713_v49 = vsel %vm1418_vm5, %v6642_v3, -inf }
 0x738   : > { %1998 = vmax.xlane.f32.xlu0 %v1997_v47  ;;  %v1976_v50 = vpop.f32.mrb[29].mxu0  ;;  %v6601_v56 = vadd.f32 %v4462_v46, %v6453_v28 }
 0x739   : > { %v6597_v51 = vadd.f32 %v1976_v50, %v6448_v21  ;;  %v4463_v53 = vpop.f32.mrb[30].mxu0 }
 0x73a   : > { %2001 = vmax.xlane.f32.xlu1 %v2000_v54  ;;  %v1979_v55 = vpop.f32.mrb[31].mxu0  ;;  %v6609_v42 = vadd.f32 %v4463_v53, %v6451_v27  ;;  %v2009_v44 = vsel %vm1418_vm5, %v6601_v56, -inf }
 0x73b   : > { %v6604_v57 = vadd.f32 %v1979_v55, %v6457_v37  ;;  %v2003_v58 = vsel %vm1418_vm5, %v6597_v51, -inf }
 0x73c   : > { %2004 = vmax.xlane.f32.xlu0 %v2003_v58  ;;  %v2012_v36 = vsel %vm1418_vm5, %v6609_v42, -inf }
 0x73d   : > { %v2006_v45 = vsel %vm1418_vm5, %v6604_v57, -inf }
 0x73e   : > { %2007 = vmax.xlane.f32.xlu1 %v2006_v45 }
 0x740   : > { %2010 = vmax.xlane.f32.xlu0 %v2009_v44 }
 0x742   : > { %2013 = vmax.xlane.f32.xlu1 %v2012_v36 }
 0x753   : > { %1799 = vrot.lane.b32.xlu1 %v6376_v20, %s5605_s6 }
 0x756   : > { %1797 = vrot.lane.b32.xlu0 %v6380_v22, %s5605_s6 }
 0x775   : > { %1708 = vmax.xlane.f32.xlu0 %v1707_v5 }
 0x777   : > { %1705 = vmax.xlane.f32.xlu1 %v1704_v13 }
 0x779   : > { %1702 = vmax.xlane.f32.xlu0 %v1701_v23 }
 0x77d   : > { %1711 = vmax.xlane.f32.xlu0 %v1710_v12 }
 0x781   : > { %1720 = vmax.xlane.f32.xlu0 %v1719_v38 }
 0x785   : > { %1714 = vmax.xlane.f32.xlu0 %v1713_v49 }
 0x79b   : > { %1801 = vrot.lane.b32.xlu0 %v6396_v43, %s5605_s6 }
 0x7c1   : > { %v1993_v19 = vpop.xlane.xlu0 %1992 }
 0x7c2   : > { %v2015_v46 = vsub.f32 %v1961_v41, %v1993_v19 }
 0x7c3   : > { %v1996_v47 = vpop.xlane.xlu1 %1995 }
 0x7c4   : > { %v2023_v50 = vmul.f32 1.442695, %v2015_v46  ;;  %v2016_v53 = vsub.f32 %v1964_v18, %v1996_v47 }
 0x7c5   : > { %v1999_v54 = vpop.xlane.xlu0 %1998 }
 0x7c6   : > { %4955 = vpow2.f32 %v2023_v50  ;;  %v2025_v26 = vmul.f32 1.442695, %v2016_v53  ;;  %v2017_v55 = vsub.f32 %v6584_v17, %v1999_v54  ;;  %v6679_v53 = vadd.f32 %v6589_v30, %v6451_v27 }
 0x7c7   : > { %v2002_v58 = vpop.xlane.xlu1 %2001 }
 0x7c8   : > { %4957 = vpow2.f32 %v2025_v26  ;;  %v2027_v45 = vmul.f32 1.442695, %v2017_v55  ;;  %v2018_v44 = vsub.f32 %v1972_v29, %v2002_v58  ;;  %v6683_v58 = vadd.f32 %v6592_v34, %v6457_v37 }
 0x7c9   : > { %v6651_v36 = vpop.xlane.xlu0 %2004 }
 0x7ca   : > { %4959 = vpow2.f32 %v2027_v45  ;;  %v2029_v5 = vmul.f32 1.442695, %v2018_v44  ;;  %v1722_v44 = vsel %vm1418_vm5, %v6679_v53, -inf  ;;  %v1716_v30 = vsel %vm1418_vm5, %v6683_v58, -inf }
 0x7cb   : > { %v6653_v13 = vpop.xlane.xlu1 %2007 }
 0x7cc   : > { %4961 = vpow2.f32 %v2029_v5 }
 0x7cd   : > { %v6655_v23 = vpop.xlane.xlu0 %2010 }
 0x7cf   : > { %v6657_v41 = vpop.xlane.xlu1 %2013 }
 0x7d0   : > { %v6659_v18 = vpop.eup %4955 }
 0x7d1   : > { %v1798_v12 = vpop.permute.xlu0 %1797  ;;  %v2039_v17 = vsel %vm1418_vm5, %v6659_v18, 0.0 }
 0x7d2   : > { %v6663_v38 = vpop.eup %4957  ;;  %2040 = vadd.xlane.f32.xlu1 %v2039_v17  ;;  %4432 = vmatprep.subr.bf16.mxu1 %v1798_v12 }
 0x7d3   : > { %v1800_v29 = vpop.permute.xlu1 %1799  ;;  %4433 = vmatpush3.bf16.msra.mxu1 %v1798_v12  ;;  %v2042_v49 = vsel %vm1418_vm5, %v6663_v38, 0.0 }
 0x7d4   : > { %v6667_v19 = vpop.eup %4959  ;;  %2043 = vadd.xlane.f32.xlu0 %v2042_v49  ;;  %4434 = vmatprep.subr.bf16.mxu1 %v1800_v29 }
 0x7d5   : > { %v2045_v46 = vsel %vm1418_vm5, %v6667_v19, 0.0 }
 0x7d6   : > { %v6671_v47 = vpop.eup %4961 }
 0x7d7   : > { %4435 = vmatpush3.bf16.msra.mxu1 %v1800_v29  ;;  %v2048_v50 = vsel %vm1418_vm5, %v6671_v47, 0.0 }
 0x7d8   : > { %2046 = vadd.xlane.f32.xlu0 %v2045_v46 }
 0x7dc   : > { %2049 = vadd.xlane.f32.xlu0 %v2048_v50 }
 0x7e3   : > { %1803 = vrot.lane.b32.xlu1 %v6393_v39, %s5605_s6 }
 0x802   : > { %v1709_v54 = vpop.xlane.xlu0 %1708 }
 0x803   : > { %v1727_v26 = vsub.f32 %v1679_v59, %v1709_v54 }
 0x805   : > { %v1737_v55 = vmul.f32 1.442695, %v1727_v26  ;;  %v1706_v26 = vpop.xlane.xlu1 %1705 }
 0x806   : > { %v1703_v45 = vpop.xlane.xlu0 %1702 }
 0x807   : > { %4963 = vpow2.f32 %v1737_v55  ;;  %v1725_v5 = vsub.f32 %v6626_v33, %v1703_v45  ;;  %1723 = vmax.xlane.f32.xlu1 %v1722_v44  ;;  %v1726_v55 = vsub.f32 %v6623_v61, %v1706_v26 }
 0x809   : > { %v1733_v12 = vmul.f32 1.442695, %v1725_v5  ;;  %v1735_v5 = vmul.f32 1.442695, %v1726_v55 }
 0x80a   : > { %v1712_v17 = vpop.xlane.xlu0 %1711 }
 0x80b   : > { %4965 = vpow2.f32 %v1733_v12  ;;  %1717 = vmax.xlane.f32.xlu1 %v1716_v30  ;;  %v1728_v54 = vsub.f32 %v6632_v15, %v1712_v17  ;;  %v2021_v15 = vsub.f32 %v6601_v56, %v6655_v23  ;;  %v2022_v17 = vsub.f32 %v6609_v42, %v6657_v41 }
 0x80d   : > { %v1739_v45 = vmul.f32 1.442695, %v1728_v54 }
 0x80e   : > { %v1721_v59 = vpop.xlane.xlu0 %1720 }
 0x80f   : > { %v1731_v44 = vsub.f32 %v6637_v11, %v1721_v59  ;;  %4967 = vpow2.f32 %v1739_v45  ;;  %v2035_v11 = vmul.f32 1.442695, %v2021_v15 }
 0x810   : > { %4969 = vpow2.f32 %v1735_v5 }
 0x811   : > { %v6690_v29 = vpop.eup %4963  ;;  %v1745_v30 = vmul.f32 1.442695, %v1731_v44 }
 0x812   : > { %v1715_v34 = vpop.xlane.xlu0 %1714  ;;  %v1755_v49 = vsel %vm1418_vm5, %v6690_v29, 0.0 }
 0x813   : > { %1756 = vadd.xlane.f32.xlu0 %v1755_v49  ;;  %v1729_v12 = vsub.f32 %v6642_v3, %v1715_v34  ;;  %v2019_v49 = vsub.f32 %v6597_v51, %v6651_v36  ;;  %4971 = vpow2.f32 %v1745_v30  ;;  %v2037_v51 = vmul.f32 1.442695, %v2022_v17 }
 0x815   : > { %v6694_v46 = vpop.eup %4965 }
 0x816   : > { %v1802_v50 = vpop.permute.xlu0 %1801  ;;  %v1749_v33 = vsel %vm1418_vm5, %v6694_v46, 0.0 }
 0x817   : > { %1750 = vadd.xlane.f32.xlu0 %v1749_v33  ;;  %4436 = vmatprep.subr.bf16.mxu1 %v1802_v50  ;;  %v2031_v33 = vmul.f32 1.442695, %v2019_v49 }
 0x818   : > { %4437 = vmatpush3.bf16.msra.mxu1 %v1802_v50  ;;  %v1741_v50 = vmul.f32 1.442695, %v1729_v12 }
 0x819   : > { %v6712_v61 = vpop.eup %4967 }
 0x81a   : > { %4973 = vpow2.f32 %v1741_v50  ;;  %v1758_v3 = vsel %vm1418_vm5, %v6712_v61, 0.0  ;;  %v6718_v59 = vpop.eup %4969 }
 0x81b   : > { %4975 = vpow2.f32 %v2031_v33  ;;  %v1752_v56 = vsel %vm1418_vm5, %v6718_v59, 0.0 }
 0x81c   : > { %2085 = vrot.lane.b32.xlu1 %v6376_v20, %s5606_s7  ;;  %4977 = vpow2.f32 %v2035_v11 }
 0x81d   : > { %v6720_v36 = vpop.eup %4971  ;;  %4979 = vpow2.f32 %v2037_v51 }
 0x81e   : > { %v1767_v42 = vsel %vm1418_vm5, %v6720_v36, 0.0 }
 0x820   : > { %2087 = vrot.lane.b32.xlu1 %v6396_v43, %s5606_s7 }
 0x824   : > { %v6724_v23 = vpop.eup %4973 }
 0x825   : > { %v1761_v41 = vsel %vm1418_vm5, %v6724_v23, 0.0  ;;  %v6730_v34 = vpop.eup %4975 }
 0x826   : > { %v2051_v54 = vsel %vm1418_vm5, %v6730_v34, 0.0  ;;  %v6734_v26 = vpop.eup %4977 }
 0x827   : > { %v2057_v55 = vsel %vm1418_vm5, %v6734_v26, 0.0  ;;  %v6738_v45 = vpop.eup %4979 }
 0x828   : > { %v2060_v44 = vsel %vm1418_vm5, %v6738_v45, 0.0 }
 0x82d   : > { %2083 = vrot.lane.b32.xlu0 %v6380_v22, %s5606_s7 }
 0x844   : > { %1759 = vadd.xlane.f32.xlu1 %v1758_v3 }
 0x848   : > { %1753 = vadd.xlane.f32.xlu1 %v1752_v56 }
 0x84c   : > { %1768 = vadd.xlane.f32.xlu1 %v1767_v42  ;;  %1762 = vadd.xlane.f32.xlu0 %v1761_v41 }
 0x850   : > { %2052 = vadd.xlane.f32.xlu0 %v2051_v54 }
 0x854   : > { %2058 = vadd.xlane.f32.xlu0 %v2057_v55 }
 0x858   : > { %2061 = vadd.xlane.f32.xlu0 %v2060_v44 }
 0x85f   : > { %v2041_v5 = vpop.xlane.xlu1 %2040 }
 0x860   : > { %4981 = vrcp.f32 %v2041_v5 }
 0x861   : > { %v2044_v12 = vpop.xlane.xlu0 %2043 }
 0x862   : > { %4983 = vrcp.f32 %v2044_v12 }
 0x863   : > { %v1804_v30 = vpop.permute.xlu1 %1803 }
 0x864   : > { %4438 = vmatprep.subr.bf16.mxu1 %v1804_v30 }
 0x865   : > { %4439 = vmatpush3.bf16.msra.mxu1 %v1804_v30  ;;  %v2047_v49 = vpop.xlane.xlu0 %2046 }
 0x866   : > { %4985 = vrcp.f32 %v2047_v49  ;;  %v2020_v49 = vsub.f32 %v6604_v57, %v6653_v13 }
 0x869   : > { %v2050_v50 = vpop.xlane.xlu0 %2049 }
 0x86a   : > { %v4982_v33 = vpop.eup %4981  ;;  %4987 = vrcp.f32 %v2050_v50  ;;  %v2033_v50 = vmul.f32 1.442695, %v2020_v49 }
 0x86b   : > { %v6743_v11 = vmul.f32 %v4982_v33, %v6659_v18 }
 0x86c   : > { %v4984_v15 = vpop.eup %4983 }
 0x86d   : > { %v6746_v17 = vmul.f32 %v4984_v15, %v6663_v38 }
 0x86e   : > { %2180 = vrot.lane.b32.xlu0 %v6368_v14, %s5607_s26 }
 0x86f   : > { %v2079_v3 = vpack.c.bf16 %v6746_v17, %v6743_v11 }
 0x870   : > { %v4986_v51 = vpop.eup %4985 }
 0x871   : > { %v6755_v42 = vmul.f32 %v4986_v51, %v6667_v19 }
 0x872   : > { %2172 = vrot.lane.b32.xlu0 %v6370_v16, %s5607_s26 }
 0x874   : > { %v4988_v56 = vpop.eup %4987 }
 0x875   : > { %v6758_v18 = vmul.f32 %v4988_v56, %v6671_v47 }
 0x876   : > { %2176 = vrot.lane.b32.xlu0 %v6403_v24, %s5607_s26 }
 0x877   : > { %v2080_v14 = vpack.c.bf16 %v6758_v18, %v6755_v42 }
 0x894   : > { %v1724_v38 = vpop.xlane.xlu1 %1723 }
 0x895   : > { %v1732_v41 = vsub.f32 %v6679_v53, %v1724_v38 }
 0x897   : > { %v1747_v54 = vmul.f32 1.442695, %v1732_v41 }
 0x898   : > { %v1718_v55 = vpop.xlane.xlu1 %1717 }
 0x899   : > { %4989 = vpow2.f32 %v1747_v54  ;;  %v1730_v16 = vsub.f32 %v6683_v58, %v1718_v55 }
 0x89b   : > { %v1743_v44 = vmul.f32 1.442695, %v1730_v16 }
 0x89c   : > { %v2086_v58 = vpop.permute.xlu1 %2085 }
 0x89d   : > { %4991 = vpow2.f32 %v1743_v44 }
 0x89e   : > { %4993 = vpow2.f32 %v2033_v50 }
 0x8a0   : > { %v1757_v19 = vpop.xlane.xlu0 %1756  ;;  %v2088_v33 = vpop.permute.xlu1 %2087 }
 0x8a3   : > { %v6766_v5 = vpop.eup %4989 }
 0x8a4   : > { %v1751_v47 = vpop.xlane.xlu0 %1750  ;;  %v1770_v24 = vsel %vm1418_vm5, %v6766_v5, 0.0 }
 0x8a5   : > { %1771 = vadd.xlane.f32.xlu1 %v1770_v24 }
 0x8a7   : > { %v6770_v12 = vpop.eup %4991 }
 0x8a8   : > { %v2084_v30 = vpop.permute.xlu0 %2083  ;;  %v1764_v53 = vsel %vm1418_vm5, %v6770_v12, 0.0  ;;  %v6778_v56 = vpop.eup %4993 }
 0x8a9   : > { %1765 = vadd.xlane.f32.xlu1 %v1764_v53  ;;  %4464 = vmatprep.subr.bf16.mxu1 %v2084_v30  ;;  %v2054_v41 = vsel %vm1418_vm5, %v6778_v56, 0.0 }
 0x8ba   : > { %2089 = vrot.lane.b32.xlu1 %v6393_v39, %s5606_s7 }
 0x8d1   : > { %v1760_v15 = vpop.xlane.xlu1 %1759 }
 0x8d2   : > { %4995 = vrcp.f32 %v1760_v15 }
 0x8d3   : > { %4997 = vrcp.f32 %v1751_v47 }
 0x8d4   : > { %4999 = vrcp.f32 %v1757_v19 }
 0x8d5   : > { %v1754_v51 = vpop.xlane.xlu1 %1753 }
 0x8d6   : > { %5001 = vrcp.f32 %v1754_v51 }
 0x8dc   : > { %v4996_v38 = vpop.eup %4995 }
 0x8dd   : > { %v4998_v54 = vpop.eup %4997  ;;  %v1784_v57 = vmul.f32 %v4996_v38, %v6712_v61  ;;  %v1769_v61 = vpop.xlane.xlu1 %1768 }
 0x8de   : > { %2055 = vadd.xlane.f32.xlu1 %v2054_v41  ;;  %v5000_v55 = vpop.eup %4999  ;;  %v1781_v13 = vmul.f32 %v4998_v54, %v6694_v46 }
 0x8df   : > { %v1783_v19 = vmul.f32 %v5000_v55, %v6690_v29  ;;  %v1763_v29 = vpop.xlane.xlu0 %1762 }
 0x8e0   : > { %v5002_v16 = vpop.eup %5001 }
 0x8e1   : > { %v1782_v44 = vmul.f32 %v5002_v16, %v6718_v59  ;;  %v1790_v24 = vpack.c.bf16 %v1784_v57, %v1783_v19 }
 0x8e3   : > { %v1789_v47 = vpack.c.bf16 %v1782_v44, %v1781_v13  ;;  %v2053_v46 = vpop.xlane.xlu0 %2052 }
 0x8e5   : > { %4440 = vmatprep.mubr.msk.bf16.mxu1 %vm1418_vm5, %v1789_v47 }
 0x8e6   : > { %4441 = vmatmul.mubr.msk.bf16.vlgmr.msra.gmra.mrb[24].mxu1 %vm1418_vm5, %v1790_v24 }
 0x8e7   : > { %4465 = vmatpush3.bf16.msra.mxu1 %v2084_v30  ;;  %v2059_v59 = vpop.xlane.xlu0 %2058 }
 0x8e8   : > { %4466 = vmatprep.subr.bf16.mxu1 %v2086_v58 }
 0x8eb   : > { %4467 = vmatpush3.bf16.msra.mxu1 %v2086_v58 }
 0x8ec   : > { %4468 = vmatprep.subr.bf16.mxu1 %v2088_v33 }
 0x8ef   : > { %4469 = vmatpush3.bf16.msra.mxu1 %v2088_v33  ;;  %2182 = vrot.lane.b32.xlu1 %v6384_v31, %s5607_s26  ;;  %v2062_v31 = vpop.xlane.xlu0 %2061 }
 0x8f3   : > { %2184 = vrot.lane.b32.xlu1 %v6400_v52, %s5607_s26 }
 0x8f7   : > { %2186 = vrot.lane.b32.xlu1 %v6410_v32, %s5607_s26  ;;  %v2181_v32 = vpop.permute.xlu0 %2180 }
 0x8f8   : > { %v2201_v54 = vsel %vm1328_vm0, %v2181_v32, 0 }
 0x8fb   : > { %2174 = vrot.lane.b32.xlu1 %v6387_v35, %s5607_s26  ;;  %v2173_v47 = vpop.permute.xlu0 %2172 }
 0x8ff   : > { %2178 = vrot.lane.b32.xlu1 %v6412_v60, %s5607_s26 }
 0x932   : > { %v1772_v30 = vpop.xlane.xlu1 %1771 }
 0x933   : > { %5003 = vrcp.f32 %v1772_v30 }
 0x934   : > { %5005 = vrcp.f32 %v1763_v29 }
 0x935   : > { %5007 = vrcp.f32 %v1769_v61 }
 0x936   : > { %v1766_v53 = vpop.xlane.xlu1 %1765 }
 0x937   : > { %5009 = vrcp.f32 %v1766_v53 }
 0x938   : > { %5011 = vrcp.f32 %v2062_v31 }
 0x939   : > { %5013 = vrcp.f32 %v2053_v46 }
 0x93a   : > { %v2090_v52 = vpop.permute.xlu1 %2089  ;;  %5015 = vrcp.f32 %v2059_v59 }
 0x93b   : > { %4470 = vmatprep.subr.bf16.mxu1 %v2090_v52 }
 0x93c   : > { %4471 = vmatpush3.bf16.msra.mxu1 %v2090_v52 }
 0x93d   : > { %4548 = vmatprep.subr.msk.bf16.mxu1 %vm1328_vm0, %v2181_v32  ;;  %v5004_v35 = vpop.eup %5003 }
 0x93e   : > { %v5006_v58 = vpop.eup %5005  ;;  %v1788_v50 = vmul.f32 %v5004_v35, %v6766_v5 }
 0x93f   : > { %v5008_v60 = vpop.eup %5007  ;;  %v1785_v33 = vmul.f32 %v5006_v58, %v6724_v23 }
 0x940   : > { %v1787_v51 = vmul.f32 %v5008_v60, %v6720_v36 }
 0x941   : > { %v5010_v49 = vpop.eup %5009 }
 0x942   : > { %v1786_v15 = vmul.f32 %v5010_v49, %v6770_v12  ;;  %v1792_v41 = vpack.c.bf16 %v1788_v50, %v1787_v51  ;;  %v5012_v11 = vpop.eup %5011 }
 0x944   : > { %v1791_v38 = vpack.c.bf16 %v1786_v15, %v1785_v33 }
 0x946   : > { %4444 = vmatprep.mubr.msk.bf16.mxu1 %vm1418_vm5, %v1791_v38 }
 0x947   : > { %4445 = vmatmul.mubr.msk.bf16.gmra.mrb[28].mxu1 %vm1418_vm5, %v1792_v41 }
 0x948   : > { %4472 = vmatprep.mubr.msk.bf16.mxu1 %vm1418_vm5, %v2079_v3  ;;  %v5014_v3 = vpop.eup %5013 }
 0x949   : > { %v5016_v42 = vpop.eup %5015  ;;  %v2075_v12 = vmul.f32 %v5014_v3, %v6730_v34 }
 0x94a   : > { %v2077_v57 = vmul.f32 %v5016_v42, %v6734_v26 }
 0x94f   : > { %4473 = vmatmul.mubr.msk.bf16.vlgmr.msra.gmra.mrb[32].mxu1 %vm1418_vm5, %v2080_v14  ;;  %v2078_v14 = vmul.f32 %v5012_v11, %v6738_v45 }
 0x950   : > { %4481 = vmatpush3.bf16.xpose.msra.mxu1 %v2201_v54 }
 0x951   : > { %v2082_v19 = vpack.c.bf16 %v2078_v14, %v2077_v57 }
 0x96b   : > { %v2056_v36 = vpop.xlane.xlu1 %2055 }
 0x96c   : > { %5017 = vrcp.f32 %v2056_v36 }
 0x96f   : > { %v2183_v23 = vpop.permute.xlu1 %2182 }
 0x970   : > { %v2204_v5 = vsel %vm1328_vm0, %v2183_v23, 0  ;;  %4549 = vmatprep.subr.msk.bf16.mxu1 %vm1328_vm0, %v2183_v23 }
 0x971   : > { %4483 = vmatpush3.bf16.xpose.msra.mxu1 %v2204_v5 }
 0x973   : > { %v2185_v17 = vpop.permute.xlu1 %2184 }
 0x974   : > { %4550 = vmatprep.subr.msk.bf16.mxu1 %vm1328_vm0, %v2185_v17  ;;  %v2207_v16 = vsel %vm1328_vm0, %v2185_v17, 0 }
 0x976   : > { %v5018_v18 = vpop.eup %5017 }
 0x977   : > { %v2076_v55 = vmul.f32 %v5018_v18, %v6778_v56  ;;  %v2187_v13 = vpop.permute.xlu1 %2186  ;;  %v2177_v56 = vpop.permute.xlu0 %2176 }
 0x978   : > { %v2210_v34 = vsel %vm1328_vm0, %v2187_v13, 0 }
 0x979   : > { %4485 = vmatpush3.bf16.xpose.msra.mxu1 %v2207_v16  ;;  %v2081_v44 = vpack.c.bf16 %v2076_v55, %v2075_v12 }
 0x97a   : > { %4551 = vmatprep.subr.msk.bf16.mxu1 %vm1328_vm0, %v2187_v13 }
 0x97b   : > { %4476 = vmatprep.mubr.msk.bf16.mxu1 %vm1418_vm5, %v2081_v44  ;;  %v2175_v45 = vpop.permute.xlu1 %2174 }
 0x97c   : > { %4477 = vmatmul.mubr.msk.bf16.gmra.mrb[36].mxu1 %vm1418_vm5, %v2082_v19 }
 0x97d   : > { %4488 = vmatprep.mubr.msk.bf16.mxu1 %vm1328_vm0, %v2173_v47 }
 0x97f   : > { %v2179_v26 = vpop.permute.xlu1 %2178 }
 0x981   : > { %4487 = vmatpush3.bf16.xpose.msra.mxu1 %v2210_v34 }
 0x988   : > { %4489 = vmatmul.mubr.msk.bf16.vlgmr.msra.gmra.mrb[40].mxu1 %vm1328_vm0, %v2175_v45 }
 0x989   : > { %4492 = vmatprep.mubr.msk.bf16.mxu1 %vm1328_vm0, %v2177_v56 }
 0x990   : > { %4493 = vmatmul.mubr.msk.bf16.gmra.mrb[44].mxu1 %vm1328_vm0, %v2179_v26 }
 0x991   : > { %3103 = vmatprep.mubr.bf16.mxu1 %v5603_v7 }
 0x9b9   : > { %v6831_v24 = vpop.f32.mrb[24].mxu1 }
 0x9ba   : > { %v6833_v29 = vpop.f32.mrb[25].mxu1 }
 0x9bb   : > { %v6835_v46 = vpop.f32.mrb[26].mxu1 }
 0x9bc   : > { %v4732_v61 = vpack.i.bf16 %v6835_v46, %v6831_v24  ;;  %v6839_v59 = vpop.f32.mrb[27].mxu1 }
 0x9bd   : > { %v4727_v30 = vpack.i.bf16 %v6839_v59, %v6833_v29 }
 0xa1a   : > { %v6843_v31 = vpop.f32.mrb[28].mxu1 }
 0xa1b   : > { %v6845_v53 = vpop.f32.mrb[29].mxu1 }
 0xa1c   : > { %v6847_v52 = vpop.f32.mrb[30].mxu1 }
 0xa1d   : > { %v4762_v32 = vpack.i.bf16 %v6847_v52, %v6843_v31  ;;  %v6851_v35 = vpop.f32.mrb[31].mxu1 }
 0xa1e   : > { %v4757_v58 = vpack.i.bf16 %v6851_v35, %v6845_v53 }
 0xa22   : > { %v6855_v60 = vpop.f32.mrb[32].mxu1 }
 0xa23   : > { %v6857_v49 = vpop.f32.mrb[33].mxu1 }
 0xa24   : > { %v6859_v50 = vpop.f32.mrb[34].mxu1 }
 0xa25   : > { %v4742_v33 = vpack.i.bf16 %v6859_v50, %v6855_v60  ;;  %v6863_v15 = vpop.f32.mrb[35].mxu1 }
 0xa26   : > { %v4737_v51 = vpack.i.bf16 %v6863_v15, %v6857_v49 }
 0xa4f   : > { %v6867_v38 = vpop.f32.mrb[36].mxu1 }
 0xa50   : > { %v6869_v41 = vpop.f32.mrb[37].mxu1 }
 0xa51   : > { %v6871_v54 = vpop.f32.mrb[38].mxu1 }
 0xa52   : > { %v4772_v36 = vpack.i.bf16 %v6871_v54, %v6867_v38  ;;  %v6875_v23 = vpop.f32.mrb[39].mxu1 }
 0xa53   : > { %v4767_v5 = vpack.i.bf16 %v6875_v23, %v6869_v41 }
 0xa5b   : > { %v4490_v11 = vpop.f32.mrb[40].mxu1 }
 0xa5c   : > { %v2246_v17 = vpop.f32.mrb[41].mxu1  ;;  %v2255_v14 = vadd.f32 %v4490_v11, %v6435_v6 }
 0xa5d   : > { %v2247_v3 = vadd.f32 %v2246_v17, %v6430_v2  ;;  %v4491_v42 = vpop.f32.mrb[42].mxu1 }
 0xa5e   : > { %v2249_v18 = vpop.f32.mrb[43].mxu1  ;;  %v2258_v57 = vadd.f32 %v4491_v42, %v6432_v4  ;;  %v2283_v44 = vsel %vm1418_vm5, %v2255_v14, -inf }
 0xa5f   : > { %v2250_v12 = vadd.f32 %v2249_v18, %v6439_v10  ;;  %v2277_v55 = vsel %vm1418_vm5, %v2247_v3, -inf }
 0xa60   : > { %2278 = vmax.xlane.f32.xlu0 %v2277_v55  ;;  %v2286_v10 = vsel %vm1418_vm5, %v2258_v57, -inf }
 0xa61   : > { %v2280_v16 = vsel %vm1418_vm5, %v2250_v12, -inf }
 0xa62   : > { %2281 = vmax.xlane.f32.xlu1 %v2280_v16 }
 0xa63   : > { %v4494_v13 = vpop.f32.mrb[44].mxu1 }
 0xa64   : > { %2284 = vmax.xlane.f32.xlu0 %v2283_v44  ;;  %v2262_v19 = vpop.f32.mrb[45].mxu1  ;;  %v2271_v4 = vadd.f32 %v4494_v13, %v6453_v28 }
 0xa65   : > { %v4495_v2 = vpop.f32.mrb[46].mxu1  ;;  %v2263_v34 = vadd.f32 %v2262_v19, %v6448_v21 }
 0xa66   : > { %v2265_v47 = vpop.f32.mrb[47].mxu1  ;;  %v2274_v45 = vadd.f32 %v4495_v2, %v6451_v27  ;;  %v2295_v21 = vsel %vm1418_vm5, %v2271_v4, -inf }
 0xa67   : > { %v2266_v6 = vadd.f32 %v2265_v47, %v6457_v37  ;;  %v2289_v26 = vsel %vm1418_vm5, %v2263_v34, -inf }
 0xa68   : > { %2287 = vmax.xlane.f32.xlu0 %v2286_v10  ;;  %v2298_v11 = vsel %vm1418_vm5, %v2274_v45, -inf }
 0xa69   : > { %v2292_v56 = vsel %vm1418_vm5, %v2266_v6, -inf }
 0xa6a   : > { %2293 = vmax.xlane.f32.xlu1 %v2292_v56 }
 0xa6c   : > { %2290 = vmax.xlane.f32.xlu0 %v2289_v26 }
 0xa6e   : > { %2299 = vmax.xlane.f32.xlu1 %v2298_v11 }
 0xa70   : > { %2296 = vmax.xlane.f32.xlu0 %v2295_v21 }
 0xa86   : > { %2369 = vrot.lane.b32.xlu0 %v6380_v22, %s5607_s26 }
 0xaed   : > { %v2279_v37 = vpop.xlane.xlu0 %2278 }
 0xaee   : > { %v2301_v17 = vsub.f32 %v2247_v3, %v2279_v37 }
 0xaef   : > { %v2282_v27 = vpop.xlane.xlu1 %2281 }
 0xaf0   : > { %v2309_v55 = vmul.f32 1.442695, %v2301_v17  ;;  %v2302_v16 = vsub.f32 %v2250_v12, %v2282_v27 }
 0xaf1   : > { %v2285_v42 = vpop.xlane.xlu0 %2284 }
 0xaf2   : > { %v2303_v18 = vsub.f32 %v2255_v14, %v2285_v42  ;;  %v2311_v2 = vmul.f32 1.442695, %v2302_v16 }
 0xaf4   : > { %v2313_v28 = vmul.f32 1.442695, %v2303_v18 }
 0xaf5   : > { %v2288_v13 = vpop.xlane.xlu0 %2287 }
 0xaf6   : > { %5019 = vpow2.f32 %v2313_v28  ;;  %v2304_v44 = vsub.f32 %v2258_v57, %v2288_v13 }
 0xaf7   : > { %v2294_v19 = vpop.xlane.xlu1 %2293  ;;  %5021 = vpow2.f32 %v2309_v55 }
 0xaf8   : > { %v2315_v47 = vmul.f32 1.442695, %v2304_v44 }
 0xaf9   : > { %v2291_v10 = vpop.xlane.xlu0 %2290 }
 0xafa   : > { %5023 = vpow2.f32 %v2315_v47  ;;  %v2305_v56 = vsub.f32 %v2263_v34, %v2291_v10  ;;  %v2306_v34 = vsub.f32 %v2266_v6, %v2294_v19 }
 0xafb   : > { %5025 = vpow2.f32 %v2311_v2  ;;  %v2300_v22 = vpop.xlane.xlu1 %2299 }
 0xafc   : > { %v2317_v14 = vmul.f32 1.442695, %v2305_v56  ;;  %v2308_v21 = vsub.f32 %v2274_v45, %v2300_v22  ;;  %v2319_v55 = vmul.f32 1.442695, %v2306_v34 }
 0xafd   : > { %v2297_v26 = vpop.xlane.xlu0 %2296 }
 0xafe   : > { %v2307_v3 = vsub.f32 %v2271_v4, %v2297_v26  ;;  %v2323_v42 = vmul.f32 1.442695, %v2308_v21 }
 0xb00   : > { %v6897_v11 = vpop.eup %5019  ;;  %v2321_v12 = vmul.f32 1.442695, %v2307_v3 }
 0xb01   : > { %v2370_v37 = vpop.permute.xlu0 %2369  ;;  %v2331_v57 = vsel %vm1418_vm5, %v6897_v11, 0.0  ;;  %v5022_v17 = vpop.eup %5021 }
 0xb02   : > { %5027 = vpow2.f32 %v2321_v12  ;;  %2332 = vadd.xlane.f32.xlu0 %v2331_v57  ;;  %4496 = vmatprep.subr.bf16.mxu0 %v2370_v37  ;;  %v2325_v4 = vsel %vm1418_vm5, %v5022_v17, 0.0 }
 0xb03   : > { %4497 = vmatpush3.bf16.msra.mxu0 %v2370_v37  ;;  %5029 = vpow2.f32 %v2317_v14 }
 0xb04   : > { %v6901_v27 = vpop.eup %5023  ;;  %5031 = vpow2.f32 %v2323_v42 }
 0xb05   : > { %v2334_v45 = vsel %vm1418_vm5, %v6901_v27, 0.0  ;;  %v5026_v18 = vpop.eup %5025  ;;  %5033 = vpow2.f32 %v2319_v55  ;;  %v4820_v55 = vld [vmem:[%s6249_s16 + $0x8] sm:$0xff]  }
 0xb06   : > { %2326 = vadd.xlane.f32.xlu0 %v2325_v4  ;;  %2335 = vadd.xlane.f32.xlu1 %v2334_v45  ;;  %v2328_v16 = vsel %vm1418_vm5, %v5026_v18, 0.0 }
 0xb0a   : > { %2329 = vadd.xlane.f32.xlu1 %v2328_v16  ;;  %v4821_v16 = vld [vmem:[%s6249_s16 + $0x10] sm:$0xff]  }
 0xb0c   : > { %v6907_v28 = vpop.eup %5027 }
 0xb0d   : > { %v2343_v6 = vsel %vm1418_vm5, %v6907_v28, 0.0  ;;  %v5030_v13 = vpop.eup %5029 }
 0xb0e   : > { %2344 = vadd.xlane.f32.xlu1 %v2343_v6  ;;  %v2337_v44 = vsel %vm1418_vm5, %v5030_v13, 0.0  ;;  %v5032_v19 = vpop.eup %5031  ;;  %v4822_v6 = vld [vmem:[%s6249_s16 + $0x18] sm:$0xff]  }
 0xb0f   : > { %v2346_v2 = vsel %vm1418_vm5, %v5032_v19, 0.0  ;;  %v5034_v47 = vpop.eup %5033 }
 0xb10   : > { %v2340_v10 = vsel %vm1418_vm5, %v5034_v47, 0.0 }
 0xb12   : > { %2338 = vadd.xlane.f32.xlu1 %v2337_v44  ;;  %v4825_v44 = vld [vmem:[%s6249_s16 + $0x30] sm:$0xff]  }
 0xb16   : > { %2347 = vadd.xlane.f32.xlu1 %v2346_v2 }
 0xb1a   : > { %2341 = vadd.xlane.f32.xlu1 %v2340_v10 }
 0xb1c   : > { %2373 = vrot.lane.b32.xlu0 %v6396_v43, %s5607_s26 }
 0xb20   : > { %2375 = vrot.lane.b32.xlu0 %v6393_v39, %s5607_s26 }
 0xb24   : > { %4728 = vrot.lane.b32.xlu0 %v4727_v30, %s5607_s26 }
 0xb28   : > { %4738 = vrot.lane.b32.xlu0 %v4737_v51, %s5606_s7 }
 0xb2b   : > { %2371 = vrot.lane.b32.xlu1 %v6376_v20, %s5607_s26 }
 0xb2f   : > { %4733 = vrot.lane.b32.xlu1 %v4732_v61, %s5607_s26 }
 0xb33   : > { %4743 = vrot.lane.b32.xlu1 %v4742_v33, %s5606_s7 }
 0xb8f   : > { %v2333_v39 = vpop.xlane.xlu0 %2332 }
 0xb93   : > { %v2336_v43 = vpop.xlane.xlu1 %2335  ;;  %v2327_v29 = vpop.xlane.xlu0 %2326 }
 0xb94   : > { %5035 = vrcp.f32 %v2327_v29 }
 0xb97   : > { %v2330_v59 = vpop.xlane.xlu1 %2329  ;;  %v2374_v61 = vpop.permute.xlu0 %2373 }
 0xb98   : > { %5037 = vrcp.f32 %v2330_v59 }
 0xb99   : > { %5039 = vrcp.f32 %v2336_v43 }
 0xb9a   : > { %5041 = vrcp.f32 %v2333_v39 }
 0xb9b   : > { %v2345_v30 = vpop.xlane.xlu1 %2344  ;;  %v2376_v3 = vpop.permute.xlu0 %2375 }
 0xb9e   : > { %v5036_v15 = vpop.eup %5035 }
 0xb9f   : > { %v2339_v49 = vpop.xlane.xlu1 %2338  ;;  %v2357_v56 = vmul.f32 %v5036_v15, %v5022_v17  ;;  %v4729_v53 = vpop.permute.xlu0 %4728 }
 0xba0   : > { %5043 = vrcp.f32 %v2339_v49  ;;  %v4730_v35 = vunpack.i.l.bf16 %v4729_v53 }
 0xba2   : > { %v5038_v20 = vpop.eup %5037  ;;  %v2554_v23 = vsel %vm1328_vm0, %v6568_v63, %v4730_v35 }
 0xba3   : > { %v2348_v51 = vpop.xlane.xlu1 %2347  ;;  %v2358_v22 = vmul.f32 %v5038_v20, %v5026_v18  ;;  %v5040_v50 = vpop.eup %5039 }
 0xba4   : > { %v5042_v33 = vpop.eup %5041  ;;  %v2360_v21 = vmul.f32 %v5040_v50, %v6901_v27 }
 0xba5   : > { %v2365_v24 = vpack.c.bf16 %v2358_v22, %v2357_v56  ;;  %v2359_v37 = vmul.f32 %v5042_v33, %v6897_v11  ;;  %v4819_v11 = vld [vmem:[%s6249_s16] sm:$0xff]  }
 0xba7   : > { %v2342_v46 = vpop.xlane.xlu1 %2341  ;;  %4504 = vmatprep.mubr.msk.bf16.mxu0 %vm1418_vm5, %v2365_v24  ;;  %v2366_v17 = vpack.c.bf16 %v2360_v21, %v2359_v37 }
 0xba8   : > { %5045 = vrcp.f32 %v2342_v46 }
 0xba9   : > { %5047 = vrcp.f32 %v2348_v51 }
 0xbaa   : > { %5049 = vrcp.f32 %v2345_v30  ;;  %v5044_v26 = vpop.eup %5043 }
 0xbab   : > { %v2372_v60 = vpop.permute.xlu1 %2371  ;;  %v2361_v57 = vmul.f32 %v5044_v26, %v5030_v13  ;;  %v4823_v13 = vld [vmem:[%s6249_s16 + $0x20] sm:$0xff]  }
 0xbac   : > { %4498 = vmatprep.subr.bf16.mxu0 %v2372_v60 }
 0xbad   : > { %4499 = vmatpush3.bf16.msra.mxu0 %v2372_v60 }
 0xbae   : > { %4500 = vmatprep.subr.bf16.mxu0 %v2374_v61 }
 0xbaf   : > { %v4734_v31 = vpop.permute.xlu1 %4733 }
 0xbb0   : > { %v4736_v56 = vunpack.i.h.bf16 %v4734_v31  ;;  %v4735_v22 = vunpack.i.l.bf16 %v4734_v31 }
 0xbb1   : > { %4501 = vmatpush3.bf16.msra.mxu0 %v2374_v61 }
 0xbb2   : > { %v5046_v14 = vpop.eup %5045  ;;  %4502 = vmatprep.subr.bf16.mxu0 %v2376_v3  ;;  %v2557_v46 = vsel %vm1328_vm0, %v6570_v0, %v4736_v56  ;;  %v2556_v61 = vsel %vm1328_vm0, %v6566_v25, %v4735_v22 }
 0xbb3   : > { %v2362_v12 = vmul.f32 %v5046_v14, %v5034_v47  ;;  %v5048_v34 = vpop.eup %5047  ;;  %v4744_v52 = vpop.permute.xlu1 %4743 }
 0xbb4   : > { %v5050_v4 = vpop.eup %5049  ;;  %v2364_v27 = vmul.f32 %v5048_v34, %v5032_v19  ;;  %v4826_v19 = vld [vmem:[%s6249_s16 + $0x38] sm:$0xff]   ;;  %v4746_v24 = vunpack.i.h.bf16 %v4744_v52  ;;  %v4745_v38 = vunpack.i.l.bf16 %v4744_v52 }
 0xbb5   : > { %4503 = vmatpush3.bf16.msra.mxu0 %v2376_v3  ;;  %v2367_v42 = vpack.c.bf16 %v2362_v12, %v2361_v57  ;;  %v2363_v45 = vmul.f32 %v5050_v4, %v6907_v28  ;;  %v4824_v28 = vld [vmem:[%s6249_s16 + $0x28] sm:$0xff]  }
 0xbb6   : > { %4512 = vmatprep.subr.bf16.mxu0 %v4819_v11  ;;  %v2564_v26 = vsel %vm1418_vm5, %v2556_v61, %v4745_v38  ;;  %v2565_v3 = vsel %vm1418_vm5, %v2557_v46, %v4746_v24  ;;  %v5068_v38 = vld [vmem:[#allocation2 + $0x10] sm:$0xff]  ;;  %v5070_v61 = vld [vmem:[#allocation2 + $0x18] sm:$0xff] }
 0xbb7   : > { %v2368_v18 = vpack.c.bf16 %v2364_v27, %v2363_v45 }
 0xbb8   : > { %4505 = vmatmul.mubr.msk.bf16.vlgmr.msra.gmra.mrb[32].mxu0 %vm1418_vm5, %v2366_v17 }
 0xbb9   : > { %4508 = vmatprep.mubr.msk.bf16.mxu0 %vm1418_vm5, %v2367_v42  ;;  %4513 = vmatpush3.bf16.msra.mxu0 %v4819_v11 }
 0xbba   : > { %4514 = vmatprep.subr.bf16.mxu0 %v4820_v55 }
 0xbbd   : > { %4515 = vmatpush3.bf16.msra.mxu0 %v4820_v55 }
 0xbbe   : > { %4516 = vmatprep.subr.bf16.mxu0 %v4821_v16 }
 0xbc0   : > { %4509 = vmatmul.mubr.msk.bf16.gmra.mrb[36].mxu0 %vm1418_vm5, %v2368_v18 }
 0xbc1   : > { %4517 = vmatpush3.bf16.msra.mxu0 %v4821_v16 }
 0xbc2   : > { %4518 = vmatprep.subr.bf16.mxu0 %v4822_v6 }
 0xbc5   : > { %4519 = vmatpush3.bf16.msra.mxu0 %v4822_v6 }
 0xbc6   : > { %4520 = vmatprep.subr.bf16.mxu0 %v4823_v13 }
 0xbc9   : > { %4521 = vmatpush3.bf16.msra.mxu0 %v4823_v13 }
 0xbca   : > { %4522 = vmatprep.subr.bf16.mxu0 %v4824_v28 }
 0xbcd   : > { %4523 = vmatpush3.bf16.msra.mxu0 %v4824_v28 }
 0xbce   : > { %4524 = vmatprep.subr.bf16.mxu0 %v4825_v44 }
 0xbd1   : > { %4525 = vmatpush3.bf16.msra.mxu0 %v4825_v44 }
 0xbd2   : > { %4526 = vmatprep.subr.bf16.mxu0 %v4826_v19 }
 0xbd5   : > { %4527 = vmatpush3.bf16.msra.mxu0 %v4826_v19 }
 0xc8b   : > { %v4506_v2 = vpop.f32.mrb[32].mxu0 }
 0xc8c   : > { %v2427_v47 = vpop.f32.mrb[33].mxu0 }
 0xc8d   : > { %v4507_v10 = vpop.f32.mrb[34].mxu0 }
 0xc8e   : > { %v4752_v39 = vpack.i.bf16 %v4507_v10, %v4506_v2  ;;  %v2430_v43 = vpop.f32.mrb[35].mxu0 }
 0xc8f   : > { %v4747_v29 = vpack.i.bf16 %v2430_v43, %v2427_v47 }
 0xc90   : > { %4753 = vrot.lane.b32.xlu1 %v4752_v39, %s5605_s6 }
 0xc91   : > { %4748 = vrot.lane.b32.xlu0 %v4747_v29, %s5605_s6 }
 0xc93   : > { %v4510_v59 = vpop.f32.mrb[36].mxu0 }
 0xc94   : > { %4763 = vrot.lane.b32.xlu1 %v4762_v32, %s5607_s26  ;;  %v2443_v30 = vpop.f32.mrb[37].mxu0  ;;  %v4731_v32 = vunpack.i.h.bf16 %v4729_v53 }
 0xc95   : > { %4758 = vrot.lane.b32.xlu0 %v4757_v58, %s5607_s26  ;;  %v4511_v49 = vpop.f32.mrb[38].mxu0  ;;  %v4739_v58 = vpop.permute.xlu0 %4738 }
 0xc96   : > { %v4782_v15 = vpack.i.bf16 %v4511_v49, %v4510_v59  ;;  %v2446_v20 = vpop.f32.mrb[39].mxu0  ;;  %v4741_v54 = vunpack.i.h.bf16 %v4739_v58  ;;  %v2555_v41 = vsel %vm1328_vm0, %v6572_v1, %v4731_v32  ;;  %v4112_v32 = vld [vmem:[%s690_s9] ss:$0 sm:$0xff] }
 0xc97   : > { %v4777_v51 = vpack.i.bf16 %v2446_v20, %v2443_v30 }
 0xc98   : > { %4773 = vrot.lane.b32.xlu1 %v4772_v36, %s5606_s7  ;;  %v4740_v36 = vunpack.i.l.bf16 %v4739_v58  ;;  %v2563_v63 = vsel %vm1418_vm5, %v2555_v41, %v4741_v54  ;;  %v5067_v58 = vld [vmem:[#allocation2] sm:$0xff]  ;;  %v5069_v41 = vld [vmem:[#allocation2 + $0x8] sm:$0xff] }
 0xc99   : > { %4768 = vrot.lane.b32.xlu0 %v4767_v5, %s5606_s7 }
 0xc9a   : > { %v2562_v21 = vsel %vm1418_vm5, %v2554_v23, %v4740_v36 }
 0xc9c   : > { %4783 = vrot.lane.b32.xlu1 %v4782_v15, %s5605_s6 }
 0xc9d   : > { %4778 = vrot.lane.b32.xlu0 %v4777_v51, %s5605_s6 }
 0xd02   : > { %v4754_v5 = vpop.permute.xlu1 %4753 }
 0xd03   : > { %v4756_v60 = vunpack.i.h.bf16 %v4754_v5  ;;  %v4755_v50 = vunpack.i.l.bf16 %v4754_v5  ;;  %v4749_v33 = vpop.permute.xlu0 %4748 }
 0xd04   : > { %v4751_v14 = vunpack.i.h.bf16 %v4749_v33  ;;  %v4750_v1 = vunpack.i.l.bf16 %v4749_v33 }
 0xd05   : > { %v2574_v12 = vsel %vm2570_vm10, %v2565_v3, %v4756_v60  ;;  %v2573_v0 = vsel %vm2570_vm10, %v2564_v26, %v4755_v50  ;;  %v5071_v3 = vld [vmem:[#allocation2 + $0x20] sm:$0xff] }
 0xd06   : > { %v2580_v37 = vpack.c.bf16 %v2574_v12, %v2573_v0  ;;  %v4764_v57 = vpop.permute.xlu1 %4763  ;;  %v2571_v25 = vsel %vm2570_vm10, %v2562_v21, %v4750_v1  ;;  %v2572_v17 = vsel %vm2570_vm10, %v2563_v63, %v4751_v14  ;;  %v5072_v63 = vld [vmem:[#allocation2 + $0x30] sm:$0xff] }
 0xd07   : > { %v4759_v34 = vpop.permute.xlu0 %4758  ;;  %v2579_v42 = vpack.c.bf16 %v2572_v17, %v2571_v25  ;;  %v4766_v4 = vunpack.i.h.bf16 %v4764_v57  ;;  %v4765_v27 = vunpack.i.l.bf16 %v4764_v57  ;;  %v5074_v25 = vld [vmem:[#allocation2 + $0x38] sm:$0xff] }
 0xd08   : > { %v4761_v18 = vunpack.i.h.bf16 %v4759_v34  ;;  %v4760_v11 = vunpack.i.l.bf16 %v4759_v34 }
 0xd09   : > { %4528 = vmatprep.mubr.bf16.mxu0 %v2579_v42  ;;  %v2561_v44 = vsel %vm1328_vm0, %v6578_v9, %v4766_v4  ;;  %v2560_v19 = vsel %vm1328_vm0, %v6574_v40, %v4765_v27  ;;  %v4827_v27 = vld [vmem:[%s6266_s20] ss:$16 sps:$4 sm:$0xff]  }
 0xd0a   : > { %v4774_v45 = vpop.permute.xlu1 %4773  ;;  %4529 = vmatmul.mubr.bf16.vlgmr.msra.gmra.mrb[40].mxu0 %v2580_v37  ;;  %v2559_v47 = vsel %vm1328_vm0, %v6580_v48, %v4761_v18  ;;  %v2558_v10 = vsel %vm1328_vm0, %v6576_v8, %v4760_v11  ;;  %v5073_v37 = vld [vmem:[#allocation2 + $0x28] sm:$0xff]  ;;  %v4830_v18 = vld [vmem:[%s6266_s20 + $0x8] ss:$16 sps:$4 sm:$0xff]  }
 0xd0b   : > { %v4769_v55 = vpop.permute.xlu0 %4768  ;;  %v4776_v16 = vunpack.i.h.bf16 %v4774_v45  ;;  %v4775_v6 = vunpack.i.l.bf16 %v4774_v45  ;;  %v4829_v45 = vld [vmem:[%s6266_s20 + $0x4] ss:$16 sps:$4 sm:$0xff]   ;;  %v4832_v11 = vld [vmem:[%s6266_s20 + $0xc] ss:$16 sps:$4 sm:$0xff]  }
 0xd0c   : > { %v4771_v13 = vunpack.i.h.bf16 %v4769_v55  ;;  %v4770_v28 = vunpack.i.l.bf16 %v4769_v55  ;;  %v4835_v55 = vld [vmem:[%s6266_s20 + $0x24] ss:$16 sps:$4 sm:$0xff]   ;;  %3071 = vmatprep.subr.bf16.mxu1 %v4829_v45  ;;  %3144 = vmatprep.subr.bf16.mxu0 %v4832_v11  ;;  %v4860_v45 = vld [vmem:[%s6266_s20 + $0xa8] ss:$16 sps:$4 sm:$0xff]   ;;  %v4868_v11 = vld [vmem:[%s6266_s20 + $0xcc] ss:$16 sps:$4 sm:$0xff]  }
 0xd0d   : > { %v2568_v59 = vsel %vm1418_vm5, %v2560_v19, %v4775_v6  ;;  %v2569_v30 = vsel %vm1418_vm5, %v2561_v44, %v4776_v16  ;;  %v4838_v16 = vld [vmem:[%s6266_s20 + $0x2c] ss:$16 sps:$4 sm:$0xff]   ;;  %3072 = vmatpush1.bf16.msra.mxu1 %v4827_v27  ;;  %v4833_v6 = vld [vmem:[%s6266_s20 + $0x20] ss:$16 sps:$4 sm:$0xff]   ;;  %3145 = vmatpush1.bf16.msra.mxu0 %v4830_v18  ;;  %v4865_v18 = vld [vmem:[%s6266_s20 + $0xc4] ss:$16 sps:$4 sm:$0xff]  }
 0xd0e   : > { %v4784_v2 = vpop.permute.xlu1 %4783  ;;  %v2566_v15 = vsel %vm1418_vm5, %v2558_v10, %v4770_v28  ;;  %v2567_v40 = vsel %vm1418_vm5, %v2559_v47, %v4771_v13  ;;  %3073 = vmatprep.subr.bf16.mxu1 %v4835_v55  ;;  %v4836_v13 = vld [vmem:[%s6266_s20 + $0x28] ss:$16 sps:$4 sm:$0xff]   ;;  %3146 = vmatprep.subr.bf16.mxu0 %v4838_v16  ;;  %v4857_v27 = vld [vmem:[%s6266_s20 + $0xa0] ss:$16 sps:$4 sm:$0xff]  }
 0xd0f   : > { %v4786_v39 = vunpack.i.h.bf16 %v4784_v2  ;;  %v4785_v43 = vunpack.i.l.bf16 %v4784_v2  ;;  %v4779_v29 = vpop.permute.xlu0 %4778  ;;  %v4863_v55 = vld [vmem:[%s6266_s20 + $0xc0] ss:$16 sps:$4 sm:$0xff]   ;;  %v4866_v16 = vld [vmem:[%s6266_s20 + $0xc8] ss:$16 sps:$4 sm:$0xff]  }
 0xd10   : > { %v4781_v49 = vunpack.i.h.bf16 %v4779_v29  ;;  %v4780_v9 = vunpack.i.l.bf16 %v4779_v29 }
 0xd11   : > { %v2577_v20 = vsel %vm2570_vm10, %v2568_v59, %v4785_v43  ;;  %v2578_v48 = vsel %vm2570_vm10, %v2569_v30, %v4786_v39  ;;  %3074 = vmatpush1.bf16.msra.mxu1 %v4833_v6  ;;  %3147 = vmatpush1.bf16.msra.mxu0 %v4836_v13  ;;  %v4871_v6 = vld [vmem:[%s6266_s20 + $0xe4] ss:$16 sps:$4 sm:$0xff]   ;;  %v4874_v13 = vld [vmem:[%s6266_s20 + $0xec] ss:$16 sps:$4 sm:$0xff]  }
 0xd12   : > { %v2575_v8 = vsel %vm2570_vm10, %v2566_v15, %v4780_v9  ;;  %v2576_v51 = vsel %vm2570_vm10, %v2567_v40, %v4781_v49  ;;  %v2582_v31 = vpack.c.bf16 %v2578_v48, %v2577_v20 }
 0xd13   : > { %v2581_v53 = vpack.c.bf16 %v2576_v51, %v2575_v8 }
 0xd15   : > { %4532 = vmatprep.mubr.bf16.mxu0 %v2581_v53 }
 0xd16   : > { %4533 = vmatmul.mubr.bf16.gmra.mrb[44].mxu0 %v2582_v31 }
 0xd17   : > { %3176 = vmatprep.mubr.bf16.mxu0 %v5603_v7 }
 0xddd   : > { %v4530_v52 = vpop.f32.mrb[40].mxu0 }
 0xdde   : > { %v2681_v35 = vpop.f32.mrb[41].mxu0  ;;  %v2714_v54 = vadd.f32 %v5068_v38, %v4530_v52 }
 0xddf   : > { %v2712_v56 = vadd.f32 %v5067_v58, %v2681_v35  ;;  %v4531_v22 = vpop.f32.mrb[42].mxu0 }
 0xde0   : > { %v2684_v24 = vpop.f32.mrb[43].mxu0  ;;  %v7011_v46 = vadd.f32 %v4112_v32, %v2714_v54  ;;  %v2715_v60 = vadd.f32 %v5070_v61, %v4531_v22  ;;  %v4844_v61 = vld [vmem:[%s6266_s20 + $0x4c] ss:$16 sps:$4 sm:$0xff]  }
 0xde1   : > { %v7006_v36 = vadd.f32 %v4112_v32, %v2712_v56  ;;  %v2713_v23 = vadd.f32 %v5069_v41, %v2684_v24  ;;  %3148 = vmatprep.subr.bf16.mxu0 %v4844_v61 }
 0xde2   : > { %v7015_v50 = vadd.f32 %v4112_v32, %v2715_v60  ;;  %v4839_v60 = vld [vmem:[%s6266_s20 + $0x40] ss:$16 sps:$4 sm:$0xff]  }
 0xde3   : > { %v7008_v5 = vadd.f32 %v4112_v32, %v2713_v23  ;;  %2737 = vadd.xlane.f32.xlu0 %v7006_v36  ;;  %v4841_v23 = vld [vmem:[%s6266_s20 + $0x44] ss:$16 sps:$4 sm:$0xff]  }
 0xde4   : > { %3075 = vmatprep.subr.bf16.mxu1 %v4841_v23 }
 0xde5   : > { %2739 = vadd.xlane.f32.xlu1 %v7008_v5  ;;  %3076 = vmatpush1.bf16.msra.mxu1 %v4839_v60 }
 0xde7   : > { %2741 = vadd.xlane.f32.xlu0 %v7011_v46 }
 0xde9   : > { %v4534_v33 = vpop.f32.mrb[44].mxu0 }
 0xdea   : > { %v2697_v26 = vpop.f32.mrb[45].mxu0  ;;  %v2718_v12 = vadd.f32 %v5072_v63, %v4534_v33  ;;  %v4842_v33 = vld [vmem:[%s6266_s20 + $0x48] ss:$16 sps:$4 sm:$0xff]   ;;  %v4853_v63 = vld [vmem:[%s6266_s20 + $0x84] ss:$16 sps:$4 sm:$0xff]  }
 0xdeb   : > { %v2716_v14 = vadd.f32 %v5071_v3, %v2697_v26  ;;  %2743 = vadd.xlane.f32.xlu0 %v7015_v50  ;;  %v4535_v1 = vpop.f32.mrb[46].mxu0  ;;  %3149 = vmatpush1.bf16.msra.mxu0 %v4842_v33  ;;  %v4847_v3 = vld [vmem:[%s6266_s20 + $0x64] ss:$16 sps:$4 sm:$0xff]  }
 0xdec   : > { %v2700_v21 = vpop.f32.mrb[47].mxu0  ;;  %v2719_v17 = vadd.f32 %v5074_v25, %v4535_v1  ;;  %v7023_v42 = vadd.f32 %v4112_v32, %v2718_v12  ;;  %v4845_v1 = vld [vmem:[%s6266_s20 + $0x60] ss:$16 sps:$4 sm:$0xff]   ;;  %3077 = vmatprep.subr.bf16.mxu1 %v4847_v3  ;;  %v4856_v12 = vld [vmem:[%s6266_s20 + $0x8c] ss:$16 sps:$4 sm:$0xff]  }
 0xded   : > { %v7018_v0 = vadd.f32 %v4112_v32, %v2716_v14  ;;  %v2717_v57 = vadd.f32 %v5073_v37, %v2700_v21  ;;  %v4850_v14 = vld [vmem:[%s6266_s20 + $0x6c] ss:$16 sps:$4 sm:$0xff]   ;;  %v4848_v21 = vld [vmem:[%s6266_s20 + $0x68] ss:$16 sps:$4 sm:$0xff]   ;;  %3078 = vmatpush1.bf16.msra.mxu1 %v4845_v1  ;;  %v4851_v37 = vld [vmem:[%s6266_s20 + $0x80] ss:$16 sps:$4 sm:$0xff]  }
 0xdee   : > { %v7026_v4 = vadd.f32 %v4112_v32, %v2719_v17  ;;  %3150 = vmatprep.subr.bf16.mxu0 %v4850_v14  ;;  %3079 = vmatprep.subr.bf16.mxu1 %v4853_v63  ;;  %v4859_v25 = vld [vmem:[%s6266_s20 + $0xa4] ss:$16 sps:$4 sm:$0xff]   ;;  %v4862_v17 = vld [vmem:[%s6266_s20 + $0xac] ss:$16 sps:$4 sm:$0xff]  }
 0xdef   : > { %v7020_v34 = vadd.f32 %v4112_v32, %v2717_v57  ;;  %2745 = vadd.xlane.f32.xlu0 %v7018_v0  ;;  %3151 = vmatpush1.bf16.msra.mxu0 %v4848_v21  ;;  %v4854_v57 = vld [vmem:[%s6266_s20 + $0x88] ss:$16 sps:$4 sm:$0xff]  }
 0xdf0   : > { %3152 = vmatprep.subr.bf16.mxu0 %v4856_v12  ;;  %v7113_v12 = vld [vmem:[%s7429_s14] ss:$0 sm:$0xff] }
 0xdf1   : > { %2747 = vadd.xlane.f32.xlu1 %v7020_v34  ;;  %3080 = vmatpush1.bf16.msra.mxu1 %v4851_v37 }
 0xdf2   : > { %3081 = vmatprep.subr.bf16.mxu1 %v4859_v25 }
 0xdf3   : > { %2749 = vadd.xlane.f32.xlu0 %v7023_v42  ;;  %3153 = vmatpush1.bf16.msra.mxu0 %v4854_v57 }
 0xdf4   : > { %3154 = vmatprep.subr.bf16.mxu0 %v4862_v17 }
 0xdf5   : > { %2751 = vadd.xlane.f32.xlu1 %v7026_v4  ;;  %3082 = vmatpush1.bf16.msra.mxu1 %v4857_v27 }
 0xdf6   : > { %3083 = vmatprep.subr.bf16.mxu1 %v4865_v18 }
 0xdf7   : > { %3155 = vmatpush1.bf16.msra.mxu0 %v4860_v45 }
 0xdf8   : > { %3156 = vmatprep.subr.bf16.mxu0 %v4868_v11  ;;  %v4877_v11 = vld [vmem:[%s6275_s15] sm:$0xff]  }
 0xdf9   : > { %3084 = vmatpush1.bf16.msra.mxu1 %v4863_v55  ;;  %v4878_v55 = vld [vmem:[%s6275_s15 + $0x80] sm:$0xff]  }
 0xdfa   : > { %3085 = vmatprep.subr.bf16.mxu1 %v4871_v6  ;;  %v4880_v6 = vld [vmem:[%s6275_s15 + $0xc8] sm:$0xff]  }
 0xdfb   : > { %3157 = vmatpush1.bf16.msra.mxu0 %v4866_v16  ;;  %v4879_v16 = vld [vmem:[%s6275_s15 + $0x48] sm:$0xff]  }
 0xdfc   : > { %3158 = vmatprep.subr.bf16.mxu0 %v4874_v13 }
 0xe70   : > { %v2738_v28 = vpop.xlane.xlu0 %2737 }
 0xe71   : > { %v2753_v44 = vmul.f32 0.0078125, %v2738_v28  ;;  %v4869_v28 = vld [vmem:[%s6266_s20 + $0xe0] ss:$16 sps:$4 sm:$0xff]  }
 0xe72   : > { %v2740_v19 = vpop.xlane.xlu1 %2739  ;;  %3086 = vmatpush1.bf16.msra.mxu1 %v4869_v28 }
 0xe73   : > { %v7039_v2 = vsub.f32 %v7006_v36, %v2753_v44  ;;  %v2754_v47 = vmul.f32 0.0078125, %v2740_v19  ;;  %v4872_v44 = vld [vmem:[%s6266_s20 + $0xe8] ss:$16 sps:$4 sm:$0xff]  }
 0xe74   : > { %v2742_v10 = vpop.xlane.xlu0 %2741  ;;  %3159 = vmatpush1.bf16.msra.mxu0 %v4872_v44  ;;  %v4875_v19 = vld [vmem:[%s6275_s15 + $0x40] sm:$0xff]   ;;  %v4881_v44 = vld [vmem:[%s6275_s15 + $0x8] sm:$0xff]  }
 0xe75   : > { %v7042_v39 = vsub.f32 %v7008_v5, %v2754_v47  ;;  %v2755_v43 = vmul.f32 0.0078125, %v2742_v10  ;;  %v2769_v29 = vmul.f32 %v7039_v2, %v7039_v2  ;;  %v4876_v47 = vld [vmem:[%s6275_s15 + $0xc0] sm:$0xff]   ;;  %4280 = vmatprep.subr.bf16.mxu1 %v4875_v19  ;;  %v4882_v19 = vld [vmem:[%s6275_s15 + $0x88] sm:$0xff]  }
 0xe76   : > { %4320 = vmatprep.subr.bf16.mxu0 %v4876_v47 }
 0xe77   : > { %v7047_v59 = vsub.f32 %v7011_v46, %v2755_v43  ;;  %2777 = vadd.xlane.f32.xlu0 %v2769_v29  ;;  %v2770_v30 = vmul.f32 %v7042_v39, %v7042_v39 }
 0xe78   : > { %v2744_v49 = vpop.xlane.xlu0 %2743 }
 0xe79   : > { %v2756_v9 = vmul.f32 0.0078125, %v2744_v49  ;;  %2779 = vadd.xlane.f32.xlu1 %v2770_v30  ;;  %v2771_v15 = vmul.f32 %v7047_v59, %v7047_v59 }
 0xe7b   : > { %v7054_v40 = vsub.f32 %v7015_v50, %v2756_v9  ;;  %2781 = vadd.xlane.f32.xlu0 %v2771_v15 }
 0xe7c   : > { %v2746_v20 = vpop.xlane.xlu0 %2745 }
 0xe7d   : > { %v2757_v48 = vmul.f32 0.0078125, %v2746_v20  ;;  %v2772_v8 = vmul.f32 %v7054_v40, %v7054_v40 }
 0xe7e   : > { %v2748_v51 = vpop.xlane.xlu1 %2747 }
 0xe7f   : > { %v7059_v31 = vsub.f32 %v7018_v0, %v2757_v48  ;;  %v2758_v53 = vmul.f32 0.0078125, %v2748_v51  ;;  %2783 = vadd.xlane.f32.xlu1 %v2772_v8 }
 0xe80   : > { %v2750_v52 = vpop.xlane.xlu0 %2749 }
 0xe81   : > { %v7062_v32 = vsub.f32 %v7020_v34, %v2758_v53  ;;  %v2759_v35 = vmul.f32 0.0078125, %v2750_v52  ;;  %v2773_v58 = vmul.f32 %v7059_v31, %v7059_v31 }
 0xe82   : > { %v2752_v56 = vpop.xlane.xlu1 %2751 }
 0xe83   : > { %v7067_v22 = vsub.f32 %v7023_v42, %v2759_v35  ;;  %v2760_v24 = vmul.f32 0.0078125, %v2752_v56  ;;  %2785 = vadd.xlane.f32.xlu0 %v2773_v58  ;;  %v2774_v38 = vmul.f32 %v7062_v32, %v7062_v32 }
 0xe85   : > { %v7072_v54 = vsub.f32 %v7026_v4, %v2760_v24  ;;  %2787 = vadd.xlane.f32.xlu1 %v2774_v38  ;;  %v2775_v41 = vmul.f32 %v7067_v22, %v7067_v22  ;;  %v7106_v24 = vld [vmem:[%s698_s27] ss:$0 sm:$0xff] }
 0xe87   : > { %2789 = vadd.xlane.f32.xlu0 %v2775_v41  ;;  %v2776_v26 = vmul.f32 %v7072_v54, %v7072_v54 }
 0xe89   : > { %2791 = vadd.xlane.f32.xlu1 %v2776_v26 }
 0xf04   : > { %v2778_v10 = vpop.xlane.xlu0 %2777 }
 0xf05   : > { %v2793_v43 = vmul.f32 0.0078125, %v2778_v10  ;;  %v4883_v10 = vld [vmem:[%s6275_s15 + $0x50] sm:$0xff]  }
 0xf06   : > { %v2780_v29 = vpop.xlane.xlu1 %2779 }
 0xf07   : > { %v2801_v30 = vadd.f32 1e-05, %v2793_v43  ;;  %v2794_v49 = vmul.f32 0.0078125, %v2780_v29  ;;  %v4884_v43 = vld [vmem:[%s6275_s15 + $0xd0] sm:$0xff]  }
 0xf08   : > { %v2782_v9 = vpop.xlane.xlu0 %2781 }
 0xf09   : > { %5051 = vrsqrt.f32 %v2801_v30  ;;  %v2802_v15 = vadd.f32 1e-05, %v2794_v49  ;;  %v2795_v20 = vmul.f32 0.0078125, %v2782_v9 }
 0xf0b   : > { %5053 = vrsqrt.f32 %v2802_v15  ;;  %v2803_v48 = vadd.f32 1e-05, %v2795_v20  ;;  %v4885_v20 = vld [vmem:[%s6275_s15 + $0x10] sm:$0xff]  }
 0xf0c   : > { %v2784_v8 = vpop.xlane.xlu1 %2783 }
 0xf0d   : > { %5055 = vrsqrt.f32 %v2803_v48  ;;  %v2796_v51 = vmul.f32 0.0078125, %v2784_v8  ;;  %v4886_v48 = vld [vmem:[%s6275_s15 + $0x90] sm:$0xff]  }
 0xf0f   : > { %v2804_v53 = vadd.f32 1e-05, %v2796_v51  ;;  %v4887_v51 = vld [vmem:[%s6275_s15 + $0x58] sm:$0xff]  }
 0xf10   : > { %v2786_v52 = vpop.xlane.xlu0 %2785 }
 0xf11   : > { %5057 = vrsqrt.f32 %v2804_v53  ;;  %v2797_v35 = vmul.f32 0.0078125, %v2786_v52  ;;  %v4888_v53 = vld [vmem:[%s6275_s15 + $0xd8] sm:$0xff]  }
 0xf12   : > { %v2788_v58 = vpop.xlane.xlu1 %2787 }
 0xf13   : > { %v5052_v56 = vpop.eup %5051  ;;  %v2805_v38 = vadd.f32 1e-05, %v2797_v35  ;;  %v2798_v41 = vmul.f32 0.0078125, %v2788_v58  ;;  %v4889_v58 = vld [vmem:[%s6275_s15 + $0x18] sm:$0xff]  }
 0xf14   : > { %v2817_v23 = vmul.f32 %v5052_v56, %v7039_v2  ;;  %v2790_v61 = vpop.xlane.xlu0 %2789  ;;  %v4890_v56 = vld [vmem:[%s6275_s15 + $0x98] sm:$0xff]  }
 0xf15   : > { %v5054_v60 = vpop.eup %5053  ;;  %5059 = vrsqrt.f32 %v2805_v38  ;;  %v2806_v33 = vadd.f32 1e-05, %v2798_v41  ;;  %v2799_v26 = vmul.f32 0.0078125, %v2790_v61  ;;  %v4891_v38 = vld [vmem:[%s6275_s15 + $0x60] sm:$0xff]  }
 0xf16   : > { %v2831_v3 = vmul.f32 %v7106_v24, %v2817_v23  ;;  %v2818_v14 = vmul.f32 %v5054_v60, %v7042_v39  ;;  %v2792_v1 = vpop.xlane.xlu1 %2791  ;;  %v4892_v41 = vld [vmem:[%s6275_s15 + $0xe0] sm:$0xff]  }
 0xf17   : > { %v5056_v21 = vpop.eup %5055  ;;  %5061 = vrsqrt.f32 %v2806_v33  ;;  %v2800_v63 = vmul.f32 0.0078125, %v2792_v1  ;;  %v2807_v37 = vadd.f32 1e-05, %v2799_v26  ;;  %v4894_v26 = vld [vmem:[%s6275_s15 + $0xa0] sm:$0xff]  }
 0xf18   : > { %v2832_v2 = vmul.f32 %v7106_v24, %v2818_v14  ;;  %v2845_v25 = vadd.f32 %v7113_v12, %v2831_v3  ;;  %v2819_v39 = vmul.f32 %v5056_v21, %v7047_v59  ;;  %v4895_v3 = vld [vmem:[%s6275_s15 + $0x68] sm:$0xff]  }
 0xf19   : > { %v2808_v57 = vadd.f32 1e-05, %v2800_v63  ;;  %v4896_v14 = vld [vmem:[%s6275_s15 + $0xe8] sm:$0xff]  }
 0xf1a   : > { %v2846_v17 = vadd.f32 %v7113_v12, %v2832_v2  ;;  %v2833_v13 = vmul.f32 %v7106_v24, %v2819_v39  ;;  %v4898_v2 = vld [vmem:[%s6275_s15 + $0xa8] sm:$0xff]   ;;  %v4905_v39 = vld [vmem:[%s6275_s15 + $0x38] sm:$0xff]  }
 0xf1b   : > { %v5058_v27 = vpop.eup %5057  ;;  %5063 = vrsqrt.f32 %v2808_v57  ;;  %v4901_v57 = vld [vmem:[%s6275_s15 + $0x30] sm:$0xff]  }
 0xf1c   : > { %v2853_v45 = vpack.c.bf16 %v2846_v17, %v2845_v25  ;;  %v2820_v18 = vmul.f32 %v5058_v27, %v7054_v40  ;;  %5065 = vrsqrt.f32 %v2807_v37  ;;  %v2847_v29 = vadd.f32 %v7113_v12, %v2833_v13  ;;  %v4900_v37 = vld [vmem:[%s6275_s15 + $0xf0] sm:$0xff]   ;;  %v4904_v17 = vld [vmem:[%s6275_s15 + $0xf8] sm:$0xff]  }
 0xf1d   : > { %v4902_v25 = vld [vmem:[%s6275_s15 + $0xb0] sm:$0xff]   ;;  %v4906_v27 = vld [vmem:[%s6275_s15 + $0xb8] sm:$0xff]  }
 0xf1e   : > { %3104 = vmatmul.mubr.bf16.vlgmr.msra.gmra.mrb[48].mxu1 %v2853_v45  ;;  %3177 = vmatmul.mubr.bf16.vlgmr.msra.gmra.mrb[48].mxu0 %v2853_v45  ;;  %v2834_v59 = vmul.f32 %v7106_v24, %v2820_v18  ;;  %v2893_v45 = vsub.s32 0, %v6424_v62  ;;  %v2901_v18 = vsub.s32 2, %v6424_v62 }
 0xf1f   : > { %v5060_v28 = vpop.eup %5059  ;;  %3113 = vmatprep.mubr.bf16.mxu1 %v5603_v7  ;;  %3186 = vmatprep.mubr.bf16.mxu0 %v5603_v7 }
 0xf20   : > { %v2848_v40 = vadd.f32 %v7113_v12, %v2834_v59  ;;  %4281 = vmatpush3.bf16.msra.mxu1 %v4877_v11  ;;  %4321 = vmatpush3.bf16.msra.mxu0 %v4878_v55  ;;  %v2821_v30 = vmul.f32 %v5060_v28, %v7059_v31  ;;  %v2889_v11 = vld [vmem:[%s6269_s10] sm:$0xf]  ;;  %v2897_v55 = vsub.s32 1, %v6424_v62 }
 0xf21   : > { %v5062_v47 = vpop.eup %5061  ;;  %4282 = vmatprep.subr.bf16.mxu1 %v4879_v16  ;;  %4322 = vmatprep.subr.bf16.mxu0 %v4880_v6  ;;  %v2905_v16 = vsub.s32 3, %v6424_v62  ;;  %v7177_v6 = vrot.slane %v2889_v11, %v2893_v45  ;;  %v7179_v13 = vrot.slane %v2889_v11, %v2901_v18 }
 0xf22   : > { %v2822_v49 = vmul.f32 %v5062_v47, %v7062_v32  ;;  %v2854_v9 = vpack.c.bf16 %v2848_v40, %v2847_v29  ;;  %v2835_v31 = vmul.f32 %v7106_v24, %v2821_v30  ;;  %v7181_v59 = vrot.slane %v2889_v11, %v2897_v55 }
 0xf23   : > { %v7183_v28 = vrot.slane %v2889_v11, %v2905_v16 }
 0xf24   : > { %v2836_v15 = vmul.f32 %v7106_v24, %v2822_v49  ;;  %4283 = vmatpush3.bf16.msra.mxu1 %v4881_v44  ;;  %4323 = vmatpush3.bf16.msra.mxu0 %v4882_v19  ;;  %v2849_v23 = vadd.f32 %v7113_v12, %v2835_v31 }
 0xf25   : > { %v5064_v8 = vpop.eup %5063  ;;  %4284 = vmatprep.subr.bf16.mxu1 %v4883_v10  ;;  %4324 = vmatprep.subr.bf16.mxu0 %v4884_v43 }
 0xf26   : > { %3114 = vmatmul.mubr.bf16.gmra.mrb[52].mxu1 %v2854_v9  ;;  %3187 = vmatmul.mubr.bf16.gmra.mrb[52].mxu0 %v2854_v9  ;;  %v5066_v32 = vpop.eup %5065  ;;  %v2850_v52 = vadd.f32 %v7113_v12, %v2836_v15  ;;  %v2824_v35 = vmul.f32 %v5064_v8, %v7072_v54  ;;  %v4893_v54 = vld [vmem:[%s6275_s15 + $0x20] sm:$0xff]  }
 0xf27   : > { %3123 = vmatprep.mubr.bf16.mxu1 %v5603_v7  ;;  %3196 = vmatprep.mubr.bf16.mxu0 %v5603_v7  ;;  %v2823_v61 = vmul.f32 %v5066_v32, %v7067_v22 }
 0xf28   : > { %4285 = vmatpush3.bf16.msra.mxu1 %v4885_v20  ;;  %4325 = vmatpush3.bf16.msra.mxu0 %v4886_v48  ;;  %v2855_v60 = vpack.c.bf16 %v2850_v52, %v2849_v23  ;;  %v2838_v33 = vmul.f32 %v7106_v24, %v2824_v35 }
 0xf29   : > { %4286 = vmatprep.subr.bf16.mxu1 %v4887_v51  ;;  %4326 = vmatprep.subr.bf16.mxu0 %v4888_v53  ;;  %v2837_v1 = vmul.f32 %v7106_v24, %v2823_v61  ;;  %v4897_v24 = vld [vmem:[%s6275_s15 + $0x28] sm:$0xff]  }
 0xf2a   : > { %v2852_v22 = vadd.f32 %v7113_v12, %v2838_v33 }
 0xf2b   : > { %v2851_v21 = vadd.f32 %v7113_v12, %v2837_v1  ;;  %v4903_v12 = vld [vmem:[%s6275_s15 + $0x78] sm:$0xff]  }
 0xf2c   : > { %4287 = vmatpush3.bf16.msra.mxu1 %v4889_v58  ;;  %4327 = vmatpush3.bf16.msra.mxu0 %v4890_v56 }
 0xf2d   : > { %4288 = vmatprep.subr.bf16.mxu1 %v4891_v38  ;;  %4328 = vmatprep.subr.bf16.mxu0 %v4892_v41  ;;  %v2856_v63 = vpack.c.bf16 %v2852_v22, %v2851_v21 }
 0xf2e   : > { %3124 = vmatmul.mubr.bf16.gmra.mrb[56].mxu1 %v2855_v60  ;;  %3197 = vmatmul.mubr.bf16.gmra.mrb[56].mxu0 %v2855_v60 }
 0xf2f   : > { %3133 = vmatprep.mubr.bf16.mxu1 %v5603_v7  ;;  %3206 = vmatprep.mubr.bf16.mxu0 %v5603_v7  ;;  %v4899_v7 = vld [vmem:[%s6275_s15 + $0x70] sm:$0xff]  }
 0xf30   : > { %4289 = vmatpush3.bf16.msra.mxu1 %v4893_v54  ;;  %4329 = vmatpush3.bf16.msra.mxu0 %v4894_v26 }
 0xf31   : > { %4290 = vmatprep.subr.bf16.mxu1 %v4895_v3  ;;  %4330 = vmatprep.subr.bf16.mxu0 %v4896_v14 }
 0xf34   : > { %4291 = vmatpush3.bf16.msra.mxu1 %v4897_v24  ;;  %4331 = vmatpush3.bf16.msra.mxu0 %v4898_v2 }
 0xf35   : > { %4292 = vmatprep.subr.bf16.mxu1 %v4899_v7  ;;  %4332 = vmatprep.subr.bf16.mxu0 %v4900_v37 }
 0xf36   : > { %3134 = vmatmul.mubr.bf16.gmra.mrb[60].mxu1 %v2856_v63  ;;  %3207 = vmatmul.mubr.bf16.gmra.mrb[60].mxu0 %v2856_v63 }
 0xf38   : > { %4293 = vmatpush3.bf16.msra.mxu1 %v4901_v57  ;;  %4333 = vmatpush3.bf16.msra.mxu0 %v4902_v25 }
 0xf39   : > { %4294 = vmatprep.subr.bf16.mxu1 %v4903_v12  ;;  %4334 = vmatprep.subr.bf16.mxu0 %v4904_v17 }
 0xf3c   : > { %4295 = vmatpush3.bf16.msra.mxu1 %v4905_v39  ;;  %4335 = vmatpush3.bf16.msra.mxu0 %v4906_v27 }
 0xff1   : > { %v3105_v40 = vpop.f32.mrb[48].mxu1  ;;  %v3178_v44 = vpop.f32.mrb[48].mxu0 }
 0xff2   : > { %v3106_v19 = vadd.f32 %v3105_v40, %v7177_v6  ;;  %v3179_v47 = vadd.f32 %v3178_v44, %v7179_v13  ;;  %v3107_v10 = vpop.f32.mrb[49].mxu1  ;;  %v3180_v43 = vpop.f32.mrb[49].mxu0 }
 0xff3   : > { %v3108_v29 = vadd.f32 %v3107_v10, %v7181_v59  ;;  %v3181_v62 = vadd.f32 %v3180_v43, %v7183_v28  ;;  %v3109_v30 = vpop.f32.mrb[50].mxu1  ;;  %v3182_v49 = vpop.f32.mrb[50].mxu0 }
 0xff4   : > { %v3110_v9 = vadd.f32 %v3109_v30, %v7177_v6  ;;  %v3183_v15 = vadd.f32 %v3182_v49, %v7179_v13  ;;  %v3111_v20 = vpop.f32.mrb[51].mxu1  ;;  %v3184_v48 = vpop.f32.mrb[51].mxu0  ;;  %v3217_v53 = vmax.f32 %v3106_v19, 0.0  ;;  %v3219_v31 = vmax.f32 %v3179_v47, 0.0 }
 0xff5   : > { %v3112_v8 = vadd.f32 %v3111_v20, %v7181_v59  ;;  %v3185_v51 = vadd.f32 %v3184_v48, %v7183_v28  ;;  %v3218_v35 = vmax.f32 %v3108_v29, 0.0  ;;  %v3220_v58 = vmax.f32 %v3181_v62, 0.0 }
 0xff6   : > { %v3221_v32 = vmax.f32 %v3110_v9, 0.0  ;;  %v3223_v52 = vmax.f32 %v3183_v15, 0.0 }
 0xff7   : > { %v3222_v56 = vmax.f32 %v3112_v8, 0.0  ;;  %v3224_v38 = vmax.f32 %v3185_v51, 0.0 }
 0xff8   : > { %v3249_v41 = vpack.c.bf16 %v3221_v32, %v3217_v53  ;;  %v3251_v23 = vpack.c.bf16 %v3223_v52, %v3219_v31 }
 0xff9   : > { %v3250_v61 = vpack.c.bf16 %v3222_v56, %v3218_v35  ;;  %v3252_v60 = vpack.c.bf16 %v3224_v38, %v3220_v58  ;;  %v3115_v33 = vpop.f32.mrb[52].mxu1  ;;  %v3188_v54 = vpop.f32.mrb[52].mxu0 }
 0xffa   : > { %v3116_v26 = vadd.f32 %v3115_v33, %v7177_v6  ;;  %v3189_v3 = vadd.f32 %v3188_v54, %v7179_v13  ;;  %v3117_v14 = vpop.f32.mrb[53].mxu1  ;;  %v3190_v1 = vpop.f32.mrb[53].mxu0 }
 0xffb   : > { %v3118_v22 = vadd.f32 %v3117_v14, %v7181_v59  ;;  %v3191_v21 = vadd.f32 %v3190_v1, %v7183_v28  ;;  %v3119_v63 = vpop.f32.mrb[54].mxu1  ;;  %v3192_v24 = vpop.f32.mrb[54].mxu0  ;;  %3553 = vmatprep.mubr.bf16.mxu1 %v3250_v61  ;;  %3618 = vmatprep.mubr.bf16.mxu0 %v3252_v60 }
 0xffc   : > { %v3120_v2 = vadd.f32 %v3119_v63, %v7177_v6  ;;  %v3193_v7 = vadd.f32 %v3192_v24, %v7179_v13  ;;  %v3121_v37 = vpop.f32.mrb[55].mxu1  ;;  %v3194_v57 = vpop.f32.mrb[55].mxu0  ;;  %3554 = vmatmul.mubr.bf16.vlgmr.msra.gmra.mrb[64].mxu1 %v3249_v41  ;;  %3619 = vmatmul.mubr.bf16.vlgmr.msra.gmra.mrb[64].mxu0 %v3251_v23  ;;  %v3225_v17 = vmax.f32 %v3116_v26, 0.0  ;;  %v3227_v39 = vmax.f32 %v3189_v3, 0.0 }
 0xffd   : > { %v3122_v25 = vadd.f32 %v3121_v37, %v7181_v59  ;;  %v3195_v12 = vadd.f32 %v3194_v57, %v7183_v28  ;;  %v3226_v18 = vmax.f32 %v3118_v22, 0.0  ;;  %v3228_v11 = vmax.f32 %v3191_v21, 0.0 }
 0xffe   : > { %v3229_v27 = vmax.f32 %v3120_v2, 0.0  ;;  %v3231_v45 = vmax.f32 %v3193_v7, 0.0 }
 0xfff   : > { %v3230_v55 = vmax.f32 %v3122_v25, 0.0  ;;  %v3232_v16 = vmax.f32 %v3195_v12, 0.0 }
0x1000   : > { %v3253_v40 = vpack.c.bf16 %v3229_v27, %v3225_v17  ;;  %v3255_v44 = vpack.c.bf16 %v3231_v45, %v3227_v39 }
0x1001   : > { %v3254_v19 = vpack.c.bf16 %v3230_v55, %v3226_v18  ;;  %v3256_v47 = vpack.c.bf16 %v3232_v16, %v3228_v11  ;;  %v3125_v10 = vpop.f32.mrb[56].mxu1  ;;  %v3198_v43 = vpop.f32.mrb[56].mxu0 }
0x1002   : > { %v3126_v29 = vadd.f32 %v3125_v10, %v7177_v6  ;;  %v3199_v62 = vadd.f32 %v3198_v43, %v7179_v13  ;;  %v3127_v30 = vpop.f32.mrb[57].mxu1  ;;  %v3200_v49 = vpop.f32.mrb[57].mxu0 }
0x1003   : > { %v3128_v9 = vadd.f32 %v3127_v30, %v7181_v59  ;;  %v3201_v15 = vadd.f32 %v3200_v49, %v7183_v28  ;;  %v3129_v20 = vpop.f32.mrb[58].mxu1  ;;  %v3202_v48 = vpop.f32.mrb[58].mxu0  ;;  %3561 = vmatprep.mubr.bf16.mxu1 %v3254_v19  ;;  %3626 = vmatprep.mubr.bf16.mxu0 %v3256_v47 }
0x1004   : > { %v3130_v8 = vadd.f32 %v3129_v20, %v7177_v6  ;;  %v3203_v51 = vadd.f32 %v3202_v48, %v7179_v13  ;;  %v3131_v53 = vpop.f32.mrb[59].mxu1  ;;  %v3204_v31 = vpop.f32.mrb[59].mxu0  ;;  %3562 = vmatmul.mubr.bf16.gmra.mrb[68].mxu1 %v3253_v40  ;;  %3627 = vmatmul.mubr.bf16.gmra.mrb[68].mxu0 %v3255_v44  ;;  %v3233_v35 = vmax.f32 %v3126_v29, 0.0  ;;  %v3235_v58 = vmax.f32 %v3199_v62, 0.0 }
0x1005   : > { %v3132_v32 = vadd.f32 %v3131_v53, %v7181_v59  ;;  %v3205_v52 = vadd.f32 %v3204_v31, %v7183_v28  ;;  %v3234_v41 = vmax.f32 %v3128_v9, 0.0  ;;  %v3236_v23 = vmax.f32 %v3201_v15, 0.0  ;;  %v7219_v31 = vld [vmem:[%s741_s3] ss:$0 sm:$0xff] }
0x1006   : > { %v3237_v56 = vmax.f32 %v3130_v8, 0.0  ;;  %v3239_v38 = vmax.f32 %v3203_v51, 0.0 }
0x1007   : > { %v3238_v61 = vmax.f32 %v3132_v32, 0.0  ;;  %v3240_v60 = vmax.f32 %v3205_v52, 0.0 }
0x1008   : > { %v3257_v33 = vpack.c.bf16 %v3237_v56, %v3233_v35  ;;  %v3259_v54 = vpack.c.bf16 %v3239_v38, %v3235_v58 }
0x1009   : > { %v3258_v26 = vpack.c.bf16 %v3238_v61, %v3234_v41  ;;  %v3260_v3 = vpack.c.bf16 %v3240_v60, %v3236_v23  ;;  %v3135_v14 = vpop.f32.mrb[60].mxu1  ;;  %v3208_v1 = vpop.f32.mrb[60].mxu0 }
0x100a   : > { %v3136_v22 = vadd.f32 %v3135_v14, %v7177_v6  ;;  %v3209_v21 = vadd.f32 %v3208_v1, %v7179_v13  ;;  %v3137_v63 = vpop.f32.mrb[61].mxu1  ;;  %v3210_v24 = vpop.f32.mrb[61].mxu0 }
0x100b   : > { %v3138_v2 = vadd.f32 %v3137_v63, %v7181_v59  ;;  %v3211_v7 = vadd.f32 %v3210_v24, %v7183_v28  ;;  %v3139_v37 = vpop.f32.mrb[62].mxu1  ;;  %v3212_v57 = vpop.f32.mrb[62].mxu0  ;;  %3569 = vmatprep.mubr.bf16.mxu1 %v3258_v26  ;;  %3634 = vmatprep.mubr.bf16.mxu0 %v3260_v3 }
0x100c   : > { %v3140_v25 = vadd.f32 %v3139_v37, %v7177_v6  ;;  %v3213_v12 = vadd.f32 %v3212_v57, %v7179_v13  ;;  %v3141_v17 = vpop.f32.mrb[63].mxu1  ;;  %v3214_v39 = vpop.f32.mrb[63].mxu0  ;;  %3570 = vmatmul.mubr.bf16.gmra.mrb[72].mxu1 %v3257_v33  ;;  %3635 = vmatmul.mubr.bf16.gmra.mrb[72].mxu0 %v3259_v54  ;;  %v3241_v18 = vmax.f32 %v3136_v22, 0.0  ;;  %v3243_v11 = vmax.f32 %v3209_v21, 0.0 }
0x100d   : > { %v3142_v27 = vadd.f32 %v3141_v17, %v7181_v59  ;;  %v3215_v45 = vadd.f32 %v3214_v39, %v7183_v28  ;;  %v3242_v40 = vmax.f32 %v3138_v2, 0.0  ;;  %v3244_v44 = vmax.f32 %v3211_v7, 0.0 }
0x100e   : > { %v3245_v55 = vmax.f32 %v3140_v25, 0.0  ;;  %v3247_v16 = vmax.f32 %v3213_v12, 0.0 }
0x100f   : > { %v3246_v19 = vmax.f32 %v3142_v27, 0.0  ;;  %v3248_v47 = vmax.f32 %v3215_v45, 0.0 }
0x1010   : > { %v3261_v10 = vpack.c.bf16 %v3245_v55, %v3241_v18  ;;  %v3263_v6 = vpack.c.bf16 %v3247_v16, %v3243_v11 }
0x1011   : > { %v3262_v43 = vpack.c.bf16 %v3246_v19, %v3242_v40  ;;  %v3264_v13 = vpack.c.bf16 %v3248_v47, %v3244_v44 }
0x1013   : > { %3577 = vmatprep.mubr.bf16.mxu1 %v3262_v43  ;;  %3642 = vmatprep.mubr.bf16.mxu0 %v3264_v13 }
0x1014   : > { %3578 = vmatmul.mubr.bf16.gmra.mrb[76].mxu1 %v3261_v10  ;;  %3643 = vmatmul.mubr.bf16.gmra.mrb[76].mxu0 %v3263_v6 }
0x10cf   : > { %v4296_v59 = vpop.f32.mrb[64].mxu1  ;;  %v4336_v29 = vpop.f32.mrb[64].mxu0 }
0x10d0   : > { %v4297_v28 = vpop.f32.mrb[65].mxu1  ;;  %v4337_v62 = vpop.f32.mrb[65].mxu0 }
0x10d1   : > { %v4298_v30 = vadd.f32 %v4297_v28, %v4296_v59  ;;  %v4338_v49 = vadd.f32 %v4337_v62, %v4336_v29  ;;  %v4299_v9 = vpop.f32.mrb[66].mxu1  ;;  %v4339_v15 = vpop.f32.mrb[66].mxu0 }
0x10d2   : > { %v4300_v20 = vpop.f32.mrb[67].mxu1  ;;  %v4340_v48 = vpop.f32.mrb[67].mxu0 }
0x10d3   : > { %v3621_v8 = vadd.f32 %v4338_v49, %v4298_v30  ;;  %v4301_v51 = vadd.f32 %v4300_v20, %v4299_v9  ;;  %v4341_v53 = vadd.f32 %v4340_v48, %v4339_v15 }
0x10d5   : > { %v3651_v32 = vadd.f32 %v3621_v8, %v7006_v36  ;;  %v3624_v52 = vadd.f32 %v4341_v53, %v4301_v51 }
0x10d7   : > { %v7223_v35 = vadd.f32 %v7219_v31, %v3651_v32  ;;  %v3652_v58 = vadd.f32 %v3624_v52, %v7008_v5  ;;  %v4302_v56 = vpop.f32.mrb[68].mxu1  ;;  %v4342_v38 = vpop.f32.mrb[68].mxu0 }
0x10d8   : > { %v4303_v41 = vpop.f32.mrb[69].mxu1  ;;  %v4343_v23 = vpop.f32.mrb[69].mxu0 }
0x10d9   : > { %3674 = vst [vmem:[#allocation2] sm:$0xff] %v7223_v35  ;;  %v3667_v61 = vadd.f32 %v7219_v31, %v3652_v58  ;;  %v4304_v60 = vadd.f32 %v4303_v41, %v4302_v56  ;;  %v4344_v33 = vadd.f32 %v4343_v23, %v4342_v38  ;;  %v4305_v54 = vpop.f32.mrb[70].mxu1  ;;  %v4345_v26 = vpop.f32.mrb[70].mxu0  ;;  %3686 = vst [vmem:[%s6285_s28] sm:$0xff] (!%p4180_p7), %v7223_v35 }
0x10da   : > { %v4306_v3 = vpop.f32.mrb[71].mxu1  ;;  %v4346_v36 = vpop.f32.mrb[71].mxu0 }
0x10db   : > { %3675 = vst [vmem:[#allocation2 + $0x8] sm:$0xff] %v3667_v61  ;;  %v3629_v14 = vadd.f32 %v4344_v33, %v4304_v60  ;;  %v4307_v1 = vadd.f32 %v4306_v3, %v4305_v54  ;;  %v4347_v22 = vadd.f32 %v4346_v36, %v4345_v26  ;;  %3687 = vst [vmem:[%s6285_s28 + $0x8] sm:$0xff] (!%p4180_p7), %v3667_v61 }
0x10dd   : > { %v3653_v5 = vadd.f32 %v3629_v14, %v7011_v46  ;;  %v3632_v21 = vadd.f32 %v4347_v22, %v4307_v1 }
0x10df   : > { %v3668_v63 = vadd.f32 %v7219_v31, %v3653_v5  ;;  %v3654_v24 = vadd.f32 %v3632_v21, %v7015_v50  ;;  %v4308_v2 = vpop.f32.mrb[72].mxu1  ;;  %v4348_v7 = vpop.f32.mrb[72].mxu0 }
0x10e0   : > { %v4309_v37 = vpop.f32.mrb[73].mxu1  ;;  %v4349_v57 = vpop.f32.mrb[73].mxu0 }
0x10e1   : > { %3676 = vst [vmem:[#allocation2 + $0x10] sm:$0xff] %v3668_v63  ;;  %v3669_v25 = vadd.f32 %v7219_v31, %v3654_v24  ;;  %v4310_v12 = vadd.f32 %v4309_v37, %v4308_v2  ;;  %v4350_v17 = vadd.f32 %v4349_v57, %v4348_v7  ;;  %v4311_v39 = vpop.f32.mrb[74].mxu1  ;;  %v4351_v27 = vpop.f32.mrb[74].mxu0  ;;  %3688 = vst [vmem:[%s6285_s28 + $0x10] sm:$0xff] (!%p4180_p7), %v3668_v63 }
0x10e2   : > { %v4312_v45 = vpop.f32.mrb[75].mxu1  ;;  %v4352_v18 = vpop.f32.mrb[75].mxu0 }
0x10e3   : > { %3677 = vst [vmem:[#allocation2 + $0x18] sm:$0xff] %v3669_v25  ;;  %v3637_v46 = vadd.f32 %v4350_v17, %v4310_v12  ;;  %v4313_v11 = vadd.f32 %v4312_v45, %v4311_v39  ;;  %v4353_v55 = vadd.f32 %v4352_v18, %v4351_v27  ;;  %3689 = vst [vmem:[%s6285_s28 + $0x18] sm:$0xff] (!%p4180_p7), %v3669_v25 }
0x10e5   : > { %v3655_v16 = vadd.f32 %v3637_v46, %v7018_v0  ;;  %v3640_v50 = vadd.f32 %v4353_v55, %v4313_v11 }
0x10e7   : > { %v3670_v40 = vadd.f32 %v7219_v31, %v3655_v16  ;;  %v3656_v44 = vadd.f32 %v3640_v50, %v7020_v34  ;;  %v4314_v19 = vpop.f32.mrb[76].mxu1  ;;  %v4354_v47 = vpop.f32.mrb[76].mxu0 }
0x10e8   : > { %v4315_v10 = vpop.f32.mrb[77].mxu1  ;;  %v4355_v6 = vpop.f32.mrb[77].mxu0 }
0x10e9   : > { %3678 = vst [vmem:[#allocation2 + $0x20] sm:$0xff] %v3670_v40  ;;  %v3671_v43 = vadd.f32 %v7219_v31, %v3656_v44  ;;  %v4316_v13 = vadd.f32 %v4315_v10, %v4314_v19  ;;  %v4356_v59 = vadd.f32 %v4355_v6, %v4354_v47  ;;  %v4317_v29 = vpop.f32.mrb[78].mxu1  ;;  %v4357_v28 = vpop.f32.mrb[78].mxu0  ;;  %3690 = vst [vmem:[%s6285_s28 + $0x20] sm:$0xff] (!%p4180_p7), %v3670_v40 }
0x10ea   : > { %v4318_v62 = vpop.f32.mrb[79].mxu1  ;;  %v4358_v30 = vpop.f32.mrb[79].mxu0 }
0x10eb   : > { %3679 = vst [vmem:[#allocation2 + $0x28] sm:$0xff] %v3671_v43  ;;  %v3645_v0 = vadd.f32 %v4356_v59, %v4316_v13  ;;  %v4319_v49 = vadd.f32 %v4318_v62, %v4317_v29  ;;  %v4359_v9 = vadd.f32 %v4358_v30, %v4357_v28  ;;  %3691 = vst [vmem:[%s6285_s28 + $0x28] sm:$0xff] (!%p4180_p7), %v3671_v43 }
0x10ed   : > { %v3657_v15 = vadd.f32 %v3645_v0, %v7023_v42  ;;  %v3648_v34 = vadd.f32 %v4359_v9, %v4319_v49  ;;  %3685 = sbr.rel (%p4180_p7) target bundleno = 4340 (0x10f4), region = 124 }
0x10ef   : > { %v3672_v20 = vadd.f32 %v7219_v31, %v3657_v15  ;;  %v3658_v48 = vadd.f32 %v3648_v34, %v7026_v4 }
0x10f1   : > { %3680 = vst [vmem:[#allocation2 + $0x30] sm:$0xff] %v3672_v20  ;;  %v3673_v8 = vadd.f32 %v7219_v31, %v3658_v48  ;;  %3692 = vst [vmem:[%s6285_s28 + $0x30] sm:$0xff] (!%p4180_p7), %v3672_v20 }
0x10f3   : > { %3681 = vst [vmem:[#allocation2 + $0x38] sm:$0xff] %v3673_v8  ;;  %3693 = vst [vmem:[%s6285_s28 + $0x38] sm:$0xff] (!%p4180_p7), %v3673_v8 }
0x10f4 PF: > { %s7431_s5 = sld [smem:[#allocation34_spill]]  ;;  %s7432_s27 = sld [smem:[#allocation52_spill]] }
0x10f5   : > { %s3708_s20 = sshll.u32 %s6285_s28, 4  ;;  %s3695_s0 = scalar_lea.sflag [#allocation5], %s6215_s18  ;;  %s7257_s20 = int_to_ptr.vmem [resolvable:$true] %s3708_s20 }
0x10f6   : > { %s5435_s10 = scalar_lea.vmem %s7257_s20, 1024  ;;  %p7434_p5 = scmp.ne.s32.totalorder %s7403_s4, 0 }
0x10f7   : > { %p5436_p0 = scmp.ne.s32.totalorder %s7257_s20, %s5435_s10  ;;  %s5608_s15 = smov [#allocation23]  }
0x10f8   : > { %s5439_s30 = sshll.u32 %s5608_s15, 4  ;;  %s5440_s30 = int_to_ptr.vmem [resolvable:$false] %s5439_s30 }
0x10f9   : > { %p5437_p10 = pnand %p5436_p0, %p7434_p5  ;;  %s5441_s2 = scalar_lea.vmem %s5440_s30, 2048 }
0x10fa   : > { %s4191_s17 = sshll.u32 %s7431_s5, 10  ;;  %s7433_s3 = smov %s7432_s27 }
0x10fb   : > { %s7254_s1 = scalar_lea.hbm %s7432_s27, %s4191_s17  ;;  %p5438_p9 = pneg %p5437_p10 }
0x10fc   : > { %p5442_p3 = scmp.lt.s32.totalorder %s7257_s20, %s5440_s30  ;;  %p5443_p2 = scmp.lt.s32.totalorder %s5441_s2, %s5435_s10 }
0x10fe   : > { %p5444_p12 = por %p5443_p2, %p5442_p3 }
0x1100   : > { %p5445_p1 = pnand %p5444_p12, %p5438_p9 }
0x1102   : > { %5448 = shalt.err (!%p5445_p1)
}
0x1103   : > { %s5449_s28 = scalar_lea.hbm %s7254_s1, 1024  ;;  %s5453_s26 = scalar_lea.hbm %s7433_s3, 2048 }
0x1104   : > { %p5450_p13 = scmp.ne.s32.totalorder %s7254_s1, %s5449_s28  ;;  %p5454_p4 = scmp.lt.u32.totalorder %s7254_s1, %s7433_s3 }
0x1105   : > { %p5455_p6 = scmp.lt.u32.totalorder %s5453_s26, %s5449_s28  ;;  %p5457_p0 = scmp.lt.u32.totalorder %s5449_s28, %s7254_s1 }
0x1106   : > { %p5451_p11 = pnand %p5450_p13, %p7434_p5 }
0x1107   : > { %p5456_p7 = por %p5455_p6, %p5454_p4 }
0x1108   : > { %p5452_p8 = pneg %p5451_p11 }
0x1109   : > { %p5458_p10 = por %p5457_p0, %p5456_p7 }
0x110b   : > { %p5459_p9 = pnand %p5458_p10, %p5452_p8 }
0x110d   : > { %5462 = shalt.err (!%p5459_p9)
}
0x110e   : > { %s5609_s5 = smov 128   ;;  %s5610_s17 = smov 8  }
0x110f   : > { %4579 = dma.vmem_to_hbm [thread:$0]  (%p7434_p5), %s7257_s20, 1024, %s7254_s1, %s3695_s0, %s5609_s5, %s5609_s5, %s5610_s17  }
0x1110 PF: > { %p4623_p3 = scmp.ge.s32.totalorder %s5581_s13, 2  ;;  %s3723_s16 = sand.u32 1, %s5553_s24  }
0x1111   : > { %p7435_p2 = scmp.ne.s32.totalorder %s7404_s21, 0  ;;  %s3724_s9 = scalar_lea.sflag [#allocation5], %s3723_s16 }
0x1113   : > { %p4619_p12 = pnand %p4623_p3, %p7435_p2 }
0x1115   : > { %5536 = dma.done.wait (!%p4619_p12), %s3724_s9, 1024  }
0x1116   : > { %5538 = vsyncadd (!%p4619_p12), %s3724_s9, 4294966272  ;;  %s46_s13 = sadd.s32 1, %s5581_s13   ;;  %s7436_s4 = sld [smem:[#allocation32_spill]] }
0x1117   : > { %p43_p1 = scmp.ge.s32.totalorder %s46_s13, 6   ;;  %s7437_s26 = sld [smem:[#allocation39_spill]] }
0x1118   : > { %s7438_s28 = sld [smem:[#allocation35_spill]]  ;;  %s7439_s18 = sld [smem:[#allocation37_spill]] }
0x1119   : > { %s7440_s30 = sld [smem:[#allocation38_spill]]  ;;  %s7441_s21 = smov %s5545_s22 }
0x111a   : > { %s7442_s22 = smov %s5549_s23  ;;  %s7443_s23 = smov %s5961_s19 }
0x111b   : > { %s7444_s24 = smov %s5557_s25  ;;  %s7446_s27 = smov %s5573_s29 }
0x111c   : > { %s7445_s25 = smov %s7436_s4  ;;  %45 = sbr.rel (!%p43_p1) target bundleno = 35 (0x23), region = 254 }
0x111e   : > { %s7447_s29 = smov %s7439_s18 }
0x1123   :  { %3729 = vsyncpa [#allocation4], 1 }
0x1124   :  { %3731 = vsyncpa [#allocation4 + $0x1], 1 }
0x1125   :  { %3732 = vsyncpa [#allocation7], 1 }
0x1126   :  { %3734 = vsyncpa [#allocation7 + $0x1], 1 }
0x1127   :  { %3735 = vsyncpa [#allocation10], 1 }
0x1128   :  { %3737 = vsyncpa [#allocation10 + $0x1], 1 }
0x1129   :  { %3738 = vsyncpa [#allocation13], 1 }
0x112a   :  { %3740 = vsyncpa [#allocation13 + $0x1], 1 }
0x112b   :  { %3741 = vsyncpa [#allocation16], 1 }
0x112c   :  { %3743 = vsyncpa [#allocation16 + $0x1], 1 }
0x112d   :  { %3744 = vsyncpa [#allocation19], 1 }
0x112e   :  { %3746 = vsyncpa [#allocation19 + $0x1], 1 }
0x112f   :  { %3747 = vsyncpa [#allocation22], 1 }
0x1130   :  { %3749 = vsyncpa [#allocation22 + $0x1], 1 }
0x1131   :  { %3750 = vsyncpa [#allocation5], 1 }
0x1132   :  { %3752 = vsyncpa [#allocation5 + $0x1], 1 }

</bundles_post_ra>
